<compile_context>
chip_gen: v7x
topology: tpu7x:2x2x1
jax: 0.10.0
libtpu: 0.0.40
codegen_flags: <defaults>
</compile_context>

<pallas_src>
import jax
import jax.numpy as jnp
from jax import lax
from jax.experimental import pallas as pl
from jax.experimental.pallas import tpu as pltpu

SOS_token = 1


# -----------------------------------------------------------------------------
# Fused kernel: bidirectional GRU encoder + greedy Luong-attention decode loop
# -----------------------------------------------------------------------------

def _gru_gates(gi, gh, h, b_hn, H):
    """PyTorch GRU cell (gate order r, z, n). gi already has b_ir+b_hr | b_iz+b_hz | b_in folded."""
    rz = jax.nn.sigmoid(gi[:, :2 * H] + gh[:, :2 * H])
    r = rz[:, :H]
    z = rz[:, H:]
    n = jnp.tanh(gi[:, 2 * H:] + r * (gh[:, 2 * H:] + b_hn))
    return (1.0 - z) * n + z * h


def _greedy_search_kernel(
    emb_seq_ref, emb_tbl_ref, w_gru_ref, wc_ref, wo_ref, b_gru_ref, b_out_ref,
    tok_ref, score_ref,
    gi_f_ref, gi_b_ref, enc_f_ref, enc_b_ref,
):
    S, H = emb_seq_ref.shape
    V = emb_tbl_ref.shape[0]
    max_length = tok_ref.shape[1]

    emb = emb_seq_ref[...]                                  # (S, H) f32 embedded input sequence

    # ---- unpack & upcast weights ONCE (bf16 storage halves DMA bytes; math stays f32) ----
    w_gru = w_gru_ref[...].astype(jnp.float32)              # (6H, 3H)
    f_wih = w_gru[0 * H:1 * H]
    b_wih = w_gru[1 * H:2 * H]
    d_wih = w_gru[2 * H:3 * H]
    f_whh = w_gru[3 * H:4 * H]
    b_whh = w_gru[4 * H:5 * H]
    d_whh = w_gru[5 * H:6 * H]
    wc = wc_ref[...].astype(jnp.float32)                    # (2H, H)
    wc_h = wc[:H]                                           # multiplies h_new
    wc_c = wc[H:]                                           # multiplies context
    wo = wo_ref[...].astype(jnp.float32)                    # (H, V)
    emb_tbl = emb_tbl_ref[...].astype(jnp.float32)          # (V, H)

    b_gru = b_gru_ref[...]                                  # (3, 4H) f32: [gi-folded(3H) | b_hn(H)]
    f_b_gi, f_b_hn = b_gru[0:1, :3 * H], b_gru[0:1, 3 * H:]
    b_b_gi, b_b_hn = b_gru[1:2, :3 * H], b_gru[1:2, 3 * H:]
    d_b_gi, d_b_hn = b_gru[2:3, :3 * H], b_gru[2:3, 3 * H:]
    b_out = b_out_ref[...]                                  # (2, V) f32
    bc = b_out[0:1, :H]                                     # (1, H)
    bo = b_out[1:2, :]                                      # (1, V)

    h0 = jnp.zeros((1, H), jnp.float32)

    # ---------------- encoder: hoisted input->hidden projections (biases folded) ----------------
    # Independent scratch buffers => no WAR dependency between the two direction chains.
    gi_f_ref[...] = jnp.dot(emb, f_wih, preferred_element_type=jnp.float32) + f_b_gi
    gi_b_ref[...] = jnp.dot(emb, b_wih, preferred_element_type=jnp.float32) + b_b_gi

    # ---------------- encoder: forward direction ----------------
    def fwd_body(t, h):
        gi = gi_f_ref[pl.ds(t, 1), :]                       # (1, 3H)
        gh = jnp.dot(h, f_whh, preferred_element_type=jnp.float32)
        h_new = _gru_gates(gi, gh, h, f_b_hn, H)
        enc_f_ref[pl.ds(t, 1), :] = h_new
        return h_new

    h_fwd_final = lax.fori_loop(0, S, fwd_body, h0, unroll=True)

    # ---------------- encoder: backward direction (data-independent of forward) ----------------
    def bwd_body(i, h):
        t = S - 1 - i
        gi = gi_b_ref[pl.ds(t, 1), :]
        gh = jnp.dot(h, b_whh, preferred_element_type=jnp.float32)
        h_new = _gru_gates(gi, gh, h, b_b_hn, H)
        enc_b_ref[pl.ds(t, 1), :] = h_new
        return h_new

    lax.fori_loop(0, S, bwd_body, h0, unroll=True)
    # TODO(synk): at S=8 a cross-TensorCore split of fwd/bwd is not worth the sync cost;
    # revisit only for very long sequences.

    # Tutorial semantics: directional outputs are summed.
    enc = enc_f_ref[...] + enc_b_ref[...]                   # (S, H)
    enc_t = enc.T                                           # (H, S) hoisted once for MXU attention

    # ---------------- greedy decode loop ----------------
    ids_v = lax.broadcasted_iota(jnp.int32, (1, V), 1)
    pos_m = lax.broadcasted_iota(jnp.int32, (1, max_length), 1)
    x0 = emb_tbl[SOS_token:SOS_token + 1, :]                # embedded SOS token, (1, H)
    tok0 = jnp.zeros((1, max_length), jnp.int32)
    sc0 = jnp.zeros((1, max_length), jnp.float32)

    def dec_body(step, carry):
        h, x, tok_acc, sc_acc = carry

        # GRU cell (decoder input depends on previous step -> cannot be hoisted)
        gi = jnp.dot(x, d_wih, preferred_element_type=jnp.float32) + d_b_gi
        gh = jnp.dot(h, d_whh, preferred_element_type=jnp.float32)
        h_new = _gru_gates(gi, gh, h, d_b_hn, H)

        # Luong "dot" attention over encoder outputs (both contractions on the MXU)
        energies = jnp.dot(h_new, enc_t, preferred_element_type=jnp.float32)   # (1, S)
        m = jnp.max(energies, axis=1, keepdims=True)
        e = jnp.exp(energies - m)
        attn = e * pl.reciprocal(jnp.sum(e, axis=1, keepdims=True), approx=True)
        context = jnp.dot(attn, enc, preferred_element_type=jnp.float32)       # (1, H)

        # concat -> tanh(Linear(2H->H)) as two accumulated dots (no lane concat),
        # then Linear(H->V)
        concat_out = jnp.tanh(
            jnp.dot(h_new, wc_h, preferred_element_type=jnp.float32)
            + jnp.dot(context, wc_c, preferred_element_type=jnp.float32) + bc)
        logits = jnp.dot(concat_out, wo, preferred_element_type=jnp.float32) + bo  # (1, V)

        # torch.max(softmax(logits), dim=1): argmax on logits (monotone),
        # score = max prob = 1 / sum(exp(logits - max_logit)).
        m2 = jnp.max(logits, axis=1, keepdims=True)
        denom = jnp.sum(jnp.exp(logits - m2), axis=1, keepdims=True)
        score = pl.reciprocal(denom, approx=True)                               # (1, 1)
        tok = jnp.min(jnp.where(logits == m2, ids_v, V),
                      axis=1, keepdims=True)                                    # (1, 1) first argmax

        # Lane-dense accumulation of outputs; stored once after the loop.
        sel = pos_m == step
        tok_acc = jnp.where(sel, tok, tok_acc)
        sc_acc = jnp.where(sel, score, sc_acc)

        # In-kernel embedding lookup of the chosen token (one-hot matmul, no HBM hop).
        onehot = (ids_v == tok).astype(jnp.float32)                             # (1, V)
        x_next = jnp.dot(onehot, emb_tbl, preferred_element_type=jnp.float32)   # (1, H)
        return (h_new, x_next, tok_acc, sc_acc)

    _, _, tok_acc, sc_acc = lax.fori_loop(
        0, max_length, dec_body, (h_fwd_final, x0, tok0, sc0), unroll=True)

    tok_ref[...] = tok_acc
    score_ref[...] = sc_acc


# -----------------------------------------------------------------------------
# Wrapper (single pallas_call, all operands VMEM-resident)
# -----------------------------------------------------------------------------

_VMEM = pl.BlockSpec(memory_space=pltpu.MemorySpace.VMEM)


def greedy_search_decode(input_seq, input_length, max_length, p):
    """Semantics of GreedySearchDecoder.forward for batch=1, n_layers=1."""
    # TODO(synk): pack_padded_sequence / input_length masking for padded batches is not
    # modeled (batch=1, full-length sequence); input_length is unused here.
    del input_length
    S = input_seq.shape[0]
    H = p["emb_tbl"].shape[1]

    tokens_in = input_seq[:, 0]                                  # (S,)
    emb_seq = p["emb_tbl"][tokens_in].astype(jnp.float32)        # one XLA gather for the sequence

    tok, score = pl.pallas_call(
        _greedy_search_kernel,
        out_shape=(
            jax.ShapeDtypeStruct((1, max_length), jnp.int32),    # all_tokens (lane-dense)
            jax.ShapeDtypeStruct((1, max_length), jnp.float32),  # all_scores (lane-dense)
        ),
        in_specs=[_VMEM] * 7,
        out_specs=(_VMEM, _VMEM),
        scratch_shapes=[
            pltpu.VMEM((S, 3 * H), jnp.float32),   # fwd hoisted input->hidden projections
            pltpu.VMEM((S, 3 * H), jnp.float32),   # bwd hoisted input->hidden projections
            pltpu.VMEM((S, H), jnp.float32),       # fwd encoder outputs
            pltpu.VMEM((S, H), jnp.float32),       # bwd encoder outputs
        ],
    )(emb_seq, p["emb_tbl"], p["w_gru"], p["wc_t"], p["wo_t"], p["b_gru"], p["b_out"])

    return tok[0], score[0]


# -----------------------------------------------------------------------------
# Deterministic parameter construction (packed operands) + demo
# -----------------------------------------------------------------------------

def make_params(key, vocab, hidden):
    ks = jax.random.split(key, 16)
    s = 0.1
    H = hidden

    def rn(k, shape):
        return jax.random.normal(k, shape, dtype=jnp.float32) * s

    def gru_bias_row(bih, bhh):
        # Row layout: [b_ir+b_hr | b_iz+b_hz | b_in] (folded into gi) then b_hn (kept separate
        # because it is multiplied by the reset gate).  Shape (4H,).
        b_gi = jnp.concatenate([bih[0, :2 * H] + bhh[0, :2 * H], bih[0, 2 * H:]], axis=0)
        return jnp.concatenate([b_gi, bhh[0, 2 * H:]], axis=0)

    emb = rn(ks[0], (vocab, hidden))

    # encoder forward / backward / decoder GRUs (input size == hidden since emb dim == hidden)
    f_wih, f_whh = rn(ks[1], (3 * H, H)), rn(ks[2], (3 * H, H))
    f_bih, f_bhh = rn(ks[3], (1, 3 * H)), rn(ks[4], (1, 3 * H))
    b_wih, b_whh = rn(ks[5], (3 * H, H)), rn(ks[6], (3 * H, H))
    b_bih, b_bhh = rn(ks[7], (1, 3 * H)), rn(ks[8], (1, 3 * H))
    d_wih, d_whh = rn(ks[9], (3 * H, H)), rn(ks[10], (3 * H, H))
    d_bih, d_bhh = rn(ks[11], (1, 3 * H)), rn(ks[12], (1, 3 * H))

    # concat Linear(2H -> H) and out Linear(H -> V)
    wc, bc = rn(ks[13], (H, 2 * H)), rn(ks[14], (1, H))
    wo, bo = rn(ks[15], (vocab, H)), jnp.zeros((1, vocab), jnp.float32)

    p = {}
    p["emb_tbl"] = emb.astype(jnp.bfloat16)                               # (V, H) bf16
    # All six GRU weight matrices, pre-transposed, stacked on rows -> ONE operand / ONE DMA.
    p["w_gru"] = jnp.concatenate(
        [f_wih.T, b_wih.T, d_wih.T, f_whh.T, b_whh.T, d_whh.T], axis=0
    ).astype(jnp.bfloat16)                                                # (6H, 3H) bf16
    p["wc_t"] = wc.T.astype(jnp.bfloat16)                                 # (2H, H) bf16
    p["wo_t"] = wo.T.astype(jnp.bfloat16)                                 # (H, V) bf16
    p["b_gru"] = jnp.stack(
        [gru_bias_row(f_bih, f_bhh), gru_bias_row(b_bih, b_bhh), gru_bias_row(d_bih, d_bhh)],
        axis=0)                                                           # (3, 4H) f32
    bc_row = jnp.concatenate([bc[0], jnp.zeros((vocab - H,), jnp.float32)], axis=0)
    p["b_out"] = jnp.stack([bc_row, bo[0]], axis=0)                       # (2, V) f32
    return p


if __name__ == "__main__":
    VOCAB = 128
    HIDDEN = 32
    SEQ = 8
    MAX_LENGTH = 6

    key = jax.random.PRNGKey(0)
    k_param, k_seq = jax.random.split(key)
    params = make_params(k_param, VOCAB, HIDDEN)

    input_seq = jax.random.randint(k_seq, (SEQ, 1), 3, VOCAB, dtype=jnp.int32)  # (S, 1) time-major
    input_length = jnp.array([SEQ], dtype=jnp.int32)

    all_tokens, all_scores = greedy_search_decode(input_seq, input_length, MAX_LENGTH, params)
    jax.block_until_ready((all_tokens, all_scores))

    assert all_tokens.shape == (MAX_LENGTH,) and all_tokens.dtype == jnp.int32
    assert all_scores.shape == (MAX_LENGTH,) and all_scores.dtype == jnp.float32
    assert bool(jnp.all(all_tokens >= 0)) and bool(jnp.all(all_tokens < VOCAB))
    assert bool(jnp.all(all_scores > 0.0)) and bool(jnp.all(all_scores <= 1.0 + 1e-2))
    print("KERNEL_OK")
</pallas_src>

<mosaic_0001>
module attributes {stable_mosaic.version = 11 : i64} {
  func.func @_greedy_search_kernel(%arg0: memref<8x32xf32, #tpu.memory_space<vmem>>, %arg1: memref<128x32xbf16, #tpu.memory_space<vmem>>, %arg2: memref<192x96xbf16, #tpu.memory_space<vmem>>, %arg3: memref<64x32xbf16, #tpu.memory_space<vmem>>, %arg4: memref<32x128xbf16, #tpu.memory_space<vmem>>, %arg5: memref<3x128xf32, #tpu.memory_space<vmem>>, %arg6: memref<2x128xf32, #tpu.memory_space<vmem>>, %arg7: memref<1x6xi32, #tpu.memory_space<vmem>>, %arg8: memref<1x6xf32, #tpu.memory_space<vmem>>, %arg9: memref<8x96xf32, #tpu.memory_space<vmem>>, %arg10: memref<8x96xf32, #tpu.memory_space<vmem>>, %arg11: memref<8x32xf32, #tpu.memory_space<vmem>>, %arg12: memref<8x32xf32, #tpu.memory_space<vmem>>) attributes {dimension_semantics = [], scalar_prefetch = 0 : i64, scratch_operands = 4 : i64, tpu.core_type = #tpu.core_type<tc>} {
    %c0 = arith.constant 0 : index
    %c0_0 = arith.constant 0 : index
    %0 = vector.load %arg0[%c0, %c0_0] : memref<8x32xf32, #tpu.memory_space<vmem>>, vector<8x32xf32>
    %c0_1 = arith.constant 0 : index
    %c0_2 = arith.constant 0 : index
    %1 = vector.load %arg2[%c0_1, %c0_2] : memref<192x96xbf16, #tpu.memory_space<vmem>>, vector<192x96xbf16>
    %2 = arith.extf %1 : vector<192x96xbf16> to vector<192x96xf32>
    %3 = vector.extract_strided_slice %2 {offsets = [0, 0], sizes = [32, 96], strides = [1, 1]} : vector<192x96xf32> to vector<32x96xf32>
    %4 = vector.extract_strided_slice %2 {offsets = [32, 0], sizes = [32, 96], strides = [1, 1]} : vector<192x96xf32> to vector<32x96xf32>
    %5 = vector.extract_strided_slice %2 {offsets = [64, 0], sizes = [32, 96], strides = [1, 1]} : vector<192x96xf32> to vector<32x96xf32>
    %6 = vector.extract_strided_slice %2 {offsets = [96, 0], sizes = [32, 96], strides = [1, 1]} : vector<192x96xf32> to vector<32x96xf32>
    %7 = vector.extract_strided_slice %2 {offsets = [128, 0], sizes = [32, 96], strides = [1, 1]} : vector<192x96xf32> to vector<32x96xf32>
    %8 = vector.extract_strided_slice %2 {offsets = [160, 0], sizes = [32, 96], strides = [1, 1]} : vector<192x96xf32> to vector<32x96xf32>
    %c0_3 = arith.constant 0 : index
    %c0_4 = arith.constant 0 : index
    %9 = vector.load %arg3[%c0_3, %c0_4] : memref<64x32xbf16, #tpu.memory_space<vmem>>, vector<64x32xbf16>
    %10 = arith.extf %9 : vector<64x32xbf16> to vector<64x32xf32>
    %11 = vector.extract_strided_slice %10 {offsets = [0, 0], sizes = [32, 32], strides = [1, 1]} : vector<64x32xf32> to vector<32x32xf32>
    %12 = vector.extract_strided_slice %10 {offsets = [32, 0], sizes = [32, 32], strides = [1, 1]} : vector<64x32xf32> to vector<32x32xf32>
    %c0_5 = arith.constant 0 : index
    %c0_6 = arith.constant 0 : index
    %13 = vector.load %arg4[%c0_5, %c0_6] : memref<32x128xbf16, #tpu.memory_space<vmem>>, vector<32x128xbf16>
    %14 = arith.extf %13 : vector<32x128xbf16> to vector<32x128xf32>
    %c0_7 = arith.constant 0 : index
    %c0_8 = arith.constant 0 : index
    %15 = vector.load %arg1[%c0_7, %c0_8] : memref<128x32xbf16, #tpu.memory_space<vmem>>, vector<128x32xbf16>
    %16 = arith.extf %15 : vector<128x32xbf16> to vector<128x32xf32>
    %c0_9 = arith.constant 0 : index
    %c0_10 = arith.constant 0 : index
    %17 = vector.load %arg5[%c0_9, %c0_10] : memref<3x128xf32, #tpu.memory_space<vmem>>, vector<3x128xf32>
    %18 = vector.extract_strided_slice %17 {offsets = [0, 0], sizes = [1, 96], strides = [1, 1]} : vector<3x128xf32> to vector<1x96xf32>
    %19 = vector.extract_strided_slice %17 {offsets = [0, 96], sizes = [1, 32], strides = [1, 1]} : vector<3x128xf32> to vector<1x32xf32>
    %20 = vector.extract_strided_slice %17 {offsets = [1, 0], sizes = [1, 96], strides = [1, 1]} : vector<3x128xf32> to vector<1x96xf32>
    %21 = vector.extract_strided_slice %17 {offsets = [1, 96], sizes = [1, 32], strides = [1, 1]} : vector<3x128xf32> to vector<1x32xf32>
    %22 = vector.extract_strided_slice %17 {offsets = [2, 0], sizes = [1, 96], strides = [1, 1]} : vector<3x128xf32> to vector<1x96xf32>
    %23 = vector.extract_strided_slice %17 {offsets = [2, 96], sizes = [1, 32], strides = [1, 1]} : vector<3x128xf32> to vector<1x32xf32>
    %c0_11 = arith.constant 0 : index
    %c0_12 = arith.constant 0 : index
    %24 = vector.load %arg6[%c0_11, %c0_12] : memref<2x128xf32, #tpu.memory_space<vmem>>, vector<2x128xf32>
    %25 = vector.extract_strided_slice %24 {offsets = [0, 0], sizes = [1, 32], strides = [1, 1]} : vector<2x128xf32> to vector<1x32xf32>
    %26 = vector.extract_strided_slice %24 {offsets = [1, 0], sizes = [1, 128], strides = [1, 1]} : vector<2x128xf32> to vector<1x128xf32>
    %cst = arith.constant 0.000000e+00 : f32
    %27 = vector.broadcast %cst : f32 to vector<1x32xf32>
    %cst_13 = arith.constant dense<0.000000e+00> : vector<8x96xf32>
    %28 = tpu.matmul %0, %3, %cst_13 {dimension_numbers = #tpu.dot_dimension_numbers<[1], [0], [0], [1], [0, 0, 1, 1], [], []>} : vector<8x32xf32>, vector<32x96xf32>, vector<8x96xf32> -> vector<8x96xf32>
    %29 = vector.broadcast %18 : vector<1x96xf32> to vector<8x96xf32>
    %30 = arith.addf %28, %29 : vector<8x96xf32>
    %c0_14 = arith.constant 0 : index
    %c0_15 = arith.constant 0 : index
    %31 = vector.load %arg9[%c0_14, %c0_15] : memref<8x96xf32, #tpu.memory_space<vmem>>, vector<8x96xf32>
    tpu.vector_store %arg9[%c0_14, %c0_15], %30 {strides = array<i32>} : memref<8x96xf32, #tpu.memory_space<vmem>>, vector<8x96xf32>,
    %cst_16 = arith.constant dense<0.000000e+00> : vector<8x96xf32>
    %32 = tpu.matmul %0, %4, %cst_16 {dimension_numbers = #tpu.dot_dimension_numbers<[1], [0], [0], [1], [0, 0, 1, 1], [], []>} : vector<8x32xf32>, vector<32x96xf32>, vector<8x96xf32> -> vector<8x96xf32>
    %33 = vector.broadcast %20 : vector<1x96xf32> to vector<8x96xf32>
    %34 = arith.addf %32, %33 : vector<8x96xf32>
    %c0_17 = arith.constant 0 : index
    %c0_18 = arith.constant 0 : index
    %35 = vector.load %arg10[%c0_17, %c0_18] : memref<8x96xf32, #tpu.memory_space<vmem>>, vector<8x96xf32>
    tpu.vector_store %arg10[%c0_17, %c0_18], %34 {strides = array<i32>} : memref<8x96xf32, #tpu.memory_space<vmem>>, vector<8x96xf32>,
    %c0_i32 = arith.constant 0 : i32
    %36 = arith.index_cast %c0_i32 : i32 to index
    %c0_19 = arith.constant 0 : index
    %37 = vector.load %arg9[%36, %c0_19] : memref<8x96xf32, #tpu.memory_space<vmem>>, vector<1x96xf32>
    %cst_20 = arith.constant dense<0.000000e+00> : vector<1x96xf32>
    %38 = tpu.matmul %27, %6, %cst_20 {dimension_numbers = #tpu.dot_dimension_numbers<[1], [0], [0], [1], [0, 0, 1, 1], [], []>} : vector<1x32xf32>, vector<32x96xf32>, vector<1x96xf32> -> vector<1x96xf32>
    %39 = vector.extract_strided_slice %37 {offsets = [0, 0], sizes = [1, 64], strides = [1, 1]} : vector<1x96xf32> to vector<1x64xf32>
    %40 = vector.extract_strided_slice %38 {offsets = [0, 0], sizes = [1, 64], strides = [1, 1]} : vector<1x96xf32> to vector<1x64xf32>
    %41 = arith.addf %39, %40 : vector<1x64xf32>
    %42 = arith.negf %41 : vector<1x64xf32>
    %43 = math.exp %42 : vector<1x64xf32>
    %cst_21 = arith.constant 1.000000e+00 : f32
    %44 = vector.broadcast %cst_21 : f32 to vector<1x64xf32>
    %45 = arith.addf %44, %43 : vector<1x64xf32>
    %46 = arith.divf %44, %45 : vector<1x64xf32>
    %47 = vector.extract_strided_slice %46 {offsets = [0, 0], sizes = [1, 32], strides = [1, 1]} : vector<1x64xf32> to vector<1x32xf32>
    %48 = vector.extract_strided_slice %46 {offsets = [0, 32], sizes = [1, 32], strides = [1, 1]} : vector<1x64xf32> to vector<1x32xf32>
    %49 = vector.extract_strided_slice %37 {offsets = [0, 64], sizes = [1, 32], strides = [1, 1]} : vector<1x96xf32> to vector<1x32xf32>
    %50 = vector.extract_strided_slice %38 {offsets = [0, 64], sizes = [1, 32], strides = [1, 1]} : vector<1x96xf32> to vector<1x32xf32>
    %51 = arith.addf %50, %19 : vector<1x32xf32>
    %52 = arith.mulf %47, %51 : vector<1x32xf32>
    %53 = arith.addf %49, %52 : vector<1x32xf32>
    %54 = math.tanh %53 : vector<1x32xf32>
    %cst_22 = arith.constant 1.000000e+00 : f32
    %55 = vector.broadcast %cst_22 : f32 to vector<1x32xf32>
    %56 = arith.subf %55, %48 : vector<1x32xf32>
    %57 = arith.mulf %56, %54 : vector<1x32xf32>
    %58 = arith.mulf %48, %27 : vector<1x32xf32>
    %59 = arith.addf %57, %58 : vector<1x32xf32>
    %60 = arith.index_cast %c0_i32 : i32 to index
    %c0_23 = arith.constant 0 : index
    %61 = vector.load %arg11[%60, %c0_23] : memref<8x32xf32, #tpu.memory_space<vmem>>, vector<1x32xf32>
    tpu.vector_store %arg11[%60, %c0_23], %59 {strides = array<i32>} : memref<8x32xf32, #tpu.memory_space<vmem>>, vector<1x32xf32>,
    %c1_i32 = arith.constant 1 : i32
    %62 = arith.index_cast %c1_i32 : i32 to index
    %c0_24 = arith.constant 0 : index
    %63 = vector.load %arg9[%62, %c0_24] : memref<8x96xf32, #tpu.memory_space<vmem>>, vector<1x96xf32>
    %cst_25 = arith.constant dense<0.000000e+00> : vector<1x96xf32>
    %64 = tpu.matmul %59, %6, %cst_25 {dimension_numbers = #tpu.dot_dimension_numbers<[1], [0], [0], [1], [0, 0, 1, 1], [], []>} : vector<1x32xf32>, vector<32x96xf32>, vector<1x96xf32> -> vector<1x96xf32>
    %65 = vector.extract_strided_slice %63 {offsets = [0, 0], sizes = [1, 64], strides = [1, 1]} : vector<1x96xf32> to vector<1x64xf32>
    %66 = vector.extract_strided_slice %64 {offsets = [0, 0], sizes = [1, 64], strides = [1, 1]} : vector<1x96xf32> to vector<1x64xf32>
    %67 = arith.addf %65, %66 : vector<1x64xf32>
    %68 = arith.negf %67 : vector<1x64xf32>
    %69 = math.exp %68 : vector<1x64xf32>
    %cst_26 = arith.constant 1.000000e+00 : f32
    %70 = vector.broadcast %cst_26 : f32 to vector<1x64xf32>
    %71 = arith.addf %70, %69 : vector<1x64xf32>
    %72 = arith.divf %70, %71 : vector<1x64xf32>
    %73 = vector.extract_strided_slice %72 {offsets = [0, 0], sizes = [1, 32], strides = [1, 1]} : vector<1x64xf32> to vector<1x32xf32>
    %74 = vector.extract_strided_slice %72 {offsets = [0, 32], sizes = [1, 32], strides = [1, 1]} : vector<1x64xf32> to vector<1x32xf32>
    %75 = vector.extract_strided_slice %63 {offsets = [0, 64], sizes = [1, 32], strides = [1, 1]} : vector<1x96xf32> to vector<1x32xf32>
    %76 = vector.extract_strided_slice %64 {offsets = [0, 64], sizes = [1, 32], strides = [1, 1]} : vector<1x96xf32> to vector<1x32xf32>
    %77 = arith.addf %76, %19 : vector<1x32xf32>
    %78 = arith.mulf %73, %77 : vector<1x32xf32>
    %79 = arith.addf %75, %78 : vector<1x32xf32>
    %80 = math.tanh %79 : vector<1x32xf32>
    %cst_27 = arith.constant 1.000000e+00 : f32
    %81 = vector.broadcast %cst_27 : f32 to vector<1x32xf32>
    %82 = arith.subf %81, %74 : vector<1x32xf32>
    %83 = arith.mulf %82, %80 : vector<1x32xf32>
    %84 = arith.mulf %74, %59 : vector<1x32xf32>
    %85 = arith.addf %83, %84 : vector<1x32xf32>
    %86 = arith.index_cast %c1_i32 : i32 to index
    %c0_28 = arith.constant 0 : index
    %87 = vector.load %arg11[%86, %c0_28] : memref<8x32xf32, #tpu.memory_space<vmem>>, vector<1x32xf32>
    tpu.vector_store %arg11[%86, %c0_28], %85 {strides = array<i32>} : memref<8x32xf32, #tpu.memory_space<vmem>>, vector<1x32xf32>,
    %c2_i32 = arith.constant 2 : i32
    %88 = arith.index_cast %c2_i32 : i32 to index
    %c0_29 = arith.constant 0 : index
    %89 = vector.load %arg9[%88, %c0_29] : memref<8x96xf32, #tpu.memory_space<vmem>>, vector<1x96xf32>
    %cst_30 = arith.constant dense<0.000000e+00> : vector<1x96xf32>
    %90 = tpu.matmul %85, %6, %cst_30 {dimension_numbers = #tpu.dot_dimension_numbers<[1], [0], [0], [1], [0, 0, 1, 1], [], []>} : vector<1x32xf32>, vector<32x96xf32>, vector<1x96xf32> -> vector<1x96xf32>
    %91 = vector.extract_strided_slice %89 {offsets = [0, 0], sizes = [1, 64], strides = [1, 1]} : vector<1x96xf32> to vector<1x64xf32>
    %92 = vector.extract_strided_slice %90 {offsets = [0, 0], sizes = [1, 64], strides = [1, 1]} : vector<1x96xf32> to vector<1x64xf32>
    %93 = arith.addf %91, %92 : vector<1x64xf32>
    %94 = arith.negf %93 : vector<1x64xf32>
    %95 = math.exp %94 : vector<1x64xf32>
    %cst_31 = arith.constant 1.000000e+00 : f32
    %96 = vector.broadcast %cst_31 : f32 to vector<1x64xf32>
    %97 = arith.addf %96, %95 : vector<1x64xf32>
    %98 = arith.divf %96, %97 : vector<1x64xf32>
    %99 = vector.extract_strided_slice %98 {offsets = [0, 0], sizes = [1, 32], strides = [1, 1]} : vector<1x64xf32> to vector<1x32xf32>
    %100 = vector.extract_strided_slice %98 {offsets = [0, 32], sizes = [1, 32], strides = [1, 1]} : vector<1x64xf32> to vector<1x32xf32>
    %101 = vector.extract_strided_slice %89 {offsets = [0, 64], sizes = [1, 32], strides = [1, 1]} : vector<1x96xf32> to vector<1x32xf32>
    %102 = vector.extract_strided_slice %90 {offsets = [0, 64], sizes = [1, 32], strides = [1, 1]} : vector<1x96xf32> to vector<1x32xf32>
    %103 = arith.addf %102, %19 : vector<1x32xf32>
    %104 = arith.mulf %99, %103 : vector<1x32xf32>
    %105 = arith.addf %101, %104 : vector<1x32xf32>
    %106 = math.tanh %105 : vector<1x32xf32>
    %cst_32 = arith.constant 1.000000e+00 : f32
    %107 = vector.broadcast %cst_32 : f32 to vector<1x32xf32>
    %108 = arith.subf %107, %100 : vector<1x32xf32>
    %109 = arith.mulf %108, %106 : vector<1x32xf32>
    %110 = arith.mulf %100, %85 : vector<1x32xf32>
    %111 = arith.addf %109, %110 : vector<1x32xf32>
    %112 = arith.index_cast %c2_i32 : i32 to index
    %c0_33 = arith.constant 0 : index
    %113 = vector.load %arg11[%112, %c0_33] : memref<8x32xf32, #tpu.memory_space<vmem>>, vector<1x32xf32>
    tpu.vector_store %arg11[%112, %c0_33], %111 {strides = array<i32>} : memref<8x32xf32, #tpu.memory_space<vmem>>, vector<1x32xf32>,
    %c3_i32 = arith.constant 3 : i32
    %114 = arith.index_cast %c3_i32 : i32 to index
    %c0_34 = arith.constant 0 : index
    %115 = vector.load %arg9[%114, %c0_34] : memref<8x96xf32, #tpu.memory_space<vmem>>, vector<1x96xf32>
    %cst_35 = arith.constant dense<0.000000e+00> : vector<1x96xf32>
    %116 = tpu.matmul %111, %6, %cst_35 {dimension_numbers = #tpu.dot_dimension_numbers<[1], [0], [0], [1], [0, 0, 1, 1], [], []>} : vector<1x32xf32>, vector<32x96xf32>, vector<1x96xf32> -> vector<1x96xf32>
    %117 = vector.extract_strided_slice %115 {offsets = [0, 0], sizes = [1, 64], strides = [1, 1]} : vector<1x96xf32> to vector<1x64xf32>
    %118 = vector.extract_strided_slice %116 {offsets = [0, 0], sizes = [1, 64], strides = [1, 1]} : vector<1x96xf32> to vector<1x64xf32>
    %119 = arith.addf %117, %118 : vector<1x64xf32>
    %120 = arith.negf %119 : vector<1x64xf32>
    %121 = math.exp %120 : vector<1x64xf32>
    %cst_36 = arith.constant 1.000000e+00 : f32
    %122 = vector.broadcast %cst_36 : f32 to vector<1x64xf32>
    %123 = arith.addf %122, %121 : vector<1x64xf32>
    %124 = arith.divf %122, %123 : vector<1x64xf32>
    %125 = vector.extract_strided_slice %124 {offsets = [0, 0], sizes = [1, 32], strides = [1, 1]} : vector<1x64xf32> to vector<1x32xf32>
    %126 = vector.extract_strided_slice %124 {offsets = [0, 32], sizes = [1, 32], strides = [1, 1]} : vector<1x64xf32> to vector<1x32xf32>
    %127 = vector.extract_strided_slice %115 {offsets = [0, 64], sizes = [1, 32], strides = [1, 1]} : vector<1x96xf32> to vector<1x32xf32>
    %128 = vector.extract_strided_slice %116 {offsets = [0, 64], sizes = [1, 32], strides = [1, 1]} : vector<1x96xf32> to vector<1x32xf32>
    %129 = arith.addf %128, %19 : vector<1x32xf32>
    %130 = arith.mulf %125, %129 : vector<1x32xf32>
    %131 = arith.addf %127, %130 : vector<1x32xf32>
    %132 = math.tanh %131 : vector<1x32xf32>
    %cst_37 = arith.constant 1.000000e+00 : f32
    %133 = vector.broadcast %cst_37 : f32 to vector<1x32xf32>
    %134 = arith.subf %133, %126 : vector<1x32xf32>
    %135 = arith.mulf %134, %132 : vector<1x32xf32>
    %136 = arith.mulf %126, %111 : vector<1x32xf32>
    %137 = arith.addf %135, %136 : vector<1x32xf32>
    %138 = arith.index_cast %c3_i32 : i32 to index
    %c0_38 = arith.constant 0 : index
    %139 = vector.load %arg11[%138, %c0_38] : memref<8x32xf32, #tpu.memory_space<vmem>>, vector<1x32xf32>
    tpu.vector_store %arg11[%138, %c0_38], %137 {strides = array<i32>} : memref<8x32xf32, #tpu.memory_space<vmem>>, vector<1x32xf32>,
    %c4_i32 = arith.constant 4 : i32
    %140 = arith.index_cast %c4_i32 : i32 to index
    %c0_39 = arith.constant 0 : index
    %141 = vector.load %arg9[%140, %c0_39] : memref<8x96xf32, #tpu.memory_space<vmem>>, vector<1x96xf32>
    %cst_40 = arith.constant dense<0.000000e+00> : vector<1x96xf32>
    %142 = tpu.matmul %137, %6, %cst_40 {dimension_numbers = #tpu.dot_dimension_numbers<[1], [0], [0], [1], [0, 0, 1, 1], [], []>} : vector<1x32xf32>, vector<32x96xf32>, vector<1x96xf32> -> vector<1x96xf32>
    %143 = vector.extract_strided_slice %141 {offsets = [0, 0], sizes = [1, 64], strides = [1, 1]} : vector<1x96xf32> to vector<1x64xf32>
    %144 = vector.extract_strided_slice %142 {offsets = [0, 0], sizes = [1, 64], strides = [1, 1]} : vector<1x96xf32> to vector<1x64xf32>
    %145 = arith.addf %143, %144 : vector<1x64xf32>
    %146 = arith.negf %145 : vector<1x64xf32>
    %147 = math.exp %146 : vector<1x64xf32>
    %cst_41 = arith.constant 1.000000e+00 : f32
    %148 = vector.broadcast %cst_41 : f32 to vector<1x64xf32>
    %149 = arith.addf %148, %147 : vector<1x64xf32>
    %150 = arith.divf %148, %149 : vector<1x64xf32>
    %151 = vector.extract_strided_slice %150 {offsets = [0, 0], sizes = [1, 32], strides = [1, 1]} : vector<1x64xf32> to vector<1x32xf32>
    %152 = vector.extract_strided_slice %150 {offsets = [0, 32], sizes = [1, 32], strides = [1, 1]} : vector<1x64xf32> to vector<1x32xf32>
    %153 = vector.extract_strided_slice %141 {offsets = [0, 64], sizes = [1, 32], strides = [1, 1]} : vector<1x96xf32> to vector<1x32xf32>
    %154 = vector.extract_strided_slice %142 {offsets = [0, 64], sizes = [1, 32], strides = [1, 1]} : vector<1x96xf32> to vector<1x32xf32>
    %155 = arith.addf %154, %19 : vector<1x32xf32>
    %156 = arith.mulf %151, %155 : vector<1x32xf32>
    %157 = arith.addf %153, %156 : vector<1x32xf32>
    %158 = math.tanh %157 : vector<1x32xf32>
    %cst_42 = arith.constant 1.000000e+00 : f32
    %159 = vector.broadcast %cst_42 : f32 to vector<1x32xf32>
    %160 = arith.subf %159, %152 : vector<1x32xf32>
    %161 = arith.mulf %160, %158 : vector<1x32xf32>
    %162 = arith.mulf %152, %137 : vector<1x32xf32>
    %163 = arith.addf %161, %162 : vector<1x32xf32>
    %164 = arith.index_cast %c4_i32 : i32 to index
    %c0_43 = arith.constant 0 : index
    %165 = vector.load %arg11[%164, %c0_43] : memref<8x32xf32, #tpu.memory_space<vmem>>, vector<1x32xf32>
    tpu.vector_store %arg11[%164, %c0_43], %163 {strides = array<i32>} : memref<8x32xf32, #tpu.memory_space<vmem>>, vector<1x32xf32>,
    %c5_i32 = arith.constant 5 : i32
    %166 = arith.index_cast %c5_i32 : i32 to index
    %c0_44 = arith.constant 0 : index
    %167 = vector.load %arg9[%166, %c0_44] : memref<8x96xf32, #tpu.memory_space<vmem>>, vector<1x96xf32>
    %cst_45 = arith.constant dense<0.000000e+00> : vector<1x96xf32>
    %168 = tpu.matmul %163, %6, %cst_45 {dimension_numbers = #tpu.dot_dimension_numbers<[1], [0], [0], [1], [0, 0, 1, 1], [], []>} : vector<1x32xf32>, vector<32x96xf32>, vector<1x96xf32> -> vector<1x96xf32>
    %169 = vector.extract_strided_slice %167 {offsets = [0, 0], sizes = [1, 64], strides = [1, 1]} : vector<1x96xf32> to vector<1x64xf32>
    %170 = vector.extract_strided_slice %168 {offsets = [0, 0], sizes = [1, 64], strides = [1, 1]} : vector<1x96xf32> to vector<1x64xf32>
    %171 = arith.addf %169, %170 : vector<1x64xf32>
    %172 = arith.negf %171 : vector<1x64xf32>
    %173 = math.exp %172 : vector<1x64xf32>
    %cst_46 = arith.constant 1.000000e+00 : f32
    %174 = vector.broadcast %cst_46 : f32 to vector<1x64xf32>
    %175 = arith.addf %174, %173 : vector<1x64xf32>
    %176 = arith.divf %174, %175 : vector<1x64xf32>
    %177 = vector.extract_strided_slice %176 {offsets = [0, 0], sizes = [1, 32], strides = [1, 1]} : vector<1x64xf32> to vector<1x32xf32>
    %178 = vector.extract_strided_slice %176 {offsets = [0, 32], sizes = [1, 32], strides = [1, 1]} : vector<1x64xf32> to vector<1x32xf32>
    %179 = vector.extract_strided_slice %167 {offsets = [0, 64], sizes = [1, 32], strides = [1, 1]} : vector<1x96xf32> to vector<1x32xf32>
    %180 = vector.extract_strided_slice %168 {offsets = [0, 64], sizes = [1, 32], strides = [1, 1]} : vector<1x96xf32> to vector<1x32xf32>
    %181 = arith.addf %180, %19 : vector<1x32xf32>
    %182 = arith.mulf %177, %181 : vector<1x32xf32>
    %183 = arith.addf %179, %182 : vector<1x32xf32>
    %184 = math.tanh %183 : vector<1x32xf32>
    %cst_47 = arith.constant 1.000000e+00 : f32
    %185 = vector.broadcast %cst_47 : f32 to vector<1x32xf32>
    %186 = arith.subf %185, %178 : vector<1x32xf32>
    %187 = arith.mulf %186, %184 : vector<1x32xf32>
    %188 = arith.mulf %178, %163 : vector<1x32xf32>
    %189 = arith.addf %187, %188 : vector<1x32xf32>
    %190 = arith.index_cast %c5_i32 : i32 to index
    %c0_48 = arith.constant 0 : index
    %191 = vector.load %arg11[%190, %c0_48] : memref<8x32xf32, #tpu.memory_space<vmem>>, vector<1x32xf32>
    tpu.vector_store %arg11[%190, %c0_48], %189 {strides = array<i32>} : memref<8x32xf32, #tpu.memory_space<vmem>>, vector<1x32xf32>,
    %c6_i32 = arith.constant 6 : i32
    %192 = arith.index_cast %c6_i32 : i32 to index
    %c0_49 = arith.constant 0 : index
    %193 = vector.load %arg9[%192, %c0_49] : memref<8x96xf32, #tpu.memory_space<vmem>>, vector<1x96xf32>
    %cst_50 = arith.constant dense<0.000000e+00> : vector<1x96xf32>
    %194 = tpu.matmul %189, %6, %cst_50 {dimension_numbers = #tpu.dot_dimension_numbers<[1], [0], [0], [1], [0, 0, 1, 1], [], []>} : vector<1x32xf32>, vector<32x96xf32>, vector<1x96xf32> -> vector<1x96xf32>
    %195 = vector.extract_strided_slice %193 {offsets = [0, 0], sizes = [1, 64], strides = [1, 1]} : vector<1x96xf32> to vector<1x64xf32>
    %196 = vector.extract_strided_slice %194 {offsets = [0, 0], sizes = [1, 64], strides = [1, 1]} : vector<1x96xf32> to vector<1x64xf32>
    %197 = arith.addf %195, %196 : vector<1x64xf32>
    %198 = arith.negf %197 : vector<1x64xf32>
    %199 = math.exp %198 : vector<1x64xf32>
    %cst_51 = arith.constant 1.000000e+00 : f32
    %200 = vector.broadcast %cst_51 : f32 to vector<1x64xf32>
    %201 = arith.addf %200, %199 : vector<1x64xf32>
    %202 = arith.divf %200, %201 : vector<1x64xf32>
    %203 = vector.extract_strided_slice %202 {offsets = [0, 0], sizes = [1, 32], strides = [1, 1]} : vector<1x64xf32> to vector<1x32xf32>
    %204 = vector.extract_strided_slice %202 {offsets = [0, 32], sizes = [1, 32], strides = [1, 1]} : vector<1x64xf32> to vector<1x32xf32>
    %205 = vector.extract_strided_slice %193 {offsets = [0, 64], sizes = [1, 32], strides = [1, 1]} : vector<1x96xf32> to vector<1x32xf32>
    %206 = vector.extract_strided_slice %194 {offsets = [0, 64], sizes = [1, 32], strides = [1, 1]} : vector<1x96xf32> to vector<1x32xf32>
    %207 = arith.addf %206, %19 : vector<1x32xf32>
    %208 = arith.mulf %203, %207 : vector<1x32xf32>
    %209 = arith.addf %205, %208 : vector<1x32xf32>
    %210 = math.tanh %209 : vector<1x32xf32>
    %cst_52 = arith.constant 1.000000e+00 : f32
    %211 = vector.broadcast %cst_52 : f32 to vector<1x32xf32>
    %212 = arith.subf %211, %204 : vector<1x32xf32>
    %213 = arith.mulf %212, %210 : vector<1x32xf32>
    %214 = arith.mulf %204, %189 : vector<1x32xf32>
    %215 = arith.addf %213, %214 : vector<1x32xf32>
    %216 = arith.index_cast %c6_i32 : i32 to index
    %c0_53 = arith.constant 0 : index
    %217 = vector.load %arg11[%216, %c0_53] : memref<8x32xf32, #tpu.memory_space<vmem>>, vector<1x32xf32>
    tpu.vector_store %arg11[%216, %c0_53], %215 {strides = array<i32>} : memref<8x32xf32, #tpu.memory_space<vmem>>, vector<1x32xf32>,
    %c7_i32 = arith.constant 7 : i32
    %218 = arith.index_cast %c7_i32 : i32 to index
    %c0_54 = arith.constant 0 : index
    %219 = vector.load %arg9[%218, %c0_54] : memref<8x96xf32, #tpu.memory_space<vmem>>, vector<1x96xf32>
    %cst_55 = arith.constant dense<0.000000e+00> : vector<1x96xf32>
    %220 = tpu.matmul %215, %6, %cst_55 {dimension_numbers = #tpu.dot_dimension_numbers<[1], [0], [0], [1], [0, 0, 1, 1], [], []>} : vector<1x32xf32>, vector<32x96xf32>, vector<1x96xf32> -> vector<1x96xf32>
    %221 = vector.extract_strided_slice %219 {offsets = [0, 0], sizes = [1, 64], strides = [1, 1]} : vector<1x96xf32> to vector<1x64xf32>
    %222 = vector.extract_strided_slice %220 {offsets = [0, 0], sizes = [1, 64], strides = [1, 1]} : vector<1x96xf32> to vector<1x64xf32>
    %223 = arith.addf %221, %222 : vector<1x64xf32>
    %224 = arith.negf %223 : vector<1x64xf32>
    %225 = math.exp %224 : vector<1x64xf32>
    %cst_56 = arith.constant 1.000000e+00 : f32
    %226 = vector.broadcast %cst_56 : f32 to vector<1x64xf32>
    %227 = arith.addf %226, %225 : vector<1x64xf32>
    %228 = arith.divf %226, %227 : vector<1x64xf32>
    %229 = vector.extract_strided_slice %228 {offsets = [0, 0], sizes = [1, 32], strides = [1, 1]} : vector<1x64xf32> to vector<1x32xf32>
    %230 = vector.extract_strided_slice %228 {offsets = [0, 32], sizes = [1, 32], strides = [1, 1]} : vector<1x64xf32> to vector<1x32xf32>
    %231 = vector.extract_strided_slice %219 {offsets = [0, 64], sizes = [1, 32], strides = [1, 1]} : vector<1x96xf32> to vector<1x32xf32>
    %232 = vector.extract_strided_slice %220 {offsets = [0, 64], sizes = [1, 32], strides = [1, 1]} : vector<1x96xf32> to vector<1x32xf32>
    %233 = arith.addf %232, %19 : vector<1x32xf32>
    %234 = arith.mulf %229, %233 : vector<1x32xf32>
    %235 = arith.addf %231, %234 : vector<1x32xf32>
    %236 = math.tanh %235 : vector<1x32xf32>
    %cst_57 = arith.constant 1.000000e+00 : f32
    %237 = vector.broadcast %cst_57 : f32 to vector<1x32xf32>
    %238 = arith.subf %237, %230 : vector<1x32xf32>
    %239 = arith.mulf %238, %236 : vector<1x32xf32>
    %240 = arith.mulf %230, %215 : vector<1x32xf32>
    %241 = arith.addf %239, %240 : vector<1x32xf32>
    %242 = arith.index_cast %c7_i32 : i32 to index
    %c0_58 = arith.constant 0 : index
    %243 = vector.load %arg11[%242, %c0_58] : memref<8x32xf32, #tpu.memory_space<vmem>>, vector<1x32xf32>
    tpu.vector_store %arg11[%242, %c0_58], %241 {strides = array<i32>} : memref<8x32xf32, #tpu.memory_space<vmem>>, vector<1x32xf32>,
    %c8_i32 = arith.constant 8 : i32
    %c0_i32_59 = arith.constant 0 : i32
    %c7_i32_60 = arith.constant 7 : i32
    %244 = arith.subi %c7_i32_60, %c0_i32_59 : i32
    %245 = arith.index_cast %244 : i32 to index
    %c0_61 = arith.constant 0 : index
    %246 = vector.load %arg10[%245, %c0_61] : memref<8x96xf32, #tpu.memory_space<vmem>>, vector<1x96xf32>
    %cst_62 = arith.constant dense<0.000000e+00> : vector<1x96xf32>
    %247 = tpu.matmul %27, %7, %cst_62 {dimension_numbers = #tpu.dot_dimension_numbers<[1], [0], [0], [1], [0, 0, 1, 1], [], []>} : vector<1x32xf32>, vector<32x96xf32>, vector<1x96xf32> -> vector<1x96xf32>
    %248 = vector.extract_strided_slice %246 {offsets = [0, 0], sizes = [1, 64], strides = [1, 1]} : vector<1x96xf32> to vector<1x64xf32>
    %249 = vector.extract_strided_slice %247 {offsets = [0, 0], sizes = [1, 64], strides = [1, 1]} : vector<1x96xf32> to vector<1x64xf32>
    %250 = arith.addf %248, %249 : vector<1x64xf32>
    %251 = arith.negf %250 : vector<1x64xf32>
    %252 = math.exp %251 : vector<1x64xf32>
    %cst_63 = arith.constant 1.000000e+00 : f32
    %253 = vector.broadcast %cst_63 : f32 to vector<1x64xf32>
    %254 = arith.addf %253, %252 : vector<1x64xf32>
    %255 = arith.divf %253, %254 : vector<1x64xf32>
    %256 = vector.extract_strided_slice %255 {offsets = [0, 0], sizes = [1, 32], strides = [1, 1]} : vector<1x64xf32> to vector<1x32xf32>
    %257 = vector.extract_strided_slice %255 {offsets = [0, 32], sizes = [1, 32], strides = [1, 1]} : vector<1x64xf32> to vector<1x32xf32>
    %258 = vector.extract_strided_slice %246 {offsets = [0, 64], sizes = [1, 32], strides = [1, 1]} : vector<1x96xf32> to vector<1x32xf32>
    %259 = vector.extract_strided_slice %247 {offsets = [0, 64], sizes = [1, 32], strides = [1, 1]} : vector<1x96xf32> to vector<1x32xf32>
    %260 = arith.addf %259, %21 : vector<1x32xf32>
    %261 = arith.mulf %256, %260 : vector<1x32xf32>
    %262 = arith.addf %258, %261 : vector<1x32xf32>
    %263 = math.tanh %262 : vector<1x32xf32>
    %cst_64 = arith.constant 1.000000e+00 : f32
    %264 = vector.broadcast %cst_64 : f32 to vector<1x32xf32>
    %265 = arith.subf %264, %257 : vector<1x32xf32>
    %266 = arith.mulf %265, %263 : vector<1x32xf32>
    %267 = arith.mulf %257, %27 : vector<1x32xf32>
    %268 = arith.addf %266, %267 : vector<1x32xf32>
    %269 = arith.index_cast %244 : i32 to index
    %c0_65 = arith.constant 0 : index
    %270 = vector.load %arg12[%269, %c0_65] : memref<8x32xf32, #tpu.memory_space<vmem>>, vector<1x32xf32>
    tpu.vector_store %arg12[%269, %c0_65], %268 {strides = array<i32>} : memref<8x32xf32, #tpu.memory_space<vmem>>, vector<1x32xf32>,
    %c1_i32_66 = arith.constant 1 : i32
    %c7_i32_67 = arith.constant 7 : i32
    %271 = arith.subi %c7_i32_67, %c1_i32_66 : i32
    %272 = arith.index_cast %271 : i32 to index
    %c0_68 = arith.constant 0 : index
    %273 = vector.load %arg10[%272, %c0_68] : memref<8x96xf32, #tpu.memory_space<vmem>>, vector<1x96xf32>
    %cst_69 = arith.constant dense<0.000000e+00> : vector<1x96xf32>
    %274 = tpu.matmul %268, %7, %cst_69 {dimension_numbers = #tpu.dot_dimension_numbers<[1], [0], [0], [1], [0, 0, 1, 1], [], []>} : vector<1x32xf32>, vector<32x96xf32>, vector<1x96xf32> -> vector<1x96xf32>
    %275 = vector.extract_strided_slice %273 {offsets = [0, 0], sizes = [1, 64], strides = [1, 1]} : vector<1x96xf32> to vector<1x64xf32>
    %276 = vector.extract_strided_slice %274 {offsets = [0, 0], sizes = [1, 64], strides = [1, 1]} : vector<1x96xf32> to vector<1x64xf32>
    %277 = arith.addf %275, %276 : vector<1x64xf32>
    %278 = arith.negf %277 : vector<1x64xf32>
    %279 = math.exp %278 : vector<1x64xf32>
    %cst_70 = arith.constant 1.000000e+00 : f32
    %280 = vector.broadcast %cst_70 : f32 to vector<1x64xf32>
    %281 = arith.addf %280, %279 : vector<1x64xf32>
    %282 = arith.divf %280, %281 : vector<1x64xf32>
    %283 = vector.extract_strided_slice %282 {offsets = [0, 0], sizes = [1, 32], strides = [1, 1]} : vector<1x64xf32> to vector<1x32xf32>
    %284 = vector.extract_strided_slice %282 {offsets = [0, 32], sizes = [1, 32], strides = [1, 1]} : vector<1x64xf32> to vector<1x32xf32>
    %285 = vector.extract_strided_slice %273 {offsets = [0, 64], sizes = [1, 32], strides = [1, 1]} : vector<1x96xf32> to vector<1x32xf32>
    %286 = vector.extract_strided_slice %274 {offsets = [0, 64], sizes = [1, 32], strides = [1, 1]} : vector<1x96xf32> to vector<1x32xf32>
    %287 = arith.addf %286, %21 : vector<1x32xf32>
    %288 = arith.mulf %283, %287 : vector<1x32xf32>
    %289 = arith.addf %285, %288 : vector<1x32xf32>
    %290 = math.tanh %289 : vector<1x32xf32>
    %cst_71 = arith.constant 1.000000e+00 : f32
    %291 = vector.broadcast %cst_71 : f32 to vector<1x32xf32>
    %292 = arith.subf %291, %284 : vector<1x32xf32>
    %293 = arith.mulf %292, %290 : vector<1x32xf32>
    %294 = arith.mulf %284, %268 : vector<1x32xf32>
    %295 = arith.addf %293, %294 : vector<1x32xf32>
    %296 = arith.index_cast %271 : i32 to index
    %c0_72 = arith.constant 0 : index
    %297 = vector.load %arg12[%296, %c0_72] : memref<8x32xf32, #tpu.memory_space<vmem>>, vector<1x32xf32>
    tpu.vector_store %arg12[%296, %c0_72], %295 {strides = array<i32>} : memref<8x32xf32, #tpu.memory_space<vmem>>, vector<1x32xf32>,
    %c2_i32_73 = arith.constant 2 : i32
    %c7_i32_74 = arith.constant 7 : i32
    %298 = arith.subi %c7_i32_74, %c2_i32_73 : i32
    %299 = arith.index_cast %298 : i32 to index
    %c0_75 = arith.constant 0 : index
    %300 = vector.load %arg10[%299, %c0_75] : memref<8x96xf32, #tpu.memory_space<vmem>>, vector<1x96xf32>
    %cst_76 = arith.constant dense<0.000000e+00> : vector<1x96xf32>
    %301 = tpu.matmul %295, %7, %cst_76 {dimension_numbers = #tpu.dot_dimension_numbers<[1], [0], [0], [1], [0, 0, 1, 1], [], []>} : vector<1x32xf32>, vector<32x96xf32>, vector<1x96xf32> -> vector<1x96xf32>
    %302 = vector.extract_strided_slice %300 {offsets = [0, 0], sizes = [1, 64], strides = [1, 1]} : vector<1x96xf32> to vector<1x64xf32>
    %303 = vector.extract_strided_slice %301 {offsets = [0, 0], sizes = [1, 64], strides = [1, 1]} : vector<1x96xf32> to vector<1x64xf32>
    %304 = arith.addf %302, %303 : vector<1x64xf32>
    %305 = arith.negf %304 : vector<1x64xf32>
    %306 = math.exp %305 : vector<1x64xf32>
    %cst_77 = arith.constant 1.000000e+00 : f32
    %307 = vector.broadcast %cst_77 : f32 to vector<1x64xf32>
    %308 = arith.addf %307, %306 : vector<1x64xf32>
    %309 = arith.divf %307, %308 : vector<1x64xf32>
    %310 = vector.extract_strided_slice %309 {offsets = [0, 0], sizes = [1, 32], strides = [1, 1]} : vector<1x64xf32> to vector<1x32xf32>
    %311 = vector.extract_strided_slice %309 {offsets = [0, 32], sizes = [1, 32], strides = [1, 1]} : vector<1x64xf32> to vector<1x32xf32>
    %312 = vector.extract_strided_slice %300 {offsets = [0, 64], sizes = [1, 32], strides = [1, 1]} : vector<1x96xf32> to vector<1x32xf32>
    %313 = vector.extract_strided_slice %301 {offsets = [0, 64], sizes = [1, 32], strides = [1, 1]} : vector<1x96xf32> to vector<1x32xf32>
    %314 = arith.addf %313, %21 : vector<1x32xf32>
    %315 = arith.mulf %310, %314 : vector<1x32xf32>
    %316 = arith.addf %312, %315 : vector<1x32xf32>
    %317 = math.tanh %316 : vector<1x32xf32>
    %cst_78 = arith.constant 1.000000e+00 : f32
    %318 = vector.broadcast %cst_78 : f32 to vector<1x32xf32>
    %319 = arith.subf %318, %311 : vector<1x32xf32>
    %320 = arith.mulf %319, %317 : vector<1x32xf32>
    %321 = arith.mulf %311, %295 : vector<1x32xf32>
    %322 = arith.addf %320, %321 : vector<1x32xf32>
    %323 = arith.index_cast %298 : i32 to index
    %c0_79 = arith.constant 0 : index
    %324 = vector.load %arg12[%323, %c0_79] : memref<8x32xf32, #tpu.memory_space<vmem>>, vector<1x32xf32>
    tpu.vector_store %arg12[%323, %c0_79], %322 {strides = array<i32>} : memref<8x32xf32, #tpu.memory_space<vmem>>, vector<1x32xf32>,
    %c3_i32_80 = arith.constant 3 : i32
    %c7_i32_81 = arith.constant 7 : i32
    %325 = arith.subi %c7_i32_81, %c3_i32_80 : i32
    %326 = arith.index_cast %325 : i32 to index
    %c0_82 = arith.constant 0 : index
    %327 = vector.load %arg10[%326, %c0_82] : memref<8x96xf32, #tpu.memory_space<vmem>>, vector<1x96xf32>
    %cst_83 = arith.constant dense<0.000000e+00> : vector<1x96xf32>
    %328 = tpu.matmul %322, %7, %cst_83 {dimension_numbers = #tpu.dot_dimension_numbers<[1], [0], [0], [1], [0, 0, 1, 1], [], []>} : vector<1x32xf32>, vector<32x96xf32>, vector<1x96xf32> -> vector<1x96xf32>
    %329 = vector.extract_strided_slice %327 {offsets = [0, 0], sizes = [1, 64], strides = [1, 1]} : vector<1x96xf32> to vector<1x64xf32>
    %330 = vector.extract_strided_slice %328 {offsets = [0, 0], sizes = [1, 64], strides = [1, 1]} : vector<1x96xf32> to vector<1x64xf32>
    %331 = arith.addf %329, %330 : vector<1x64xf32>
    %332 = arith.negf %331 : vector<1x64xf32>
    %333 = math.exp %332 : vector<1x64xf32>
    %cst_84 = arith.constant 1.000000e+00 : f32
    %334 = vector.broadcast %cst_84 : f32 to vector<1x64xf32>
    %335 = arith.addf %334, %333 : vector<1x64xf32>
    %336 = arith.divf %334, %335 : vector<1x64xf32>
    %337 = vector.extract_strided_slice %336 {offsets = [0, 0], sizes = [1, 32], strides = [1, 1]} : vector<1x64xf32> to vector<1x32xf32>
    %338 = vector.extract_strided_slice %336 {offsets = [0, 32], sizes = [1, 32], strides = [1, 1]} : vector<1x64xf32> to vector<1x32xf32>
    %339 = vector.extract_strided_slice %327 {offsets = [0, 64], sizes = [1, 32], strides = [1, 1]} : vector<1x96xf32> to vector<1x32xf32>
    %340 = vector.extract_strided_slice %328 {offsets = [0, 64], sizes = [1, 32], strides = [1, 1]} : vector<1x96xf32> to vector<1x32xf32>
    %341 = arith.addf %340, %21 : vector<1x32xf32>
    %342 = arith.mulf %337, %341 : vector<1x32xf32>
    %343 = arith.addf %339, %342 : vector<1x32xf32>
    %344 = math.tanh %343 : vector<1x32xf32>
    %cst_85 = arith.constant 1.000000e+00 : f32
    %345 = vector.broadcast %cst_85 : f32 to vector<1x32xf32>
    %346 = arith.subf %345, %338 : vector<1x32xf32>
    %347 = arith.mulf %346, %344 : vector<1x32xf32>
    %348 = arith.mulf %338, %322 : vector<1x32xf32>
    %349 = arith.addf %347, %348 : vector<1x32xf32>
    %350 = arith.index_cast %325 : i32 to index
    %c0_86 = arith.constant 0 : index
    %351 = vector.load %arg12[%350, %c0_86] : memref<8x32xf32, #tpu.memory_space<vmem>>, vector<1x32xf32>
    tpu.vector_store %arg12[%350, %c0_86], %349 {strides = array<i32>} : memref<8x32xf32, #tpu.memory_space<vmem>>, vector<1x32xf32>,
    %c4_i32_87 = arith.constant 4 : i32
    %c7_i32_88 = arith.constant 7 : i32
    %352 = arith.subi %c7_i32_88, %c4_i32_87 : i32
    %353 = arith.index_cast %352 : i32 to index
    %c0_89 = arith.constant 0 : index
    %354 = vector.load %arg10[%353, %c0_89] : memref<8x96xf32, #tpu.memory_space<vmem>>, vector<1x96xf32>
    %cst_90 = arith.constant dense<0.000000e+00> : vector<1x96xf32>
    %355 = tpu.matmul %349, %7, %cst_90 {dimension_numbers = #tpu.dot_dimension_numbers<[1], [0], [0], [1], [0, 0, 1, 1], [], []>} : vector<1x32xf32>, vector<32x96xf32>, vector<1x96xf32> -> vector<1x96xf32>
    %356 = vector.extract_strided_slice %354 {offsets = [0, 0], sizes = [1, 64], strides = [1, 1]} : vector<1x96xf32> to vector<1x64xf32>
    %357 = vector.extract_strided_slice %355 {offsets = [0, 0], sizes = [1, 64], strides = [1, 1]} : vector<1x96xf32> to vector<1x64xf32>
    %358 = arith.addf %356, %357 : vector<1x64xf32>
    %359 = arith.negf %358 : vector<1x64xf32>
    %360 = math.exp %359 : vector<1x64xf32>
    %cst_91 = arith.constant 1.000000e+00 : f32
    %361 = vector.broadcast %cst_91 : f32 to vector<1x64xf32>
    %362 = arith.addf %361, %360 : vector<1x64xf32>
    %363 = arith.divf %361, %362 : vector<1x64xf32>
    %364 = vector.extract_strided_slice %363 {offsets = [0, 0], sizes = [1, 32], strides = [1, 1]} : vector<1x64xf32> to vector<1x32xf32>
    %365 = vector.extract_strided_slice %363 {offsets = [0, 32], sizes = [1, 32], strides = [1, 1]} : vector<1x64xf32> to vector<1x32xf32>
    %366 = vector.extract_strided_slice %354 {offsets = [0, 64], sizes = [1, 32], strides = [1, 1]} : vector<1x96xf32> to vector<1x32xf32>
    %367 = vector.extract_strided_slice %355 {offsets = [0, 64], sizes = [1, 32], strides = [1, 1]} : vector<1x96xf32> to vector<1x32xf32>
    %368 = arith.addf %367, %21 : vector<1x32xf32>
    %369 = arith.mulf %364, %368 : vector<1x32xf32>
    %370 = arith.addf %366, %369 : vector<1x32xf32>
    %371 = math.tanh %370 : vector<1x32xf32>
    %cst_92 = arith.constant 1.000000e+00 : f32
    %372 = vector.broadcast %cst_92 : f32 to vector<1x32xf32>
    %373 = arith.subf %372, %365 : vector<1x32xf32>
    %374 = arith.mulf %373, %371 : vector<1x32xf32>
    %375 = arith.mulf %365, %349 : vector<1x32xf32>
    %376 = arith.addf %374, %375 : vector<1x32xf32>
    %377 = arith.index_cast %352 : i32 to index
    %c0_93 = arith.constant 0 : index
    %378 = vector.load %arg12[%377, %c0_93] : memref<8x32xf32, #tpu.memory_space<vmem>>, vector<1x32xf32>
    tpu.vector_store %arg12[%377, %c0_93], %376 {strides = array<i32>} : memref<8x32xf32, #tpu.memory_space<vmem>>, vector<1x32xf32>,
    %c5_i32_94 = arith.constant 5 : i32
    %c7_i32_95 = arith.constant 7 : i32
    %379 = arith.subi %c7_i32_95, %c5_i32_94 : i32
    %380 = arith.index_cast %379 : i32 to index
    %c0_96 = arith.constant 0 : index
    %381 = vector.load %arg10[%380, %c0_96] : memref<8x96xf32, #tpu.memory_space<vmem>>, vector<1x96xf32>
    %cst_97 = arith.constant dense<0.000000e+00> : vector<1x96xf32>
    %382 = tpu.matmul %376, %7, %cst_97 {dimension_numbers = #tpu.dot_dimension_numbers<[1], [0], [0], [1], [0, 0, 1, 1], [], []>} : vector<1x32xf32>, vector<32x96xf32>, vector<1x96xf32> -> vector<1x96xf32>
    %383 = vector.extract_strided_slice %381 {offsets = [0, 0], sizes = [1, 64], strides = [1, 1]} : vector<1x96xf32> to vector<1x64xf32>
    %384 = vector.extract_strided_slice %382 {offsets = [0, 0], sizes = [1, 64], strides = [1, 1]} : vector<1x96xf32> to vector<1x64xf32>
    %385 = arith.addf %383, %384 : vector<1x64xf32>
    %386 = arith.negf %385 : vector<1x64xf32>
    %387 = math.exp %386 : vector<1x64xf32>
    %cst_98 = arith.constant 1.000000e+00 : f32
    %388 = vector.broadcast %cst_98 : f32 to vector<1x64xf32>
    %389 = arith.addf %388, %387 : vector<1x64xf32>
    %390 = arith.divf %388, %389 : vector<1x64xf32>
    %391 = vector.extract_strided_slice %390 {offsets = [0, 0], sizes = [1, 32], strides = [1, 1]} : vector<1x64xf32> to vector<1x32xf32>
    %392 = vector.extract_strided_slice %390 {offsets = [0, 32], sizes = [1, 32], strides = [1, 1]} : vector<1x64xf32> to vector<1x32xf32>
    %393 = vector.extract_strided_slice %381 {offsets = [0, 64], sizes = [1, 32], strides = [1, 1]} : vector<1x96xf32> to vector<1x32xf32>
    %394 = vector.extract_strided_slice %382 {offsets = [0, 64], sizes = [1, 32], strides = [1, 1]} : vector<1x96xf32> to vector<1x32xf32>
    %395 = arith.addf %394, %21 : vector<1x32xf32>
    %396 = arith.mulf %391, %395 : vector<1x32xf32>
    %397 = arith.addf %393, %396 : vector<1x32xf32>
    %398 = math.tanh %397 : vector<1x32xf32>
    %cst_99 = arith.constant 1.000000e+00 : f32
    %399 = vector.broadcast %cst_99 : f32 to vector<1x32xf32>
    %400 = arith.subf %399, %392 : vector<1x32xf32>
    %401 = arith.mulf %400, %398 : vector<1x32xf32>
    %402 = arith.mulf %392, %376 : vector<1x32xf32>
    %403 = arith.addf %401, %402 : vector<1x32xf32>
    %404 = arith.index_cast %379 : i32 to index
    %c0_100 = arith.constant 0 : index
    %405 = vector.load %arg12[%404, %c0_100] : memref<8x32xf32, #tpu.memory_space<vmem>>, vector<1x32xf32>
    tpu.vector_store %arg12[%404, %c0_100], %403 {strides = array<i32>} : memref<8x32xf32, #tpu.memory_space<vmem>>, vector<1x32xf32>,
    %c6_i32_101 = arith.constant 6 : i32
    %c7_i32_102 = arith.constant 7 : i32
    %406 = arith.subi %c7_i32_102, %c6_i32_101 : i32
    %407 = arith.index_cast %406 : i32 to index
    %c0_103 = arith.constant 0 : index
    %408 = vector.load %arg10[%407, %c0_103] : memref<8x96xf32, #tpu.memory_space<vmem>>, vector<1x96xf32>
    %cst_104 = arith.constant dense<0.000000e+00> : vector<1x96xf32>
    %409 = tpu.matmul %403, %7, %cst_104 {dimension_numbers = #tpu.dot_dimension_numbers<[1], [0], [0], [1], [0, 0, 1, 1], [], []>} : vector<1x32xf32>, vector<32x96xf32>, vector<1x96xf32> -> vector<1x96xf32>
    %410 = vector.extract_strided_slice %408 {offsets = [0, 0], sizes = [1, 64], strides = [1, 1]} : vector<1x96xf32> to vector<1x64xf32>
    %411 = vector.extract_strided_slice %409 {offsets = [0, 0], sizes = [1, 64], strides = [1, 1]} : vector<1x96xf32> to vector<1x64xf32>
    %412 = arith.addf %410, %411 : vector<1x64xf32>
    %413 = arith.negf %412 : vector<1x64xf32>
    %414 = math.exp %413 : vector<1x64xf32>
    %cst_105 = arith.constant 1.000000e+00 : f32
    %415 = vector.broadcast %cst_105 : f32 to vector<1x64xf32>
    %416 = arith.addf %415, %414 : vector<1x64xf32>
    %417 = arith.divf %415, %416 : vector<1x64xf32>
    %418 = vector.extract_strided_slice %417 {offsets = [0, 0], sizes = [1, 32], strides = [1, 1]} : vector<1x64xf32> to vector<1x32xf32>
    %419 = vector.extract_strided_slice %417 {offsets = [0, 32], sizes = [1, 32], strides = [1, 1]} : vector<1x64xf32> to vector<1x32xf32>
    %420 = vector.extract_strided_slice %408 {offsets = [0, 64], sizes = [1, 32], strides = [1, 1]} : vector<1x96xf32> to vector<1x32xf32>
    %421 = vector.extract_strided_slice %409 {offsets = [0, 64], sizes = [1, 32], strides = [1, 1]} : vector<1x96xf32> to vector<1x32xf32>
    %422 = arith.addf %421, %21 : vector<1x32xf32>
    %423 = arith.mulf %418, %422 : vector<1x32xf32>
    %424 = arith.addf %420, %423 : vector<1x32xf32>
    %425 = math.tanh %424 : vector<1x32xf32>
    %cst_106 = arith.constant 1.000000e+00 : f32
    %426 = vector.broadcast %cst_106 : f32 to vector<1x32xf32>
    %427 = arith.subf %426, %419 : vector<1x32xf32>
    %428 = arith.mulf %427, %425 : vector<1x32xf32>
    %429 = arith.mulf %419, %403 : vector<1x32xf32>
    %430 = arith.addf %428, %429 : vector<1x32xf32>
    %431 = arith.index_cast %406 : i32 to index
    %c0_107 = arith.constant 0 : index
    %432 = vector.load %arg12[%431, %c0_107] : memref<8x32xf32, #tpu.memory_space<vmem>>, vector<1x32xf32>
    tpu.vector_store %arg12[%431, %c0_107], %430 {strides = array<i32>} : memref<8x32xf32, #tpu.memory_space<vmem>>, vector<1x32xf32>,
    %c7_i32_108 = arith.constant 7 : i32
    %c7_i32_109 = arith.constant 7 : i32
    %433 = arith.subi %c7_i32_109, %c7_i32_108 : i32
    %434 = arith.index_cast %433 : i32 to index
    %c0_110 = arith.constant 0 : index
    %435 = vector.load %arg10[%434, %c0_110] : memref<8x96xf32, #tpu.memory_space<vmem>>, vector<1x96xf32>
    %cst_111 = arith.constant dense<0.000000e+00> : vector<1x96xf32>
    %436 = tpu.matmul %430, %7, %cst_111 {dimension_numbers = #tpu.dot_dimension_numbers<[1], [0], [0], [1], [0, 0, 1, 1], [], []>} : vector<1x32xf32>, vector<32x96xf32>, vector<1x96xf32> -> vector<1x96xf32>
    %437 = vector.extract_strided_slice %435 {offsets = [0, 0], sizes = [1, 64], strides = [1, 1]} : vector<1x96xf32> to vector<1x64xf32>
    %438 = vector.extract_strided_slice %436 {offsets = [0, 0], sizes = [1, 64], strides = [1, 1]} : vector<1x96xf32> to vector<1x64xf32>
    %439 = arith.addf %437, %438 : vector<1x64xf32>
    %440 = arith.negf %439 : vector<1x64xf32>
    %441 = math.exp %440 : vector<1x64xf32>
    %cst_112 = arith.constant 1.000000e+00 : f32
    %442 = vector.broadcast %cst_112 : f32 to vector<1x64xf32>
    %443 = arith.addf %442, %441 : vector<1x64xf32>
    %444 = arith.divf %442, %443 : vector<1x64xf32>
    %445 = vector.extract_strided_slice %444 {offsets = [0, 0], sizes = [1, 32], strides = [1, 1]} : vector<1x64xf32> to vector<1x32xf32>
    %446 = vector.extract_strided_slice %444 {offsets = [0, 32], sizes = [1, 32], strides = [1, 1]} : vector<1x64xf32> to vector<1x32xf32>
    %447 = vector.extract_strided_slice %435 {offsets = [0, 64], sizes = [1, 32], strides = [1, 1]} : vector<1x96xf32> to vector<1x32xf32>
    %448 = vector.extract_strided_slice %436 {offsets = [0, 64], sizes = [1, 32], strides = [1, 1]} : vector<1x96xf32> to vector<1x32xf32>
    %449 = arith.addf %448, %21 : vector<1x32xf32>
    %450 = arith.mulf %445, %449 : vector<1x32xf32>
    %451 = arith.addf %447, %450 : vector<1x32xf32>
    %452 = math.tanh %451 : vector<1x32xf32>
    %cst_113 = arith.constant 1.000000e+00 : f32
    %453 = vector.broadcast %cst_113 : f32 to vector<1x32xf32>
    %454 = arith.subf %453, %446 : vector<1x32xf32>
    %455 = arith.mulf %454, %452 : vector<1x32xf32>
    %456 = arith.mulf %446, %430 : vector<1x32xf32>
    %457 = arith.addf %455, %456 : vector<1x32xf32>
    %458 = arith.index_cast %433 : i32 to index
    %c0_114 = arith.constant 0 : index
    %459 = vector.load %arg12[%458, %c0_114] : memref<8x32xf32, #tpu.memory_space<vmem>>, vector<1x32xf32>
    tpu.vector_store %arg12[%458, %c0_114], %457 {strides = array<i32>} : memref<8x32xf32, #tpu.memory_space<vmem>>, vector<1x32xf32>,
    %c8_i32_115 = arith.constant 8 : i32
    %c0_116 = arith.constant 0 : index
    %c0_117 = arith.constant 0 : index
    %460 = vector.load %arg11[%c0_116, %c0_117] : memref<8x32xf32, #tpu.memory_space<vmem>>, vector<8x32xf32>
    %c0_118 = arith.constant 0 : index
    %c0_119 = arith.constant 0 : index
    %461 = vector.load %arg12[%c0_118, %c0_119] : memref<8x32xf32, #tpu.memory_space<vmem>>, vector<8x32xf32>
    %462 = arith.addf %460, %461 : vector<8x32xf32>
    %463 = tpu.transpose %462, [1, 0] : vector<8x32xf32> -> vector<32x8xf32>
    %464 = tpu.iota {dimensions = array<i32: 1>} : vector<1x128xi32>
    %465 = tpu.iota {dimensions = array<i32: 1>} : vector<1x6xi32>
    %466 = vector.extract_strided_slice %16 {offsets = [1, 0], sizes = [1, 32], strides = [1, 1]} : vector<128x32xf32> to vector<1x32xf32>
    %c0_i32_120 = arith.constant 0 : i32
    %467 = vector.broadcast %c0_i32_120 : i32 to vector<1x6xi32>
    %cst_121 = arith.constant 0.000000e+00 : f32
    %468 = vector.broadcast %cst_121 : f32 to vector<1x6xf32>
    %c0_i32_122 = arith.constant 0 : i32
    %cst_123 = arith.constant dense<0.000000e+00> : vector<1x96xf32>
    %469 = tpu.matmul %466, %5, %cst_123 {dimension_numbers = #tpu.dot_dimension_numbers<[1], [0], [0], [1], [0, 0, 1, 1], [], []>} : vector<1x32xf32>, vector<32x96xf32>, vector<1x96xf32> -> vector<1x96xf32>
    %470 = arith.addf %469, %22 : vector<1x96xf32>
    %cst_124 = arith.constant dense<0.000000e+00> : vector<1x96xf32>
    %471 = tpu.matmul %241, %8, %cst_124 {dimension_numbers = #tpu.dot_dimension_numbers<[1], [0], [0], [1], [0, 0, 1, 1], [], []>} : vector<1x32xf32>, vector<32x96xf32>, vector<1x96xf32> -> vector<1x96xf32>
    %472 = vector.extract_strided_slice %470 {offsets = [0, 0], sizes = [1, 64], strides = [1, 1]} : vector<1x96xf32> to vector<1x64xf32>
    %473 = vector.extract_strided_slice %471 {offsets = [0, 0], sizes = [1, 64], strides = [1, 1]} : vector<1x96xf32> to vector<1x64xf32>
    %474 = arith.addf %472, %473 : vector<1x64xf32>
    %475 = arith.negf %474 : vector<1x64xf32>
    %476 = math.exp %475 : vector<1x64xf32>
    %cst_125 = arith.constant 1.000000e+00 : f32
    %477 = vector.broadcast %cst_125 : f32 to vector<1x64xf32>
    %478 = arith.addf %477, %476 : vector<1x64xf32>
    %479 = arith.divf %477, %478 : vector<1x64xf32>
    %480 = vector.extract_strided_slice %479 {offsets = [0, 0], sizes = [1, 32], strides = [1, 1]} : vector<1x64xf32> to vector<1x32xf32>
    %481 = vector.extract_strided_slice %479 {offsets = [0, 32], sizes = [1, 32], strides = [1, 1]} : vector<1x64xf32> to vector<1x32xf32>
    %482 = vector.extract_strided_slice %470 {offsets = [0, 64], sizes = [1, 32], strides = [1, 1]} : vector<1x96xf32> to vector<1x32xf32>
    %483 = vector.extract_strided_slice %471 {offsets = [0, 64], sizes = [1, 32], strides = [1, 1]} : vector<1x96xf32> to vector<1x32xf32>
    %484 = arith.addf %483, %23 : vector<1x32xf32>
    %485 = arith.mulf %480, %484 : vector<1x32xf32>
    %486 = arith.addf %482, %485 : vector<1x32xf32>
    %487 = math.tanh %486 : vector<1x32xf32>
    %cst_126 = arith.constant 1.000000e+00 : f32
    %488 = vector.broadcast %cst_126 : f32 to vector<1x32xf32>
    %489 = arith.subf %488, %481 : vector<1x32xf32>
    %490 = arith.mulf %489, %487 : vector<1x32xf32>
    %491 = arith.mulf %481, %241 : vector<1x32xf32>
    %492 = arith.addf %490, %491 : vector<1x32xf32>
    %cst_127 = arith.constant dense<0.000000e+00> : vector<1x8xf32>
    %493 = tpu.matmul %492, %463, %cst_127 {dimension_numbers = #tpu.dot_dimension_numbers<[1], [0], [0], [1], [0, 0, 1, 1], [], []>} : vector<1x32xf32>, vector<32x8xf32>, vector<1x8xf32> -> vector<1x8xf32>
    %cst_128 = arith.constant dense<0xFF800000> : vector<1xf32>
    %494 = vector.multi_reduction <maximumf>, %493, %cst_128 [1] : vector<1x8xf32> to vector<1xf32>
    %495 = vector.shape_cast %494 : vector<1xf32> to vector<1x1xf32>
    %496 = vector.broadcast %495 : vector<1x1xf32> to vector<1x8xf32>
    %497 = arith.subf %493, %496 : vector<1x8xf32>
    %498 = math.exp %497 : vector<1x8xf32>
    %cst_129 = arith.constant dense<0.000000e+00> : vector<1xf32>
    %499 = vector.multi_reduction <add>, %498, %cst_129 [1] : vector<1x8xf32> to vector<1xf32>
    %500 = vector.shape_cast %499 : vector<1xf32> to vector<1x1xf32>
    %501 = tpu.reciprocal %500 {approx = true} : vector<1x1xf32> -> vector<1x1xf32>
    %502 = vector.broadcast %501 : vector<1x1xf32> to vector<1x8xf32>
    %503 = arith.mulf %498, %502 : vector<1x8xf32>
    %cst_130 = arith.constant dense<0.000000e+00> : vector<1x32xf32>
    %504 = tpu.matmul %503, %462, %cst_130 {dimension_numbers = #tpu.dot_dimension_numbers<[1], [0], [0], [1], [0, 0, 1, 1], [], []>} : vector<1x8xf32>, vector<8x32xf32>, vector<1x32xf32> -> vector<1x32xf32>
    %cst_131 = arith.constant dense<0.000000e+00> : vector<1x32xf32>
    %505 = tpu.matmul %492, %11, %cst_131 {dimension_numbers = #tpu.dot_dimension_numbers<[1], [0], [0], [1], [0, 0, 1, 1], [], []>} : vector<1x32xf32>, vector<32x32xf32>, vector<1x32xf32> -> vector<1x32xf32>
    %cst_132 = arith.constant dense<0.000000e+00> : vector<1x32xf32>
    %506 = tpu.matmul %504, %12, %cst_132 {dimension_numbers = #tpu.dot_dimension_numbers<[1], [0], [0], [1], [0, 0, 1, 1], [], []>} : vector<1x32xf32>, vector<32x32xf32>, vector<1x32xf32> -> vector<1x32xf32>
    %507 = arith.addf %505, %506 : vector<1x32xf32>
    %508 = arith.addf %507, %25 : vector<1x32xf32>
    %509 = math.tanh %508 : vector<1x32xf32>
    %cst_133 = arith.constant dense<0.000000e+00> : vector<1x128xf32>
    %510 = tpu.matmul %509, %14, %cst_133 {dimension_numbers = #tpu.dot_dimension_numbers<[1], [0], [0], [1], [0, 0, 1, 1], [], []>} : vector<1x32xf32>, vector<32x128xf32>, vector<1x128xf32> -> vector<1x128xf32>
    %511 = arith.addf %510, %26 : vector<1x128xf32>
    %cst_134 = arith.constant dense<0xFF800000> : vector<1xf32>
    %512 = vector.multi_reduction <maximumf>, %511, %cst_134 [1] : vector<1x128xf32> to vector<1xf32>
    %513 = vector.shape_cast %512 : vector<1xf32> to vector<1x1xf32>
    %514 = vector.broadcast %513 : vector<1x1xf32> to vector<1x128xf32>
    %515 = arith.subf %511, %514 : vector<1x128xf32>
    %516 = math.exp %515 : vector<1x128xf32>
    %cst_135 = arith.constant dense<0.000000e+00> : vector<1xf32>
    %517 = vector.multi_reduction <add>, %516, %cst_135 [1] : vector<1x128xf32> to vector<1xf32>
    %518 = vector.shape_cast %517 : vector<1xf32> to vector<1x1xf32>
    %519 = tpu.reciprocal %518 {approx = true} : vector<1x1xf32> -> vector<1x1xf32>
    %520 = vector.broadcast %513 : vector<1x1xf32> to vector<1x128xf32>
    %521 = arith.cmpf oeq, %511, %520 : vector<1x128xf32>
    %c128_i32 = arith.constant 128 : i32
    %522 = vector.broadcast %c128_i32 : i32 to vector<1x128xi32>
    %523 = arith.select %521, %464, %522 : vector<1x128xi1>, vector<1x128xi32>
    %cst_136 = arith.constant dense<2147483647> : vector<1xi32>
    %524 = vector.multi_reduction <minsi>, %523, %cst_136 [1] : vector<1x128xi32> to vector<1xi32>
    %525 = vector.shape_cast %524 : vector<1xi32> to vector<1x1xi32>
    %526 = vector.broadcast %c0_i32_122 : i32 to vector<1x6xi32>
    %527 = arith.cmpi eq, %465, %526 : vector<1x6xi32>
    %528 = vector.shape_cast %525 : vector<1x1xi32> to vector<1x1xi32>
    %529 = vector.broadcast %528 : vector<1x1xi32> to vector<1x6xi32>
    %530 = arith.select %527, %529, %467 : vector<1x6xi1>, vector<1x6xi32>
    %531 = vector.shape_cast %519 : vector<1x1xf32> to vector<1x1xf32>
    %532 = vector.broadcast %531 : vector<1x1xf32> to vector<1x6xf32>
    %533 = arith.select %527, %532, %468 : vector<1x6xi1>, vector<1x6xf32>
    %534 = vector.broadcast %525 : vector<1x1xi32> to vector<1x128xi32>
    %535 = arith.cmpi eq, %464, %534 : vector<1x128xi32>
    %536 = arith.extui %535 : vector<1x128xi1> to vector<1x128xi32>
    %537 = arith.sitofp %536 : vector<1x128xi32> to vector<1x128xf32>
    %cst_137 = arith.constant dense<0.000000e+00> : vector<1x32xf32>
    %538 = tpu.matmul %537, %16, %cst_137 {dimension_numbers = #tpu.dot_dimension_numbers<[1], [0], [0], [1], [0, 0, 1, 1], [], []>} : vector<1x128xf32>, vector<128x32xf32>, vector<1x32xf32> -> vector<1x32xf32>
    %c1_i32_138 = arith.constant 1 : i32
    %cst_139 = arith.constant dense<0.000000e+00> : vector<1x96xf32>
    %539 = tpu.matmul %538, %5, %cst_139 {dimension_numbers = #tpu.dot_dimension_numbers<[1], [0], [0], [1], [0, 0, 1, 1], [], []>} : vector<1x32xf32>, vector<32x96xf32>, vector<1x96xf32> -> vector<1x96xf32>
    %540 = arith.addf %539, %22 : vector<1x96xf32>
    %cst_140 = arith.constant dense<0.000000e+00> : vector<1x96xf32>
    %541 = tpu.matmul %492, %8, %cst_140 {dimension_numbers = #tpu.dot_dimension_numbers<[1], [0], [0], [1], [0, 0, 1, 1], [], []>} : vector<1x32xf32>, vector<32x96xf32>, vector<1x96xf32> -> vector<1x96xf32>
    %542 = vector.extract_strided_slice %540 {offsets = [0, 0], sizes = [1, 64], strides = [1, 1]} : vector<1x96xf32> to vector<1x64xf32>
    %543 = vector.extract_strided_slice %541 {offsets = [0, 0], sizes = [1, 64], strides = [1, 1]} : vector<1x96xf32> to vector<1x64xf32>
    %544 = arith.addf %542, %543 : vector<1x64xf32>
    %545 = arith.negf %544 : vector<1x64xf32>
    %546 = math.exp %545 : vector<1x64xf32>
    %cst_141 = arith.constant 1.000000e+00 : f32
    %547 = vector.broadcast %cst_141 : f32 to vector<1x64xf32>
    %548 = arith.addf %547, %546 : vector<1x64xf32>
    %549 = arith.divf %547, %548 : vector<1x64xf32>
    %550 = vector.extract_strided_slice %549 {offsets = [0, 0], sizes = [1, 32], strides = [1, 1]} : vector<1x64xf32> to vector<1x32xf32>
    %551 = vector.extract_strided_slice %549 {offsets = [0, 32], sizes = [1, 32], strides = [1, 1]} : vector<1x64xf32> to vector<1x32xf32>
    %552 = vector.extract_strided_slice %540 {offsets = [0, 64], sizes = [1, 32], strides = [1, 1]} : vector<1x96xf32> to vector<1x32xf32>
    %553 = vector.extract_strided_slice %541 {offsets = [0, 64], sizes = [1, 32], strides = [1, 1]} : vector<1x96xf32> to vector<1x32xf32>
    %554 = arith.addf %553, %23 : vector<1x32xf32>
    %555 = arith.mulf %550, %554 : vector<1x32xf32>
    %556 = arith.addf %552, %555 : vector<1x32xf32>
    %557 = math.tanh %556 : vector<1x32xf32>
    %cst_142 = arith.constant 1.000000e+00 : f32
    %558 = vector.broadcast %cst_142 : f32 to vector<1x32xf32>
    %559 = arith.subf %558, %551 : vector<1x32xf32>
    %560 = arith.mulf %559, %557 : vector<1x32xf32>
    %561 = arith.mulf %551, %492 : vector<1x32xf32>
    %562 = arith.addf %560, %561 : vector<1x32xf32>
    %cst_143 = arith.constant dense<0.000000e+00> : vector<1x8xf32>
    %563 = tpu.matmul %562, %463, %cst_143 {dimension_numbers = #tpu.dot_dimension_numbers<[1], [0], [0], [1], [0, 0, 1, 1], [], []>} : vector<1x32xf32>, vector<32x8xf32>, vector<1x8xf32> -> vector<1x8xf32>
    %cst_144 = arith.constant dense<0xFF800000> : vector<1xf32>
    %564 = vector.multi_reduction <maximumf>, %563, %cst_144 [1] : vector<1x8xf32> to vector<1xf32>
    %565 = vector.shape_cast %564 : vector<1xf32> to vector<1x1xf32>
    %566 = vector.broadcast %565 : vector<1x1xf32> to vector<1x8xf32>
    %567 = arith.subf %563, %566 : vector<1x8xf32>
    %568 = math.exp %567 : vector<1x8xf32>
    %cst_145 = arith.constant dense<0.000000e+00> : vector<1xf32>
    %569 = vector.multi_reduction <add>, %568, %cst_145 [1] : vector<1x8xf32> to vector<1xf32>
    %570 = vector.shape_cast %569 : vector<1xf32> to vector<1x1xf32>
    %571 = tpu.reciprocal %570 {approx = true} : vector<1x1xf32> -> vector<1x1xf32>
    %572 = vector.broadcast %571 : vector<1x1xf32> to vector<1x8xf32>
    %573 = arith.mulf %568, %572 : vector<1x8xf32>
    %cst_146 = arith.constant dense<0.000000e+00> : vector<1x32xf32>
    %574 = tpu.matmul %573, %462, %cst_146 {dimension_numbers = #tpu.dot_dimension_numbers<[1], [0], [0], [1], [0, 0, 1, 1], [], []>} : vector<1x8xf32>, vector<8x32xf32>, vector<1x32xf32> -> vector<1x32xf32>
    %cst_147 = arith.constant dense<0.000000e+00> : vector<1x32xf32>
    %575 = tpu.matmul %562, %11, %cst_147 {dimension_numbers = #tpu.dot_dimension_numbers<[1], [0], [0], [1], [0, 0, 1, 1], [], []>} : vector<1x32xf32>, vector<32x32xf32>, vector<1x32xf32> -> vector<1x32xf32>
    %cst_148 = arith.constant dense<0.000000e+00> : vector<1x32xf32>
    %576 = tpu.matmul %574, %12, %cst_148 {dimension_numbers = #tpu.dot_dimension_numbers<[1], [0], [0], [1], [0, 0, 1, 1], [], []>} : vector<1x32xf32>, vector<32x32xf32>, vector<1x32xf32> -> vector<1x32xf32>
    %577 = arith.addf %575, %576 : vector<1x32xf32>
    %578 = arith.addf %577, %25 : vector<1x32xf32>
    %579 = math.tanh %578 : vector<1x32xf32>
    %cst_149 = arith.constant dense<0.000000e+00> : vector<1x128xf32>
    %580 = tpu.matmul %579, %14, %cst_149 {dimension_numbers = #tpu.dot_dimension_numbers<[1], [0], [0], [1], [0, 0, 1, 1], [], []>} : vector<1x32xf32>, vector<32x128xf32>, vector<1x128xf32> -> vector<1x128xf32>
    %581 = arith.addf %580, %26 : vector<1x128xf32>
    %cst_150 = arith.constant dense<0xFF800000> : vector<1xf32>
    %582 = vector.multi_reduction <maximumf>, %581, %cst_150 [1] : vector<1x128xf32> to vector<1xf32>
    %583 = vector.shape_cast %582 : vector<1xf32> to vector<1x1xf32>
    %584 = vector.broadcast %583 : vector<1x1xf32> to vector<1x128xf32>
    %585 = arith.subf %581, %584 : vector<1x128xf32>
    %586 = math.exp %585 : vector<1x128xf32>
    %cst_151 = arith.constant dense<0.000000e+00> : vector<1xf32>
    %587 = vector.multi_reduction <add>, %586, %cst_151 [1] : vector<1x128xf32> to vector<1xf32>
    %588 = vector.shape_cast %587 : vector<1xf32> to vector<1x1xf32>
    %589 = tpu.reciprocal %588 {approx = true} : vector<1x1xf32> -> vector<1x1xf32>
    %590 = vector.broadcast %583 : vector<1x1xf32> to vector<1x128xf32>
    %591 = arith.cmpf oeq, %581, %590 : vector<1x128xf32>
    %c128_i32_152 = arith.constant 128 : i32
    %592 = vector.broadcast %c128_i32_152 : i32 to vector<1x128xi32>
    %593 = arith.select %591, %464, %592 : vector<1x128xi1>, vector<1x128xi32>
    %cst_153 = arith.constant dense<2147483647> : vector<1xi32>
    %594 = vector.multi_reduction <minsi>, %593, %cst_153 [1] : vector<1x128xi32> to vector<1xi32>
    %595 = vector.shape_cast %594 : vector<1xi32> to vector<1x1xi32>
    %596 = vector.broadcast %c1_i32_138 : i32 to vector<1x6xi32>
    %597 = arith.cmpi eq, %465, %596 : vector<1x6xi32>
    %598 = vector.shape_cast %595 : vector<1x1xi32> to vector<1x1xi32>
    %599 = vector.broadcast %598 : vector<1x1xi32> to vector<1x6xi32>
    %600 = arith.select %597, %599, %530 : vector<1x6xi1>, vector<1x6xi32>
    %601 = vector.shape_cast %589 : vector<1x1xf32> to vector<1x1xf32>
    %602 = vector.broadcast %601 : vector<1x1xf32> to vector<1x6xf32>
    %603 = arith.select %597, %602, %533 : vector<1x6xi1>, vector<1x6xf32>
    %604 = vector.broadcast %595 : vector<1x1xi32> to vector<1x128xi32>
    %605 = arith.cmpi eq, %464, %604 : vector<1x128xi32>
    %606 = arith.extui %605 : vector<1x128xi1> to vector<1x128xi32>
    %607 = arith.sitofp %606 : vector<1x128xi32> to vector<1x128xf32>
    %cst_154 = arith.constant dense<0.000000e+00> : vector<1x32xf32>
    %608 = tpu.matmul %607, %16, %cst_154 {dimension_numbers = #tpu.dot_dimension_numbers<[1], [0], [0], [1], [0, 0, 1, 1], [], []>} : vector<1x128xf32>, vector<128x32xf32>, vector<1x32xf32> -> vector<1x32xf32>
    %c2_i32_155 = arith.constant 2 : i32
    %cst_156 = arith.constant dense<0.000000e+00> : vector<1x96xf32>
    %609 = tpu.matmul %608, %5, %cst_156 {dimension_numbers = #tpu.dot_dimension_numbers<[1], [0], [0], [1], [0, 0, 1, 1], [], []>} : vector<1x32xf32>, vector<32x96xf32>, vector<1x96xf32> -> vector<1x96xf32>
    %610 = arith.addf %609, %22 : vector<1x96xf32>
    %cst_157 = arith.constant dense<0.000000e+00> : vector<1x96xf32>
    %611 = tpu.matmul %562, %8, %cst_157 {dimension_numbers = #tpu.dot_dimension_numbers<[1], [0], [0], [1], [0, 0, 1, 1], [], []>} : vector<1x32xf32>, vector<32x96xf32>, vector<1x96xf32> -> vector<1x96xf32>
    %612 = vector.extract_strided_slice %610 {offsets = [0, 0], sizes = [1, 64], strides = [1, 1]} : vector<1x96xf32> to vector<1x64xf32>
    %613 = vector.extract_strided_slice %611 {offsets = [0, 0], sizes = [1, 64], strides = [1, 1]} : vector<1x96xf32> to vector<1x64xf32>
    %614 = arith.addf %612, %613 : vector<1x64xf32>
    %615 = arith.negf %614 : vector<1x64xf32>
    %616 = math.exp %615 : vector<1x64xf32>
    %cst_158 = arith.constant 1.000000e+00 : f32
    %617 = vector.broadcast %cst_158 : f32 to vector<1x64xf32>
    %618 = arith.addf %617, %616 : vector<1x64xf32>
    %619 = arith.divf %617, %618 : vector<1x64xf32>
    %620 = vector.extract_strided_slice %619 {offsets = [0, 0], sizes = [1, 32], strides = [1, 1]} : vector<1x64xf32> to vector<1x32xf32>
    %621 = vector.extract_strided_slice %619 {offsets = [0, 32], sizes = [1, 32], strides = [1, 1]} : vector<1x64xf32> to vector<1x32xf32>
    %622 = vector.extract_strided_slice %610 {offsets = [0, 64], sizes = [1, 32], strides = [1, 1]} : vector<1x96xf32> to vector<1x32xf32>
    %623 = vector.extract_strided_slice %611 {offsets = [0, 64], sizes = [1, 32], strides = [1, 1]} : vector<1x96xf32> to vector<1x32xf32>
    %624 = arith.addf %623, %23 : vector<1x32xf32>
    %625 = arith.mulf %620, %624 : vector<1x32xf32>
    %626 = arith.addf %622, %625 : vector<1x32xf32>
    %627 = math.tanh %626 : vector<1x32xf32>
    %cst_159 = arith.constant 1.000000e+00 : f32
    %628 = vector.broadcast %cst_159 : f32 to vector<1x32xf32>
    %629 = arith.subf %628, %621 : vector<1x32xf32>
    %630 = arith.mulf %629, %627 : vector<1x32xf32>
    %631 = arith.mulf %621, %562 : vector<1x32xf32>
    %632 = arith.addf %630, %631 : vector<1x32xf32>
    %cst_160 = arith.constant dense<0.000000e+00> : vector<1x8xf32>
    %633 = tpu.matmul %632, %463, %cst_160 {dimension_numbers = #tpu.dot_dimension_numbers<[1], [0], [0], [1], [0, 0, 1, 1], [], []>} : vector<1x32xf32>, vector<32x8xf32>, vector<1x8xf32> -> vector<1x8xf32>
    %cst_161 = arith.constant dense<0xFF800000> : vector<1xf32>
    %634 = vector.multi_reduction <maximumf>, %633, %cst_161 [1] : vector<1x8xf32> to vector<1xf32>
    %635 = vector.shape_cast %634 : vector<1xf32> to vector<1x1xf32>
    %636 = vector.broadcast %635 : vector<1x1xf32> to vector<1x8xf32>
    %637 = arith.subf %633, %636 : vector<1x8xf32>
    %638 = math.exp %637 : vector<1x8xf32>
    %cst_162 = arith.constant dense<0.000000e+00> : vector<1xf32>
    %639 = vector.multi_reduction <add>, %638, %cst_162 [1] : vector<1x8xf32> to vector<1xf32>
    %640 = vector.shape_cast %639 : vector<1xf32> to vector<1x1xf32>
    %641 = tpu.reciprocal %640 {approx = true} : vector<1x1xf32> -> vector<1x1xf32>
    %642 = vector.broadcast %641 : vector<1x1xf32> to vector<1x8xf32>
    %643 = arith.mulf %638, %642 : vector<1x8xf32>
    %cst_163 = arith.constant dense<0.000000e+00> : vector<1x32xf32>
    %644 = tpu.matmul %643, %462, %cst_163 {dimension_numbers = #tpu.dot_dimension_numbers<[1], [0], [0], [1], [0, 0, 1, 1], [], []>} : vector<1x8xf32>, vector<8x32xf32>, vector<1x32xf32> -> vector<1x32xf32>
    %cst_164 = arith.constant dense<0.000000e+00> : vector<1x32xf32>
    %645 = tpu.matmul %632, %11, %cst_164 {dimension_numbers = #tpu.dot_dimension_numbers<[1], [0], [0], [1], [0, 0, 1, 1], [], []>} : vector<1x32xf32>, vector<32x32xf32>, vector<1x32xf32> -> vector<1x32xf32>
    %cst_165 = arith.constant dense<0.000000e+00> : vector<1x32xf32>
    %646 = tpu.matmul %644, %12, %cst_165 {dimension_numbers = #tpu.dot_dimension_numbers<[1], [0], [0], [1], [0, 0, 1, 1], [], []>} : vector<1x32xf32>, vector<32x32xf32>, vector<1x32xf32> -> vector<1x32xf32>
    %647 = arith.addf %645, %646 : vector<1x32xf32>
    %648 = arith.addf %647, %25 : vector<1x32xf32>
    %649 = math.tanh %648 : vector<1x32xf32>
    %cst_166 = arith.constant dense<0.000000e+00> : vector<1x128xf32>
    %650 = tpu.matmul %649, %14, %cst_166 {dimension_numbers = #tpu.dot_dimension_numbers<[1], [0], [0], [1], [0, 0, 1, 1], [], []>} : vector<1x32xf32>, vector<32x128xf32>, vector<1x128xf32> -> vector<1x128xf32>
    %651 = arith.addf %650, %26 : vector<1x128xf32>
    %cst_167 = arith.constant dense<0xFF800000> : vector<1xf32>
    %652 = vector.multi_reduction <maximumf>, %651, %cst_167 [1] : vector<1x128xf32> to vector<1xf32>
    %653 = vector.shape_cast %652 : vector<1xf32> to vector<1x1xf32>
    %654 = vector.broadcast %653 : vector<1x1xf32> to vector<1x128xf32>
    %655 = arith.subf %651, %654 : vector<1x128xf32>
    %656 = math.exp %655 : vector<1x128xf32>
    %cst_168 = arith.constant dense<0.000000e+00> : vector<1xf32>
    %657 = vector.multi_reduction <add>, %656, %cst_168 [1] : vector<1x128xf32> to vector<1xf32>
    %658 = vector.shape_cast %657 : vector<1xf32> to vector<1x1xf32>
    %659 = tpu.reciprocal %658 {approx = true} : vector<1x1xf32> -> vector<1x1xf32>
    %660 = vector.broadcast %653 : vector<1x1xf32> to vector<1x128xf32>
    %661 = arith.cmpf oeq, %651, %660 : vector<1x128xf32>
    %c128_i32_169 = arith.constant 128 : i32
    %662 = vector.broadcast %c128_i32_169 : i32 to vector<1x128xi32>
    %663 = arith.select %661, %464, %662 : vector<1x128xi1>, vector<1x128xi32>
    %cst_170 = arith.constant dense<2147483647> : vector<1xi32>
    %664 = vector.multi_reduction <minsi>, %663, %cst_170 [1] : vector<1x128xi32> to vector<1xi32>
    %665 = vector.shape_cast %664 : vector<1xi32> to vector<1x1xi32>
    %666 = vector.broadcast %c2_i32_155 : i32 to vector<1x6xi32>
    %667 = arith.cmpi eq, %465, %666 : vector<1x6xi32>
    %668 = vector.shape_cast %665 : vector<1x1xi32> to vector<1x1xi32>
    %669 = vector.broadcast %668 : vector<1x1xi32> to vector<1x6xi32>
    %670 = arith.select %667, %669, %600 : vector<1x6xi1>, vector<1x6xi32>
    %671 = vector.shape_cast %659 : vector<1x1xf32> to vector<1x1xf32>
    %672 = vector.broadcast %671 : vector<1x1xf32> to vector<1x6xf32>
    %673 = arith.select %667, %672, %603 : vector<1x6xi1>, vector<1x6xf32>
    %674 = vector.broadcast %665 : vector<1x1xi32> to vector<1x128xi32>
    %675 = arith.cmpi eq, %464, %674 : vector<1x128xi32>
    %676 = arith.extui %675 : vector<1x128xi1> to vector<1x128xi32>
    %677 = arith.sitofp %676 : vector<1x128xi32> to vector<1x128xf32>
    %cst_171 = arith.constant dense<0.000000e+00> : vector<1x32xf32>
    %678 = tpu.matmul %677, %16, %cst_171 {dimension_numbers = #tpu.dot_dimension_numbers<[1], [0], [0], [1], [0, 0, 1, 1], [], []>} : vector<1x128xf32>, vector<128x32xf32>, vector<1x32xf32> -> vector<1x32xf32>
    %c3_i32_172 = arith.constant 3 : i32
    %cst_173 = arith.constant dense<0.000000e+00> : vector<1x96xf32>
    %679 = tpu.matmul %678, %5, %cst_173 {dimension_numbers = #tpu.dot_dimension_numbers<[1], [0], [0], [1], [0, 0, 1, 1], [], []>} : vector<1x32xf32>, vector<32x96xf32>, vector<1x96xf32> -> vector<1x96xf32>
    %680 = arith.addf %679, %22 : vector<1x96xf32>
    %cst_174 = arith.constant dense<0.000000e+00> : vector<1x96xf32>
    %681 = tpu.matmul %632, %8, %cst_174 {dimension_numbers = #tpu.dot_dimension_numbers<[1], [0], [0], [1], [0, 0, 1, 1], [], []>} : vector<1x32xf32>, vector<32x96xf32>, vector<1x96xf32> -> vector<1x96xf32>
    %682 = vector.extract_strided_slice %680 {offsets = [0, 0], sizes = [1, 64], strides = [1, 1]} : vector<1x96xf32> to vector<1x64xf32>
    %683 = vector.extract_strided_slice %681 {offsets = [0, 0], sizes = [1, 64], strides = [1, 1]} : vector<1x96xf32> to vector<1x64xf32>
    %684 = arith.addf %682, %683 : vector<1x64xf32>
    %685 = arith.negf %684 : vector<1x64xf32>
    %686 = math.exp %685 : vector<1x64xf32>
    %cst_175 = arith.constant 1.000000e+00 : f32
    %687 = vector.broadcast %cst_175 : f32 to vector<1x64xf32>
    %688 = arith.addf %687, %686 : vector<1x64xf32>
    %689 = arith.divf %687, %688 : vector<1x64xf32>
    %690 = vector.extract_strided_slice %689 {offsets = [0, 0], sizes = [1, 32], strides = [1, 1]} : vector<1x64xf32> to vector<1x32xf32>
    %691 = vector.extract_strided_slice %689 {offsets = [0, 32], sizes = [1, 32], strides = [1, 1]} : vector<1x64xf32> to vector<1x32xf32>
    %692 = vector.extract_strided_slice %680 {offsets = [0, 64], sizes = [1, 32], strides = [1, 1]} : vector<1x96xf32> to vector<1x32xf32>
    %693 = vector.extract_strided_slice %681 {offsets = [0, 64], sizes = [1, 32], strides = [1, 1]} : vector<1x96xf32> to vector<1x32xf32>
    %694 = arith.addf %693, %23 : vector<1x32xf32>
    %695 = arith.mulf %690, %694 : vector<1x32xf32>
    %696 = arith.addf %692, %695 : vector<1x32xf32>
    %697 = math.tanh %696 : vector<1x32xf32>
    %cst_176 = arith.constant 1.000000e+00 : f32
    %698 = vector.broadcast %cst_176 : f32 to vector<1x32xf32>
    %699 = arith.subf %698, %691 : vector<1x32xf32>
    %700 = arith.mulf %699, %697 : vector<1x32xf32>
    %701 = arith.mulf %691, %632 : vector<1x32xf32>
    %702 = arith.addf %700, %701 : vector<1x32xf32>
    %cst_177 = arith.constant dense<0.000000e+00> : vector<1x8xf32>
    %703 = tpu.matmul %702, %463, %cst_177 {dimension_numbers = #tpu.dot_dimension_numbers<[1], [0], [0], [1], [0, 0, 1, 1], [], []>} : vector<1x32xf32>, vector<32x8xf32>, vector<1x8xf32> -> vector<1x8xf32>
    %cst_178 = arith.constant dense<0xFF800000> : vector<1xf32>
    %704 = vector.multi_reduction <maximumf>, %703, %cst_178 [1] : vector<1x8xf32> to vector<1xf32>
    %705 = vector.shape_cast %704 : vector<1xf32> to vector<1x1xf32>
    %706 = vector.broadcast %705 : vector<1x1xf32> to vector<1x8xf32>
    %707 = arith.subf %703, %706 : vector<1x8xf32>
    %708 = math.exp %707 : vector<1x8xf32>
    %cst_179 = arith.constant dense<0.000000e+00> : vector<1xf32>
    %709 = vector.multi_reduction <add>, %708, %cst_179 [1] : vector<1x8xf32> to vector<1xf32>
    %710 = vector.shape_cast %709 : vector<1xf32> to vector<1x1xf32>
    %711 = tpu.reciprocal %710 {approx = true} : vector<1x1xf32> -> vector<1x1xf32>
    %712 = vector.broadcast %711 : vector<1x1xf32> to vector<1x8xf32>
    %713 = arith.mulf %708, %712 : vector<1x8xf32>
    %cst_180 = arith.constant dense<0.000000e+00> : vector<1x32xf32>
    %714 = tpu.matmul %713, %462, %cst_180 {dimension_numbers = #tpu.dot_dimension_numbers<[1], [0], [0], [1], [0, 0, 1, 1], [], []>} : vector<1x8xf32>, vector<8x32xf32>, vector<1x32xf32> -> vector<1x32xf32>
    %cst_181 = arith.constant dense<0.000000e+00> : vector<1x32xf32>
    %715 = tpu.matmul %702, %11, %cst_181 {dimension_numbers = #tpu.dot_dimension_numbers<[1], [0], [0], [1], [0, 0, 1, 1], [], []>} : vector<1x32xf32>, vector<32x32xf32>, vector<1x32xf32> -> vector<1x32xf32>
    %cst_182 = arith.constant dense<0.000000e+00> : vector<1x32xf32>
    %716 = tpu.matmul %714, %12, %cst_182 {dimension_numbers = #tpu.dot_dimension_numbers<[1], [0], [0], [1], [0, 0, 1, 1], [], []>} : vector<1x32xf32>, vector<32x32xf32>, vector<1x32xf32> -> vector<1x32xf32>
    %717 = arith.addf %715, %716 : vector<1x32xf32>
    %718 = arith.addf %717, %25 : vector<1x32xf32>
    %719 = math.tanh %718 : vector<1x32xf32>
    %cst_183 = arith.constant dense<0.000000e+00> : vector<1x128xf32>
    %720 = tpu.matmul %719, %14, %cst_183 {dimension_numbers = #tpu.dot_dimension_numbers<[1], [0], [0], [1], [0, 0, 1, 1], [], []>} : vector<1x32xf32>, vector<32x128xf32>, vector<1x128xf32> -> vector<1x128xf32>
    %721 = arith.addf %720, %26 : vector<1x128xf32>
    %cst_184 = arith.constant dense<0xFF800000> : vector<1xf32>
    %722 = vector.multi_reduction <maximumf>, %721, %cst_184 [1] : vector<1x128xf32> to vector<1xf32>
    %723 = vector.shape_cast %722 : vector<1xf32> to vector<1x1xf32>
    %724 = vector.broadcast %723 : vector<1x1xf32> to vector<1x128xf32>
    %725 = arith.subf %721, %724 : vector<1x128xf32>
    %726 = math.exp %725 : vector<1x128xf32>
    %cst_185 = arith.constant dense<0.000000e+00> : vector<1xf32>
    %727 = vector.multi_reduction <add>, %726, %cst_185 [1] : vector<1x128xf32> to vector<1xf32>
    %728 = vector.shape_cast %727 : vector<1xf32> to vector<1x1xf32>
    %729 = tpu.reciprocal %728 {approx = true} : vector<1x1xf32> -> vector<1x1xf32>
    %730 = vector.broadcast %723 : vector<1x1xf32> to vector<1x128xf32>
    %731 = arith.cmpf oeq, %721, %730 : vector<1x128xf32>
    %c128_i32_186 = arith.constant 128 : i32
    %732 = vector.broadcast %c128_i32_186 : i32 to vector<1x128xi32>
    %733 = arith.select %731, %464, %732 : vector<1x128xi1>, vector<1x128xi32>
    %cst_187 = arith.constant dense<2147483647> : vector<1xi32>
    %734 = vector.multi_reduction <minsi>, %733, %cst_187 [1] : vector<1x128xi32> to vector<1xi32>
    %735 = vector.shape_cast %734 : vector<1xi32> to vector<1x1xi32>
    %736 = vector.broadcast %c3_i32_172 : i32 to vector<1x6xi32>
    %737 = arith.cmpi eq, %465, %736 : vector<1x6xi32>
    %738 = vector.shape_cast %735 : vector<1x1xi32> to vector<1x1xi32>
    %739 = vector.broadcast %738 : vector<1x1xi32> to vector<1x6xi32>
    %740 = arith.select %737, %739, %670 : vector<1x6xi1>, vector<1x6xi32>
    %741 = vector.shape_cast %729 : vector<1x1xf32> to vector<1x1xf32>
    %742 = vector.broadcast %741 : vector<1x1xf32> to vector<1x6xf32>
    %743 = arith.select %737, %742, %673 : vector<1x6xi1>, vector<1x6xf32>
    %744 = vector.broadcast %735 : vector<1x1xi32> to vector<1x128xi32>
    %745 = arith.cmpi eq, %464, %744 : vector<1x128xi32>
    %746 = arith.extui %745 : vector<1x128xi1> to vector<1x128xi32>
    %747 = arith.sitofp %746 : vector<1x128xi32> to vector<1x128xf32>
    %cst_188 = arith.constant dense<0.000000e+00> : vector<1x32xf32>
    %748 = tpu.matmul %747, %16, %cst_188 {dimension_numbers = #tpu.dot_dimension_numbers<[1], [0], [0], [1], [0, 0, 1, 1], [], []>} : vector<1x128xf32>, vector<128x32xf32>, vector<1x32xf32> -> vector<1x32xf32>
    %c4_i32_189 = arith.constant 4 : i32
    %cst_190 = arith.constant dense<0.000000e+00> : vector<1x96xf32>
    %749 = tpu.matmul %748, %5, %cst_190 {dimension_numbers = #tpu.dot_dimension_numbers<[1], [0], [0], [1], [0, 0, 1, 1], [], []>} : vector<1x32xf32>, vector<32x96xf32>, vector<1x96xf32> -> vector<1x96xf32>
    %750 = arith.addf %749, %22 : vector<1x96xf32>
    %cst_191 = arith.constant dense<0.000000e+00> : vector<1x96xf32>
    %751 = tpu.matmul %702, %8, %cst_191 {dimension_numbers = #tpu.dot_dimension_numbers<[1], [0], [0], [1], [0, 0, 1, 1], [], []>} : vector<1x32xf32>, vector<32x96xf32>, vector<1x96xf32> -> vector<1x96xf32>
    %752 = vector.extract_strided_slice %750 {offsets = [0, 0], sizes = [1, 64], strides = [1, 1]} : vector<1x96xf32> to vector<1x64xf32>
    %753 = vector.extract_strided_slice %751 {offsets = [0, 0], sizes = [1, 64], strides = [1, 1]} : vector<1x96xf32> to vector<1x64xf32>
    %754 = arith.addf %752, %753 : vector<1x64xf32>
    %755 = arith.negf %754 : vector<1x64xf32>
    %756 = math.exp %755 : vector<1x64xf32>
    %cst_192 = arith.constant 1.000000e+00 : f32
    %757 = vector.broadcast %cst_192 : f32 to vector<1x64xf32>
    %758 = arith.addf %757, %756 : vector<1x64xf32>
    %759 = arith.divf %757, %758 : vector<1x64xf32>
    %760 = vector.extract_strided_slice %759 {offsets = [0, 0], sizes = [1, 32], strides = [1, 1]} : vector<1x64xf32> to vector<1x32xf32>
    %761 = vector.extract_strided_slice %759 {offsets = [0, 32], sizes = [1, 32], strides = [1, 1]} : vector<1x64xf32> to vector<1x32xf32>
    %762 = vector.extract_strided_slice %750 {offsets = [0, 64], sizes = [1, 32], strides = [1, 1]} : vector<1x96xf32> to vector<1x32xf32>
    %763 = vector.extract_strided_slice %751 {offsets = [0, 64], sizes = [1, 32], strides = [1, 1]} : vector<1x96xf32> to vector<1x32xf32>
    %764 = arith.addf %763, %23 : vector<1x32xf32>
    %765 = arith.mulf %760, %764 : vector<1x32xf32>
    %766 = arith.addf %762, %765 : vector<1x32xf32>
    %767 = math.tanh %766 : vector<1x32xf32>
    %cst_193 = arith.constant 1.000000e+00 : f32
    %768 = vector.broadcast %cst_193 : f32 to vector<1x32xf32>
    %769 = arith.subf %768, %761 : vector<1x32xf32>
    %770 = arith.mulf %769, %767 : vector<1x32xf32>
    %771 = arith.mulf %761, %702 : vector<1x32xf32>
    %772 = arith.addf %770, %771 : vector<1x32xf32>
    %cst_194 = arith.constant dense<0.000000e+00> : vector<1x8xf32>
    %773 = tpu.matmul %772, %463, %cst_194 {dimension_numbers = #tpu.dot_dimension_numbers<[1], [0], [0], [1], [0, 0, 1, 1], [], []>} : vector<1x32xf32>, vector<32x8xf32>, vector<1x8xf32> -> vector<1x8xf32>
    %cst_195 = arith.constant dense<0xFF800000> : vector<1xf32>
    %774 = vector.multi_reduction <maximumf>, %773, %cst_195 [1] : vector<1x8xf32> to vector<1xf32>
    %775 = vector.shape_cast %774 : vector<1xf32> to vector<1x1xf32>
    %776 = vector.broadcast %775 : vector<1x1xf32> to vector<1x8xf32>
    %777 = arith.subf %773, %776 : vector<1x8xf32>
    %778 = math.exp %777 : vector<1x8xf32>
    %cst_196 = arith.constant dense<0.000000e+00> : vector<1xf32>
    %779 = vector.multi_reduction <add>, %778, %cst_196 [1] : vector<1x8xf32> to vector<1xf32>
    %780 = vector.shape_cast %779 : vector<1xf32> to vector<1x1xf32>
    %781 = tpu.reciprocal %780 {approx = true} : vector<1x1xf32> -> vector<1x1xf32>
    %782 = vector.broadcast %781 : vector<1x1xf32> to vector<1x8xf32>
    %783 = arith.mulf %778, %782 : vector<1x8xf32>
    %cst_197 = arith.constant dense<0.000000e+00> : vector<1x32xf32>
    %784 = tpu.matmul %783, %462, %cst_197 {dimension_numbers = #tpu.dot_dimension_numbers<[1], [0], [0], [1], [0, 0, 1, 1], [], []>} : vector<1x8xf32>, vector<8x32xf32>, vector<1x32xf32> -> vector<1x32xf32>
    %cst_198 = arith.constant dense<0.000000e+00> : vector<1x32xf32>
    %785 = tpu.matmul %772, %11, %cst_198 {dimension_numbers = #tpu.dot_dimension_numbers<[1], [0], [0], [1], [0, 0, 1, 1], [], []>} : vector<1x32xf32>, vector<32x32xf32>, vector<1x32xf32> -> vector<1x32xf32>
    %cst_199 = arith.constant dense<0.000000e+00> : vector<1x32xf32>
    %786 = tpu.matmul %784, %12, %cst_199 {dimension_numbers = #tpu.dot_dimension_numbers<[1], [0], [0], [1], [0, 0, 1, 1], [], []>} : vector<1x32xf32>, vector<32x32xf32>, vector<1x32xf32> -> vector<1x32xf32>
    %787 = arith.addf %785, %786 : vector<1x32xf32>
    %788 = arith.addf %787, %25 : vector<1x32xf32>
    %789 = math.tanh %788 : vector<1x32xf32>
    %cst_200 = arith.constant dense<0.000000e+00> : vector<1x128xf32>
    %790 = tpu.matmul %789, %14, %cst_200 {dimension_numbers = #tpu.dot_dimension_numbers<[1], [0], [0], [1], [0, 0, 1, 1], [], []>} : vector<1x32xf32>, vector<32x128xf32>, vector<1x128xf32> -> vector<1x128xf32>
    %791 = arith.addf %790, %26 : vector<1x128xf32>
    %cst_201 = arith.constant dense<0xFF800000> : vector<1xf32>
    %792 = vector.multi_reduction <maximumf>, %791, %cst_201 [1] : vector<1x128xf32> to vector<1xf32>
    %793 = vector.shape_cast %792 : vector<1xf32> to vector<1x1xf32>
    %794 = vector.broadcast %793 : vector<1x1xf32> to vector<1x128xf32>
    %795 = arith.subf %791, %794 : vector<1x128xf32>
    %796 = math.exp %795 : vector<1x128xf32>
    %cst_202 = arith.constant dense<0.000000e+00> : vector<1xf32>
    %797 = vector.multi_reduction <add>, %796, %cst_202 [1] : vector<1x128xf32> to vector<1xf32>
    %798 = vector.shape_cast %797 : vector<1xf32> to vector<1x1xf32>
    %799 = tpu.reciprocal %798 {approx = true} : vector<1x1xf32> -> vector<1x1xf32>
    %800 = vector.broadcast %793 : vector<1x1xf32> to vector<1x128xf32>
    %801 = arith.cmpf oeq, %791, %800 : vector<1x128xf32>
    %c128_i32_203 = arith.constant 128 : i32
    %802 = vector.broadcast %c128_i32_203 : i32 to vector<1x128xi32>
    %803 = arith.select %801, %464, %802 : vector<1x128xi1>, vector<1x128xi32>
    %cst_204 = arith.constant dense<2147483647> : vector<1xi32>
    %804 = vector.multi_reduction <minsi>, %803, %cst_204 [1] : vector<1x128xi32> to vector<1xi32>
    %805 = vector.shape_cast %804 : vector<1xi32> to vector<1x1xi32>
    %806 = vector.broadcast %c4_i32_189 : i32 to vector<1x6xi32>
    %807 = arith.cmpi eq, %465, %806 : vector<1x6xi32>
    %808 = vector.shape_cast %805 : vector<1x1xi32> to vector<1x1xi32>
    %809 = vector.broadcast %808 : vector<1x1xi32> to vector<1x6xi32>
    %810 = arith.select %807, %809, %740 : vector<1x6xi1>, vector<1x6xi32>
    %811 = vector.shape_cast %799 : vector<1x1xf32> to vector<1x1xf32>
    %812 = vector.broadcast %811 : vector<1x1xf32> to vector<1x6xf32>
    %813 = arith.select %807, %812, %743 : vector<1x6xi1>, vector<1x6xf32>
    %814 = vector.broadcast %805 : vector<1x1xi32> to vector<1x128xi32>
    %815 = arith.cmpi eq, %464, %814 : vector<1x128xi32>
    %816 = arith.extui %815 : vector<1x128xi1> to vector<1x128xi32>
    %817 = arith.sitofp %816 : vector<1x128xi32> to vector<1x128xf32>
    %cst_205 = arith.constant dense<0.000000e+00> : vector<1x32xf32>
    %818 = tpu.matmul %817, %16, %cst_205 {dimension_numbers = #tpu.dot_dimension_numbers<[1], [0], [0], [1], [0, 0, 1, 1], [], []>} : vector<1x128xf32>, vector<128x32xf32>, vector<1x32xf32> -> vector<1x32xf32>
    %c5_i32_206 = arith.constant 5 : i32
    %cst_207 = arith.constant dense<0.000000e+00> : vector<1x96xf32>
    %819 = tpu.matmul %818, %5, %cst_207 {dimension_numbers = #tpu.dot_dimension_numbers<[1], [0], [0], [1], [0, 0, 1, 1], [], []>} : vector<1x32xf32>, vector<32x96xf32>, vector<1x96xf32> -> vector<1x96xf32>
    %820 = arith.addf %819, %22 : vector<1x96xf32>
    %cst_208 = arith.constant dense<0.000000e+00> : vector<1x96xf32>
    %821 = tpu.matmul %772, %8, %cst_208 {dimension_numbers = #tpu.dot_dimension_numbers<[1], [0], [0], [1], [0, 0, 1, 1], [], []>} : vector<1x32xf32>, vector<32x96xf32>, vector<1x96xf32> -> vector<1x96xf32>
    %822 = vector.extract_strided_slice %820 {offsets = [0, 0], sizes = [1, 64], strides = [1, 1]} : vector<1x96xf32> to vector<1x64xf32>
    %823 = vector.extract_strided_slice %821 {offsets = [0, 0], sizes = [1, 64], strides = [1, 1]} : vector<1x96xf32> to vector<1x64xf32>
    %824 = arith.addf %822, %823 : vector<1x64xf32>
    %825 = arith.negf %824 : vector<1x64xf32>
    %826 = math.exp %825 : vector<1x64xf32>
    %cst_209 = arith.constant 1.000000e+00 : f32
    %827 = vector.broadcast %cst_209 : f32 to vector<1x64xf32>
    %828 = arith.addf %827, %826 : vector<1x64xf32>
    %829 = arith.divf %827, %828 : vector<1x64xf32>
    %830 = vector.extract_strided_slice %829 {offsets = [0, 0], sizes = [1, 32], strides = [1, 1]} : vector<1x64xf32> to vector<1x32xf32>
    %831 = vector.extract_strided_slice %829 {offsets = [0, 32], sizes = [1, 32], strides = [1, 1]} : vector<1x64xf32> to vector<1x32xf32>
    %832 = vector.extract_strided_slice %820 {offsets = [0, 64], sizes = [1, 32], strides = [1, 1]} : vector<1x96xf32> to vector<1x32xf32>
    %833 = vector.extract_strided_slice %821 {offsets = [0, 64], sizes = [1, 32], strides = [1, 1]} : vector<1x96xf32> to vector<1x32xf32>
    %834 = arith.addf %833, %23 : vector<1x32xf32>
    %835 = arith.mulf %830, %834 : vector<1x32xf32>
    %836 = arith.addf %832, %835 : vector<1x32xf32>
    %837 = math.tanh %836 : vector<1x32xf32>
    %cst_210 = arith.constant 1.000000e+00 : f32
    %838 = vector.broadcast %cst_210 : f32 to vector<1x32xf32>
    %839 = arith.subf %838, %831 : vector<1x32xf32>
    %840 = arith.mulf %839, %837 : vector<1x32xf32>
    %841 = arith.mulf %831, %772 : vector<1x32xf32>
    %842 = arith.addf %840, %841 : vector<1x32xf32>
    %cst_211 = arith.constant dense<0.000000e+00> : vector<1x8xf32>
    %843 = tpu.matmul %842, %463, %cst_211 {dimension_numbers = #tpu.dot_dimension_numbers<[1], [0], [0], [1], [0, 0, 1, 1], [], []>} : vector<1x32xf32>, vector<32x8xf32>, vector<1x8xf32> -> vector<1x8xf32>
    %cst_212 = arith.constant dense<0xFF800000> : vector<1xf32>
    %844 = vector.multi_reduction <maximumf>, %843, %cst_212 [1] : vector<1x8xf32> to vector<1xf32>
    %845 = vector.shape_cast %844 : vector<1xf32> to vector<1x1xf32>
    %846 = vector.broadcast %845 : vector<1x1xf32> to vector<1x8xf32>
    %847 = arith.subf %843, %846 : vector<1x8xf32>
    %848 = math.exp %847 : vector<1x8xf32>
    %cst_213 = arith.constant dense<0.000000e+00> : vector<1xf32>
    %849 = vector.multi_reduction <add>, %848, %cst_213 [1] : vector<1x8xf32> to vector<1xf32>
    %850 = vector.shape_cast %849 : vector<1xf32> to vector<1x1xf32>
    %851 = tpu.reciprocal %850 {approx = true} : vector<1x1xf32> -> vector<1x1xf32>
    %852 = vector.broadcast %851 : vector<1x1xf32> to vector<1x8xf32>
    %853 = arith.mulf %848, %852 : vector<1x8xf32>
    %cst_214 = arith.constant dense<0.000000e+00> : vector<1x32xf32>
    %854 = tpu.matmul %853, %462, %cst_214 {dimension_numbers = #tpu.dot_dimension_numbers<[1], [0], [0], [1], [0, 0, 1, 1], [], []>} : vector<1x8xf32>, vector<8x32xf32>, vector<1x32xf32> -> vector<1x32xf32>
    %cst_215 = arith.constant dense<0.000000e+00> : vector<1x32xf32>
    %855 = tpu.matmul %842, %11, %cst_215 {dimension_numbers = #tpu.dot_dimension_numbers<[1], [0], [0], [1], [0, 0, 1, 1], [], []>} : vector<1x32xf32>, vector<32x32xf32>, vector<1x32xf32> -> vector<1x32xf32>
    %cst_216 = arith.constant dense<0.000000e+00> : vector<1x32xf32>
    %856 = tpu.matmul %854, %12, %cst_216 {dimension_numbers = #tpu.dot_dimension_numbers<[1], [0], [0], [1], [0, 0, 1, 1], [], []>} : vector<1x32xf32>, vector<32x32xf32>, vector<1x32xf32> -> vector<1x32xf32>
    %857 = arith.addf %855, %856 : vector<1x32xf32>
    %858 = arith.addf %857, %25 : vector<1x32xf32>
    %859 = math.tanh %858 : vector<1x32xf32>
    %cst_217 = arith.constant dense<0.000000e+00> : vector<1x128xf32>
    %860 = tpu.matmul %859, %14, %cst_217 {dimension_numbers = #tpu.dot_dimension_numbers<[1], [0], [0], [1], [0, 0, 1, 1], [], []>} : vector<1x32xf32>, vector<32x128xf32>, vector<1x128xf32> -> vector<1x128xf32>
    %861 = arith.addf %860, %26 : vector<1x128xf32>
    %cst_218 = arith.constant dense<0xFF800000> : vector<1xf32>
    %862 = vector.multi_reduction <maximumf>, %861, %cst_218 [1] : vector<1x128xf32> to vector<1xf32>
    %863 = vector.shape_cast %862 : vector<1xf32> to vector<1x1xf32>
    %864 = vector.broadcast %863 : vector<1x1xf32> to vector<1x128xf32>
    %865 = arith.subf %861, %864 : vector<1x128xf32>
    %866 = math.exp %865 : vector<1x128xf32>
    %cst_219 = arith.constant dense<0.000000e+00> : vector<1xf32>
    %867 = vector.multi_reduction <add>, %866, %cst_219 [1] : vector<1x128xf32> to vector<1xf32>
    %868 = vector.shape_cast %867 : vector<1xf32> to vector<1x1xf32>
    %869 = tpu.reciprocal %868 {approx = true} : vector<1x1xf32> -> vector<1x1xf32>
    %870 = vector.broadcast %863 : vector<1x1xf32> to vector<1x128xf32>
    %871 = arith.cmpf oeq, %861, %870 : vector<1x128xf32>
    %c128_i32_220 = arith.constant 128 : i32
    %872 = vector.broadcast %c128_i32_220 : i32 to vector<1x128xi32>
    %873 = arith.select %871, %464, %872 : vector<1x128xi1>, vector<1x128xi32>
    %cst_221 = arith.constant dense<2147483647> : vector<1xi32>
    %874 = vector.multi_reduction <minsi>, %873, %cst_221 [1] : vector<1x128xi32> to vector<1xi32>
    %875 = vector.shape_cast %874 : vector<1xi32> to vector<1x1xi32>
    %876 = vector.broadcast %c5_i32_206 : i32 to vector<1x6xi32>
    %877 = arith.cmpi eq, %465, %876 : vector<1x6xi32>
    %878 = vector.shape_cast %875 : vector<1x1xi32> to vector<1x1xi32>
    %879 = vector.broadcast %878 : vector<1x1xi32> to vector<1x6xi32>
    %880 = arith.select %877, %879, %810 : vector<1x6xi1>, vector<1x6xi32>
    %881 = vector.shape_cast %869 : vector<1x1xf32> to vector<1x1xf32>
    %882 = vector.broadcast %881 : vector<1x1xf32> to vector<1x6xf32>
    %883 = arith.select %877, %882, %813 : vector<1x6xi1>, vector<1x6xf32>
    %884 = vector.broadcast %875 : vector<1x1xi32> to vector<1x128xi32>
    %885 = arith.cmpi eq, %464, %884 : vector<1x128xi32>
    %886 = arith.extui %885 : vector<1x128xi1> to vector<1x128xi32>
    %887 = arith.sitofp %886 : vector<1x128xi32> to vector<1x128xf32>
    %cst_222 = arith.constant dense<0.000000e+00> : vector<1x32xf32>
    %888 = tpu.matmul %887, %16, %cst_222 {dimension_numbers = #tpu.dot_dimension_numbers<[1], [0], [0], [1], [0, 0, 1, 1], [], []>} : vector<1x128xf32>, vector<128x32xf32>, vector<1x32xf32> -> vector<1x32xf32>
    %c6_i32_223 = arith.constant 6 : i32
    %c0_224 = arith.constant 0 : index
    %c0_225 = arith.constant 0 : index
    %889 = vector.load %arg7[%c0_224, %c0_225] : memref<1x6xi32, #tpu.memory_space<vmem>>, vector<1x6xi32>
    tpu.vector_store %arg7[%c0_224, %c0_225], %880 {strides = array<i32>} : memref<1x6xi32, #tpu.memory_space<vmem>>, vector<1x6xi32>,
    %c0_226 = arith.constant 0 : index
    %c0_227 = arith.constant 0 : index
    %890 = vector.load %arg8[%c0_226, %c0_227] : memref<1x6xf32, #tpu.memory_space<vmem>>, vector<1x6xf32>
    tpu.vector_store %arg8[%c0_226, %c0_227], %883 {strides = array<i32>} : memref<1x6xf32, #tpu.memory_space<vmem>>, vector<1x6xf32>,
    return
  }
}

</mosaic_0001>

<bundles_post_ra>
// kernel: tpu_custom_call.1
= control target key start
LH: loop header
LB: loop body
LE: loop exit
PB: predicated region body
PF: predicated region fallthrough
CT: control target
= control target key end

     0   :  { %14 = vsyncpa [#allocation7], 0  ;;  %v7863_v1 = vmov 0.0|0.0   ;;  %vm7864_vm0 = vmmov 0   ;;  %v7865_v2 = vmov 0.0   ;;  %s7866_s9 = smov 96   ;;  %s8992_s0 = inlined_call_operand.vmem [shape: f32[8,32], index: 0, kind: input, shape index: {}]   ;;  %s8993_s1 = inlined_call_operand.vmem [shape: bf16[128,32], index: 1, kind: input, shape index: {}]   ;;  %s8994_s2 = inlined_call_operand.vmem [shape: bf16[192,96], index: 2, kind: input, shape index: {}]   ;;  %s8995_s3 = inlined_call_operand.vmem [shape: bf16[64,32], index: 3, kind: input, shape index: {}]   ;;  %s8996_s4 = inlined_call_operand.vmem [shape: bf16[32,128], index: 4, kind: input, shape index: {}]   ;;  %s8997_s5 = inlined_call_operand.vmem [shape: f32[3,128], index: 5, kind: input, shape index: {}]   ;;  %s8998_s6 = inlined_call_operand.vmem [shape: f32[2,128], index: 6, kind: input, shape index: {}]   ;;  %s8999_s7 = inlined_call_operand.hbm [shape: s32[1,6], index: 7, kind: output, shape index: {0}]   ;;  %s9000_s8 = inlined_call_operand.hbm [shape: f32[1,6], index: 8, kind: output, shape index: {1}]  }
   0x1   :  { %v5957_v0 = vld [vmem:[%s8994_s2] sm:$0xff]   ;;  %7194 = vmatprep.subr.bf16.mxu0 %v7863_v1  ;;  %6439 = vmatprep.mubr.msk.f32.mxu0 %vm7864_vm0, %v7865_v2 }
   0x2   :  { %v7925_v3 = vld [vmem:[%s8997_s5] sm:$0x7]  ;;  %7196 = vmatpush3.bf16.msra.mxu0 %v5957_v0 }
   0x3   :  { %374 = vrot.lane.b32.xlu0 %v7925_v3, %s7866_s9 }
   0x4   :  { %15 = vsyncpa [#allocation9], 0  ;;  %7197 = vmatprep.subr.bf16.mxu0 %v7863_v1  ;;  %v6060_v4 = vld [vmem:[%s8994_s2 + $0x8] sm:$0xff]   ;;  %7200 = vmatprep.subr.bf16.mxu1 %v7863_v1  ;;  %v30_v5 = vld [vmem:[%s8992_s0] sm:$0xff]  ;;  %vm141_vm1 = vcmask 261120   ;;  %v137_v8 = vlaneseq  ;;  %vm215_vm2 = vcmask 785408  }
   0x5   :  { %6450 = vmatprep.mubr.msk.f32.mxu1 %vm7864_vm0, %v7865_v2  ;;  %v7943_v6 = vld [vmem:[%s8994_s2 + $0x30] sm:$0xff]   ;;  %v7953_v7 = vld [vmem:[%s8994_s2 + $0x38] sm:$0xff]   ;;  %s7867_s0 = smov 64   ;;  %vm401_vm3 = vcmask 253952   ;;  %vm2241_vm4 = vcmask 57344   ;;  %vm2253_vm5 = vcmask 64512  }
   0x6   :  { %7199 = vmatpush3.bf16.msra.mxu0 %v6060_v4  ;;  %v138_v9 = vshrl.u32 %v137_v8, 7  ;;  %v6061_v29 = vld [vmem:[%s8994_s2 + $0x10] sm:$0xff]   ;;  %v6062_v30 = vld [vmem:[%s8994_s2 + $0x18] sm:$0xff]   ;;  %vm2548_vm6 = vcmask 1040384  }
   0x7   :  { %7206 = vmatprep.subr.bf16.mxu0 %v7863_v1  ;;  %7202 = vmatpush3.bf16.msra.mxu1 %v6061_v29 }
   0x8   :  { %v139_v10 = vsub.s32 0, %v138_v9  ;;  %7203 = vmatprep.subr.bf16.mxu1 %v7863_v1  ;;  %v219_v37 = vsub.s32 1, %v138_v9 }
   0x9   :  { %6440 = vmatmul.mubr.msk.f32.vlgmr.msra.gmra.mrb[0].mxu0 %vm141_vm1, %v30_v5 }
   0xa   :  { %7208 = vmatpush3.bf16.msra.mxu0 %v7943_v6  ;;  %6461 = vmatprep.mubr.msk.f32.mxu0 %vm7864_vm0, %v7865_v2  ;;  %v140_v11 = vrot.slane %v7925_v3, %v139_v10  ;;  %v220_v38 = vrot.slane %v7925_v3, %v219_v37 }
   0xb   :  { %7209 = vmatprep.subr.bf16.mxu0 %v7863_v1  ;;  %7205 = vmatpush3.bf16.msra.mxu1 %v6062_v30 }
   0xc   :  { %7212 = vmatprep.subr.bf16.mxu1 %v7863_v1 }
   0xe   :  { %7211 = vmatpush3.bf16.msra.mxu0 %v7953_v7  ;;  %6451 = vmatmul.mubr.msk.f32.vlgmr.msra.gmra.mrb[0].mxu1 %vm141_vm1, %v30_v5 }
   0xf   :  { %7218 = vmatprep.subr.bf16.mxu0 %v7863_v1  ;;  %7214 = vmatpush3.bf16.msra.mxu1 %v7943_v6 }
  0x10   :  { %7215 = vmatprep.subr.bf16.mxu1 %v7863_v1  ;;  %6472 = vmatprep.mubr.msk.f32.mxu1 %vm7864_vm0, %v7865_v2 }
  0x11   :  { %6462 = vmatmul.mubr.f32.vlgmr.msra.gmra.mrb[2].mxu0 %v7865_v2 }
  0x12   :  { %7220 = vmatpush3.bf16.msra.mxu0 %v7943_v6  ;;  %6483 = vmatprep.mubr.msk.f32.mxu0 %vm7864_vm0, %v7865_v2 }
  0x13   :  { %7221 = vmatprep.subr.bf16.mxu0 %v7863_v1  ;;  %7217 = vmatpush3.bf16.msra.mxu1 %v7953_v7 }
  0x14   :  { %7224 = vmatprep.subr.bf16.mxu1 %v7863_v1 }
  0x16   :  { %7223 = vmatpush3.bf16.msra.mxu0 %v7953_v7 }
  0x17   :  { %7230 = vmatprep.subr.bf16.mxu0 %v7863_v1 }
  0x75   :  { %v7967_v15 = vpop.permute.xlu0 %374 }
  0xdc   :  { %v211_v12 = vpop.f32.mrb[0].mxu0 }
  0xdd   :  { %v212_v13 = vadd.f32 %v211_v12, %v140_v11  ;;  %v6441_v14 = vpop.f32.mrb[1].mxu0 }
  0xdf   :  { %216 = vst.msk [vmem:[#allocation2] sm:$0xff] %vm215_vm2, %v212_v13 }
  0xe1   :  { %v287_v39 = vpop.f32.mrb[0].mxu1 }
  0xe2   :  { %v288_v40 = vadd.f32 %v287_v39, %v220_v38  ;;  %v6452_v41 = vpop.f32.mrb[1].mxu1 }
  0xe4   :  { %v362_v16 = vpop.f32.mrb[2].mxu0  ;;  %291 = vst.msk [vmem:[#allocation3] sm:$0xff] %vm215_vm2, %v288_v40 }
  0xe5   :  { %v377_v17 = vadd.f32 %v7967_v15, %v362_v16  ;;  %v6463_v18 = vpop.f32.mrb[3].mxu0 }
  0xe6   :  { %v292_v19 = vld [vmem:[#allocation2] sm:$0x1]  ;;  %v403_v46 = vld [vmem:[#allocation2 + $0x1] sm:$0x1]  ;;  %v508_v5 = vld [vmem:[#allocation2 + $0x2] sm:$0x1] }
  0xe7   :  { %379 = vrot.lane.b32.xlu0 %v377_v17, %s7867_s0  ;;  %v366_v20 = vadd.f32 %v362_v16, %v292_v19  ;;  %v613_v29 = vld [vmem:[#allocation2 + $0x3] sm:$0x1] }
  0xe9   :  { %v5862_v21 = vmul.f32 -1.442695, %v366_v20 }
  0xeb   :  { %7610 = vpow2.f32 %v5862_v21 }
  0xf5   :  { %v7611_v22 = vpop.eup %7610 }
  0xf6   :  { %v370_v23 = vadd.f32 1.0, %v7611_v22 }
  0xf8   :  { %7612 = vrcp.f32 %v370_v23 }
 0x102   :  { %v7613_v24 = vpop.eup %7612 }
 0x103   :  { %v389_v32 = vsub.f32 1.0, %v7613_v24  ;;  %v395_v34 = vmul.f32 0.0, %v7613_v24 }
 0x159   :  { %v380_v25 = vpop.permute.xlu0 %379 }
 0x15a   :  { %v382_v26 = vmul.f32 %v7613_v24, %v380_v25 }
 0x15c   :  { %384 = vrot.lane.b32.xlu1 %v382_v26, %s7867_s0 }
 0x1ce   :  { %v385_v27 = vpop.permute.xlu1 %384 }
 0x1cf   :  { %v387_v28 = vadd.f32 %v385_v27, %v292_v19 }
 0x1d1   :  { %7614 = vtanh.f32 %v387_v28 }
 0x1db   :  { %v7615_v31 = vpop.eup %7614 }
 0x1dc   :  { %391 = vrot.lane.b32.xlu1 %v7615_v31, %s7866_s9 }
 0x24e   :  { %v392_v33 = vpop.permute.xlu1 %391 }
 0x24f   :  { %v394_v35 = vmul.f32 %v392_v33, %v389_v32 }
 0x251   :  { %v396_v36 = vadd.f32 %v395_v34, %v394_v35 }
 0x253   :  { %398 = vrot.lane.b32.xlu0 %v396_v36, %s7866_s9 }
 0x2c5   :  { %v399_v42 = vpop.permute.xlu0 %398 }
 0x2c6   :  { %402 = vst.msk [vmem:[#allocation4] sm:$0x1] %vm401_vm3, %v399_v42  ;;  %6473 = vmatmul.mubr.msk.f32.vlgmr.msra.gmra.mrb[2].mxu1 %vm141_vm1, %v399_v42 }
 0x2c7   :  { %7226 = vmatpush3.bf16.msra.mxu1 %v7943_v6  ;;  %6494 = vmatprep.mubr.msk.f32.mxu1 %vm7864_vm0, %v7865_v2 }
 0x2c8   :  { %7227 = vmatprep.subr.bf16.mxu1 %v7863_v1 }
 0x2cb   :  { %7229 = vmatpush3.bf16.msra.mxu1 %v7953_v7 }
 0x2cc   :  { %7236 = vmatprep.subr.bf16.mxu1 %v7863_v1 }
 0x399   :  { %v472_v43 = vpop.f32.mrb[2].mxu1 }
 0x39a   :  { %v483_v44 = vadd.f32 %v472_v43, %v7967_v15  ;;  %v6474_v45 = vpop.f32.mrb[3].mxu1  ;;  %v476_v47 = vadd.f32 %v472_v43, %v403_v46 }
 0x39c   :  { %485 = vrot.lane.b32.xlu1 %v483_v44, %s7867_s0  ;;  %v5864_v48 = vmul.f32 -1.442695, %v476_v47 }
 0x39e   :  { %7616 = vpow2.f32 %v5864_v48 }
 0x3a8   :  { %v7617_v49 = vpop.eup %7616 }
 0x3a9   :  { %v480_v50 = vadd.f32 1.0, %v7617_v49  ;;  %v718_v49 = vld [vmem:[#allocation2 + $0x4] sm:$0x1] }
 0x3ab   :  { %7618 = vrcp.f32 %v480_v50 }
 0x3b5   :  { %v7619_v51 = vpop.eup %7618 }
 0x3b6   :  { %v495_v57 = vsub.f32 1.0, %v7619_v51  ;;  %v501_v59 = vmul.f32 %v7619_v51, %v396_v36 }
 0x40e   :  { %v486_v52 = vpop.permute.xlu1 %485 }
 0x40f   :  { %v488_v53 = vmul.f32 %v7619_v51, %v486_v52 }
 0x411   :  { %490 = vrot.lane.b32.xlu0 %v488_v53, %s7867_s0 }
 0x483   :  { %v491_v54 = vpop.permute.xlu0 %490 }
 0x484   :  { %v493_v55 = vadd.f32 %v491_v54, %v403_v46 }
 0x486   :  { %7620 = vtanh.f32 %v493_v55 }
 0x490   :  { %v7621_v56 = vpop.eup %7620 }
 0x491   :  { %497 = vrot.lane.b32.xlu1 %v7621_v56, %s7866_s9 }
 0x503   :  { %v498_v58 = vpop.permute.xlu1 %497 }
 0x504   :  { %v500_v60 = vmul.f32 %v498_v58, %v495_v57 }
 0x506   :  { %v502_v61 = vadd.f32 %v501_v59, %v500_v60 }
 0x508   :  { %504 = vrot.lane.b32.xlu0 %v502_v61, %s7866_s9 }
 0x57a   :  { %v505_v62 = vpop.permute.xlu0 %504 }
 0x57b   :  { %507 = vst.msk [vmem:[#allocation4 + $0x1] sm:$0x1] %vm401_vm3, %v505_v62  ;;  %6484 = vmatmul.mubr.msk.f32.vlgmr.msra.gmra.mrb[4].mxu0 %vm141_vm1, %v505_v62 }
 0x57c   :  { %7232 = vmatpush3.bf16.msra.mxu0 %v7943_v6  ;;  %6505 = vmatprep.mubr.msk.f32.mxu0 %vm7864_vm0, %v7865_v2 }
 0x57d   :  { %7233 = vmatprep.subr.bf16.mxu0 %v7863_v1 }
 0x580   :  { %7235 = vmatpush3.bf16.msra.mxu0 %v7953_v7 }
 0x581   :  { %7242 = vmatprep.subr.bf16.mxu0 %v7863_v1 }
 0x64e   :  { %v577_v63 = vpop.f32.mrb[4].mxu0 }
 0x64f   :  { %v588_v0 = vadd.f32 %v577_v63, %v7967_v15  ;;  %v6485_v4 = vpop.f32.mrb[5].mxu0  ;;  %v581_v9 = vadd.f32 %v577_v63, %v508_v5 }
 0x651   :  { %590 = vrot.lane.b32.xlu1 %v588_v0, %s7867_s0  ;;  %v5866_v10 = vmul.f32 -1.442695, %v581_v9 }
 0x653   :  { %7622 = vpow2.f32 %v5866_v10 }
 0x65d   :  { %v7623_v11 = vpop.eup %7622 }
 0x65e   :  { %v585_v12 = vadd.f32 1.0, %v7623_v11  ;;  %v823_v11 = vld [vmem:[#allocation2 + $0x5] sm:$0x1] }
 0x660   :  { %7624 = vrcp.f32 %v585_v12 }
 0x66a   :  { %v7625_v13 = vpop.eup %7624 }
 0x66b   :  { %v600_v20 = vsub.f32 1.0, %v7625_v13  ;;  %v606_v22 = vmul.f32 %v7625_v13, %v502_v61 }
 0x6c3   :  { %v591_v14 = vpop.permute.xlu1 %590 }
 0x6c4   :  { %v593_v16 = vmul.f32 %v7625_v13, %v591_v14 }
 0x6c6   :  { %595 = vrot.lane.b32.xlu0 %v593_v16, %s7867_s0 }
 0x738   :  { %v596_v17 = vpop.permute.xlu0 %595 }
 0x739   :  { %v598_v18 = vadd.f32 %v596_v17, %v508_v5 }
 0x73b   :  { %7626 = vtanh.f32 %v598_v18 }
 0x745   :  { %v7627_v19 = vpop.eup %7626 }
 0x746   :  { %602 = vrot.lane.b32.xlu1 %v7627_v19, %s7866_s9 }
 0x7b8   :  { %v603_v21 = vpop.permute.xlu1 %602 }
 0x7b9   :  { %v605_v23 = vmul.f32 %v603_v21, %v600_v20 }
 0x7bb   :  { %v607_v24 = vadd.f32 %v606_v22, %v605_v23  ;;  %v1216_v23 = vrot.slane %v7925_v3, 1  ;;  %v8072_v3 = vld [vmem:[%s8994_s2 + $0x48] sm:$0xff]  }
 0x7bd   :  { %609 = vrot.lane.b32.xlu0 %v607_v24, %s7866_s9 }
 0x82f   :  { %v610_v25 = vpop.permute.xlu0 %609 }
 0x830   :  { %612 = vst.msk [vmem:[#allocation4 + $0x2] sm:$0x1] %vm401_vm3, %v610_v25  ;;  %6495 = vmatmul.mubr.msk.f32.vlgmr.msra.gmra.mrb[4].mxu1 %vm141_vm1, %v610_v25 }
 0x831   :  { %7238 = vmatpush3.bf16.msra.mxu1 %v7943_v6  ;;  %6516 = vmatprep.mubr.msk.f32.mxu1 %vm7864_vm0, %v7865_v2 }
 0x832   :  { %7239 = vmatprep.subr.bf16.mxu1 %v7863_v1 }
 0x835   :  { %7241 = vmatpush3.bf16.msra.mxu1 %v7953_v7 }
 0x836   :  { %7248 = vmatprep.subr.bf16.mxu1 %v7863_v1 }
 0x903   :  { %v682_v26 = vpop.f32.mrb[4].mxu1 }
 0x904   :  { %v693_v27 = vadd.f32 %v682_v26, %v7967_v15  ;;  %v6496_v28 = vpop.f32.mrb[5].mxu1  ;;  %v686_v30 = vadd.f32 %v682_v26, %v613_v29 }
 0x906   :  { %695 = vrot.lane.b32.xlu1 %v693_v27, %s7867_s0  ;;  %v5868_v31 = vmul.f32 -1.442695, %v686_v30  ;;  %v8061_v27 = vld [vmem:[%s8994_s2 + $0x40] sm:$0xff]  }
 0x908   :  { %7628 = vpow2.f32 %v5868_v31 }
 0x912   :  { %v7629_v32 = vpop.eup %7628 }
 0x913   :  { %v690_v33 = vadd.f32 1.0, %v7629_v32 }
 0x915   :  { %7630 = vrcp.f32 %v690_v33 }
 0x91f   :  { %v7631_v34 = vpop.eup %7630 }
 0x920   :  { %v705_v40 = vsub.f32 1.0, %v7631_v34  ;;  %v711_v42 = vmul.f32 %v7631_v34, %v607_v24 }
 0x978   :  { %v696_v35 = vpop.permute.xlu1 %695 }
 0x979   :  { %v698_v36 = vmul.f32 %v7631_v34, %v696_v35 }
 0x97b   :  { %700 = vrot.lane.b32.xlu0 %v698_v36, %s7867_s0  ;;  %v928_v36 = vld [vmem:[#allocation2 + $0x6] sm:$0x1] }
 0x9ed   :  { %v701_v37 = vpop.permute.xlu0 %700 }
 0x9ee   :  { %v703_v38 = vadd.f32 %v701_v37, %v613_v29 }
 0x9f0   :  { %7632 = vtanh.f32 %v703_v38 }
 0x9fa   :  { %v7633_v39 = vpop.eup %7632 }
 0x9fb   :  { %707 = vrot.lane.b32.xlu1 %v7633_v39, %s7866_s9  ;;  %v1138_v39 = vld [vmem:[#allocation3 + $0x7] sm:$0x1] }
 0xa6d   :  { %v708_v41 = vpop.permute.xlu1 %707 }
 0xa6e   :  { %v710_v43 = vmul.f32 %v708_v41, %v705_v40 }
 0xa70   :  { %v712_v44 = vadd.f32 %v711_v42, %v710_v43 }
 0xa72   :  { %714 = vrot.lane.b32.xlu0 %v712_v44, %s7866_s9 }
 0xae4   :  { %v715_v45 = vpop.permute.xlu0 %714 }
 0xae5   :  { %717 = vst.msk [vmem:[#allocation4 + $0x3] sm:$0x1] %vm401_vm3, %v715_v45  ;;  %6506 = vmatmul.mubr.msk.f32.vlgmr.msra.gmra.mrb[6].mxu0 %vm141_vm1, %v715_v45 }
 0xae6   :  { %7244 = vmatpush3.bf16.msra.mxu0 %v7943_v6  ;;  %6527 = vmatprep.mubr.msk.f32.mxu0 %vm7864_vm0, %v7865_v2 }
 0xae7   :  { %7245 = vmatprep.subr.bf16.mxu0 %v7863_v1 }
 0xaea   :  { %7247 = vmatpush3.bf16.msra.mxu0 %v7953_v7 }
 0xaeb   :  { %7254 = vmatprep.subr.bf16.mxu0 %v7863_v1 }
 0xbb8   :  { %v787_v46 = vpop.f32.mrb[6].mxu0 }
 0xbb9   :  { %v798_v47 = vadd.f32 %v787_v46, %v7967_v15  ;;  %v6507_v48 = vpop.f32.mrb[7].mxu0  ;;  %v791_v50 = vadd.f32 %v787_v46, %v718_v49 }
 0xbbb   :  { %800 = vrot.lane.b32.xlu1 %v798_v47, %s7867_s0  ;;  %v5870_v51 = vmul.f32 -1.442695, %v791_v50 }
 0xbbd   :  { %7634 = vpow2.f32 %v5870_v51 }
 0xbc7   :  { %v7635_v52 = vpop.eup %7634 }
 0xbc8   :  { %v795_v53 = vadd.f32 1.0, %v7635_v52 }
 0xbca   :  { %7636 = vrcp.f32 %v795_v53 }
 0xbd4   :  { %v7637_v54 = vpop.eup %7636 }
 0xbd5   :  { %v810_v60 = vsub.f32 1.0, %v7637_v54  ;;  %v816_v62 = vmul.f32 %v7637_v54, %v712_v44 }
 0xc2d   :  { %v801_v55 = vpop.permute.xlu1 %800 }
 0xc2e   :  { %v803_v56 = vmul.f32 %v7637_v54, %v801_v55 }
 0xc30   :  { %805 = vrot.lane.b32.xlu0 %v803_v56, %s7867_s0 }
 0xca2   :  { %v806_v57 = vpop.permute.xlu0 %805 }
 0xca3   :  { %v808_v58 = vadd.f32 %v806_v57, %v718_v49 }
 0xca5   :  { %7638 = vtanh.f32 %v808_v58 }
 0xcaf   :  { %v7639_v59 = vpop.eup %7638 }
 0xcb0   :  { %812 = vrot.lane.b32.xlu1 %v7639_v59, %s7866_s9 }
 0xd22   :  { %v813_v61 = vpop.permute.xlu1 %812 }
 0xd23   :  { %v815_v63 = vmul.f32 %v813_v61, %v810_v60 }
 0xd25   :  { %v817_v0 = vadd.f32 %v816_v62, %v815_v63 }
 0xd27   :  { %819 = vrot.lane.b32.xlu0 %v817_v0, %s7866_s9 }
 0xd99   :  { %v820_v4 = vpop.permute.xlu0 %819 }
 0xd9a   :  { %822 = vst.msk [vmem:[#allocation4 + $0x4] sm:$0x1] %vm401_vm3, %v820_v4  ;;  %6517 = vmatmul.mubr.msk.f32.vlgmr.msra.gmra.mrb[6].mxu1 %vm141_vm1, %v820_v4 }
 0xd9b   :  { %7250 = vmatpush3.bf16.msra.mxu1 %v7943_v6  ;;  %6538 = vmatprep.mubr.msk.f32.mxu1 %vm7864_vm0, %v7865_v2 }
 0xd9c   :  { %7251 = vmatprep.subr.bf16.mxu1 %v7863_v1 }
 0xd9f   :  { %7253 = vmatpush3.bf16.msra.mxu1 %v7953_v7 }
 0xda0   :  { %7260 = vmatprep.subr.bf16.mxu1 %v7863_v1 }
 0xe6d   :  { %v892_v5 = vpop.f32.mrb[6].mxu1 }
 0xe6e   :  { %v903_v9 = vadd.f32 %v892_v5, %v7967_v15  ;;  %v6518_v10 = vpop.f32.mrb[7].mxu1  ;;  %v896_v12 = vadd.f32 %v892_v5, %v823_v11 }
 0xe70   :  { %905 = vrot.lane.b32.xlu1 %v903_v9, %s7867_s0  ;;  %v5872_v13 = vmul.f32 -1.442695, %v896_v12 }
 0xe72   :  { %7640 = vpow2.f32 %v5872_v13 }
 0xe7c   :  { %v7641_v6 = vpop.eup %7640 }
 0xe7d   :  { %v900_v14 = vadd.f32 1.0, %v7641_v6 }
 0xe7f   :  { %7642 = vrcp.f32 %v900_v14 }
 0xe89   :  { %v7643_v16 = vpop.eup %7642 }
 0xe8a   :  { %v915_v21 = vsub.f32 1.0, %v7643_v16  ;;  %v921_v24 = vmul.f32 %v7643_v16, %v817_v0 }
 0xee2   :  { %v906_v17 = vpop.permute.xlu1 %905 }
 0xee3   :  { %v908_v18 = vmul.f32 %v7643_v16, %v906_v17  ;;  %v1245_v17 = vld [vmem:[#allocation3 + $0x6] sm:$0x1] }
 0xee5   :  { %910 = vrot.lane.b32.xlu0 %v908_v18, %s7867_s0 }
 0xf57   :  { %v911_v7 = vpop.permute.xlu0 %910 }
 0xf58   :  { %v913_v19 = vadd.f32 %v911_v7, %v823_v11 }
 0xf5a   :  { %7644 = vtanh.f32 %v913_v19 }
 0xf64   :  { %v7645_v20 = vpop.eup %7644 }
 0xf65   :  { %917 = vrot.lane.b32.xlu1 %v7645_v20, %s7866_s9 }
 0xf69   :  { %1217 = vrot.lane.b32.xlu1 %v1216_v23, %s7866_s9 }
 0xfd7   :  { %v918_v22 = vpop.permute.xlu1 %917 }
 0xfd8   :  { %v920_v25 = vmul.f32 %v918_v22, %v915_v21 }
 0xfda   :  { %v922_v26 = vadd.f32 %v921_v24, %v920_v25 }
 0xfdb   :  { %v8085_v32 = vpop.permute.xlu1 %1217 }
 0xfdc   :  { %924 = vrot.lane.b32.xlu0 %v922_v26, %s7866_s9 }
0x104e   :  { %v925_v28 = vpop.permute.xlu0 %924 }
0x104f   :  { %927 = vst.msk [vmem:[#allocation4 + $0x5] sm:$0x1] %vm401_vm3, %v925_v28  ;;  %6528 = vmatmul.mubr.msk.f32.vlgmr.msra.gmra.mrb[8].mxu0 %vm141_vm1, %v925_v28 }
0x1050   :  { %7256 = vmatpush3.bf16.msra.mxu0 %v8061_v27  ;;  %6549 = vmatprep.mubr.msk.f32.mxu0 %vm7864_vm0, %v7865_v2 }
0x1051   :  { %7257 = vmatprep.subr.bf16.mxu0 %v7863_v1 }
0x1054   :  { %7259 = vmatpush3.bf16.msra.mxu0 %v8072_v3 }
0x1055   :  { %7266 = vmatprep.subr.bf16.mxu0 %v7863_v1 }
0x1057   :  { %6550 = vmatmul.mubr.f32.vlgmr.msra.gmra.mrb[10].mxu0 %v7865_v2 }
0x1058   :  { %7268 = vmatpush3.bf16.msra.mxu0 %v8061_v27  ;;  %6571 = vmatprep.mubr.msk.f32.mxu0 %vm7864_vm0, %v7865_v2 }
0x1059   :  { %7269 = vmatprep.subr.bf16.mxu0 %v7863_v1 }
0x105c   :  { %7271 = vmatpush3.bf16.msra.mxu0 %v8072_v3 }
0x105d   :  { %7278 = vmatprep.subr.bf16.mxu0 %v7863_v1 }
0x1122   :  { %v997_v29 = vpop.f32.mrb[8].mxu0 }
0x1123   :  { %v1008_v30 = vadd.f32 %v997_v29, %v7967_v15  ;;  %v6529_v31 = vpop.f32.mrb[9].mxu0  ;;  %v1001_v37 = vadd.f32 %v997_v29, %v928_v36 }
0x1125   :  { %1010 = vrot.lane.b32.xlu0 %v1008_v30, %s7867_s0  ;;  %v5874_v38 = vmul.f32 -1.442695, %v1001_v37 }
0x1127   :  { %7646 = vpow2.f32 %v5874_v38  ;;  %v1350_v38 = vld [vmem:[#allocation3 + $0x5] sm:$0x1] }
0x112a   :  { %v1205_v33 = vpop.f32.mrb[10].mxu0 }
0x112b   :  { %v1220_v34 = vadd.f32 %v8085_v32, %v1205_v33  ;;  %v6551_v35 = vpop.f32.mrb[11].mxu0  ;;  %v1209_v40 = vadd.f32 %v1205_v33, %v1138_v39 }
0x112d   :  { %1222 = vrot.lane.b32.xlu1 %v1220_v34, %s7867_s0  ;;  %v5877_v41 = vmul.f32 -1.442695, %v1209_v40 }
0x112f   :  { %7648 = vpow2.f32 %v5877_v41 }
0x1131   :  { %v7647_v42 = vpop.eup %7646 }
0x1132   :  { %v1005_v43 = vadd.f32 1.0, %v7647_v42 }
0x1134   :  { %7650 = vrcp.f32 %v1005_v43 }
0x1139   :  { %v7649_v44 = vpop.eup %7648 }
0x113a   :  { %v1213_v45 = vadd.f32 1.0, %v7649_v44 }
0x113c   :  { %7652 = vrcp.f32 %v1213_v45 }
0x113e   :  { %v7651_v46 = vpop.eup %7650 }
0x113f   :  { %v1020_v58 = vsub.f32 1.0, %v7651_v46  ;;  %v1026_v60 = vmul.f32 %v7651_v46, %v922_v26 }
0x1146   :  { %v7653_v49 = vpop.eup %7652 }
0x1147   :  { %v1232_v63 = vsub.f32 1.0, %v7653_v49  ;;  %v1238_v4 = vmul.f32 0.0, %v7653_v49 }
0x1197   :  { %v1011_v47 = vpop.permute.xlu0 %1010 }
0x1198   :  { %v1013_v48 = vmul.f32 %v7651_v46, %v1011_v47 }
0x119a   :  { %1015 = vrot.lane.b32.xlu0 %v1013_v48, %s7867_s0 }
0x119f   :  { %v1223_v50 = vpop.permute.xlu1 %1222 }
0x11a0   :  { %v1225_v51 = vmul.f32 %v7653_v49, %v1223_v50 }
0x11a2   :  { %1227 = vrot.lane.b32.xlu1 %v1225_v51, %s7867_s0 }
0x120c   :  { %v1016_v52 = vpop.permute.xlu0 %1015 }
0x120d   :  { %v1018_v53 = vadd.f32 %v1016_v52, %v928_v36 }
0x120f   :  { %7654 = vtanh.f32 %v1018_v53 }
0x1214   :  { %v1228_v54 = vpop.permute.xlu1 %1227 }
0x1215   :  { %v1230_v55 = vadd.f32 %v1228_v54, %v1138_v39 }
0x1217   :  { %7656 = vtanh.f32 %v1230_v55 }
0x1219   :  { %v7655_v56 = vpop.eup %7654 }
0x121a   :  { %1022 = vrot.lane.b32.xlu0 %v7655_v56, %s7866_s9 }
0x1221   :  { %v7657_v57 = vpop.eup %7656 }
0x1222   :  { %1234 = vrot.lane.b32.xlu1 %v7657_v57, %s7866_s9 }
0x128c   :  { %v1023_v59 = vpop.permute.xlu0 %1022 }
0x128d   :  { %v1025_v61 = vmul.f32 %v1023_v59, %v1020_v58  ;;  %v1455_v58 = vld [vmem:[#allocation3 + $0x4] sm:$0x1] }
0x128f   :  { %v8093_v62 = vadd.f32 %v1026_v60, %v1025_v61 }
0x1291   :  { %1029 = vrot.lane.b32.xlu0 %v8093_v62, %s7866_s9 }
0x1294   :  { %v1235_v0 = vpop.permute.xlu1 %1234 }
0x1295   :  { %v1237_v5 = vmul.f32 %v1235_v0, %v1232_v63 }
0x1297   :  { %v1239_v9 = vadd.f32 %v1238_v4, %v1237_v5 }
0x1299   :  { %1241 = vrot.lane.b32.xlu1 %v1239_v9, %s7866_s9 }
0x1303   :  { %v1030_v10 = vpop.permute.xlu0 %1029 }
0x1304   :  { %1032 = vst.msk [vmem:[#allocation4 + $0x6] sm:$0x1] %vm401_vm3, %v1030_v10  ;;  %6539 = vmatmul.mubr.msk.f32.vlgmr.msra.gmra.mrb[8].mxu1 %vm141_vm1, %v1030_v10 }
0x1305   :  { %7262 = vmatpush3.bf16.msra.mxu1 %v8061_v27  ;;  %6560 = vmatprep.mubr.msk.f32.mxu1 %vm7864_vm0, %v7865_v2 }
0x1306   :  { %7263 = vmatprep.subr.bf16.mxu1 %v7863_v1 }
0x1309   :  { %7265 = vmatpush3.bf16.msra.mxu1 %v8072_v3 }
0x130a   :  { %7272 = vmatprep.subr.bf16.mxu1 %v7863_v1 }
0x130b   :  { %v1242_v11 = vpop.permute.xlu1 %1241 }
0x130c   :  { %1244 = vst.msk [vmem:[#allocation5 + $0x7] sm:$0x1] %vm401_vm3, %v1242_v11  ;;  %6561 = vmatmul.mubr.msk.f32.vlgmr.msra.gmra.mrb[10].mxu1 %vm141_vm1, %v1242_v11 }
0x130d   :  { %7274 = vmatpush3.bf16.msra.mxu1 %v8061_v27  ;;  %6582 = vmatprep.mubr.msk.f32.mxu1 %vm7864_vm0, %v7865_v2 }
0x130e   :  { %7275 = vmatprep.subr.bf16.mxu1 %v7863_v1 }
0x1311   :  { %7277 = vmatpush3.bf16.msra.mxu1 %v8072_v3 }
0x1312   :  { %7284 = vmatprep.subr.bf16.mxu1 %v7863_v1 }
0x13d7   :  { %v8114_v12 = vpop.f32.mrb[8].mxu1 }
0x13d8   :  { %v6540_v13 = vpop.f32.mrb[9].mxu1 }
0x13df   :  { %v1314_v6 = vpop.f32.mrb[10].mxu1 }
0x13e0   :  { %v1325_v14 = vadd.f32 %v1314_v6, %v8085_v32  ;;  %v6562_v16 = vpop.f32.mrb[11].mxu1  ;;  %v1318_v18 = vadd.f32 %v1314_v6, %v1245_v17 }
0x13e2   :  { %1327 = vrot.lane.b32.xlu0 %v1325_v14, %s7867_s0  ;;  %v5879_v7 = vmul.f32 -1.442695, %v1318_v18 }
0x13e4   :  { %7658 = vpow2.f32 %v5879_v7 }
0x13ee   :  { %v7659_v19 = vpop.eup %7658 }
0x13ef   :  { %v1322_v20 = vadd.f32 1.0, %v7659_v19 }
0x13f1   :  { %7660 = vrcp.f32 %v1322_v20 }
0x13fb   :  { %v7661_v21 = vpop.eup %7660 }
0x13fc   :  { %v1337_v28 = vsub.f32 1.0, %v7661_v21  ;;  %v1343_v30 = vmul.f32 %v7661_v21, %v1239_v9 }
0x1454   :  { %v1328_v22 = vpop.permute.xlu0 %1327 }
0x1455   :  { %v1330_v23 = vmul.f32 %v7661_v21, %v1328_v22  ;;  %v1560_v21 = vld [vmem:[#allocation3 + $0x3] sm:$0x1] }
0x1457   :  { %1332 = vrot.lane.b32.xlu1 %v1330_v23, %s7867_s0 }
0x14c9   :  { %v1333_v24 = vpop.permute.xlu1 %1332 }
0x14ca   :  { %v1335_v25 = vadd.f32 %v1333_v24, %v1245_v17 }
0x14cc   :  { %7662 = vtanh.f32 %v1335_v25 }
0x14d6   :  { %v7663_v26 = vpop.eup %7662 }
0x14d7   :  { %1339 = vrot.lane.b32.xlu0 %v7663_v26, %s7866_s9 }
0x1549   :  { %v1340_v29 = vpop.permute.xlu0 %1339 }
0x154a   :  { %v1342_v31 = vmul.f32 %v1340_v29, %v1337_v28 }
0x154c   :  { %v1344_v33 = vadd.f32 %v1343_v30, %v1342_v31 }
0x154e   :  { %1346 = vrot.lane.b32.xlu1 %v1344_v33, %s7866_s9 }
0x15c0   :  { %v1347_v34 = vpop.permute.xlu1 %1346 }
0x15c1   :  { %1349 = vst.msk [vmem:[#allocation5 + $0x6] sm:$0x1] %vm401_vm3, %v1347_v34  ;;  %6572 = vmatmul.mubr.msk.f32.vlgmr.msra.gmra.mrb[12].mxu0 %vm141_vm1, %v1347_v34 }
0x15c2   :  { %7280 = vmatpush3.bf16.msra.mxu0 %v8061_v27  ;;  %6593 = vmatprep.mubr.msk.f32.mxu0 %vm7864_vm0, %v7865_v2 }
0x15c3   :  { %7281 = vmatprep.subr.bf16.mxu0 %v7863_v1 }
0x15c6   :  { %7283 = vmatpush3.bf16.msra.mxu0 %v8072_v3 }
0x15c7   :  { %7290 = vmatprep.subr.bf16.mxu0 %v7863_v1 }
0x1694   :  { %v1419_v35 = vpop.f32.mrb[12].mxu0 }
0x1695   :  { %v1430_v36 = vadd.f32 %v1419_v35, %v8085_v32  ;;  %v6573_v37 = vpop.f32.mrb[13].mxu0  ;;  %v1423_v39 = vadd.f32 %v1419_v35, %v1350_v38 }
0x1697   :  { %1432 = vrot.lane.b32.xlu0 %v1430_v36, %s7867_s0  ;;  %v5881_v40 = vmul.f32 -1.442695, %v1423_v39 }
0x1699   :  { %7664 = vpow2.f32 %v5881_v40 }
0x16a3   :  { %v7665_v41 = vpop.eup %7664 }
0x16a4   :  { %v1427_v42 = vadd.f32 1.0, %v7665_v41 }
0x16a6   :  { %7666 = vrcp.f32 %v1427_v42 }
0x16b0   :  { %v7667_v43 = vpop.eup %7666 }
0x16b1   :  { %v1442_v49 = vsub.f32 1.0, %v7667_v43  ;;  %v1448_v51 = vmul.f32 %v7667_v43, %v1344_v33 }
0x1709   :  { %v1433_v44 = vpop.permute.xlu0 %1432 }
0x170a   :  { %v1435_v45 = vmul.f32 %v7667_v43, %v1433_v44  ;;  %v1665_v43 = vld [vmem:[#allocation3 + $0x2] sm:$0x1] }
0x170c   :  { %1437 = vrot.lane.b32.xlu1 %v1435_v45, %s7867_s0 }
0x177e   :  { %v1438_v46 = vpop.permute.xlu1 %1437 }
0x177f   :  { %v1440_v47 = vadd.f32 %v1438_v46, %v1350_v38 }
0x1781   :  { %7668 = vtanh.f32 %v1440_v47 }
0x178b   :  { %v7669_v48 = vpop.eup %7668 }
0x178c   :  { %1444 = vrot.lane.b32.xlu0 %v7669_v48, %s7866_s9 }
0x17fe   :  { %v1445_v50 = vpop.permute.xlu0 %1444 }
0x17ff   :  { %v1447_v52 = vmul.f32 %v1445_v50, %v1442_v49 }
0x1801   :  { %v1449_v53 = vadd.f32 %v1448_v51, %v1447_v52 }
0x1803   :  { %1451 = vrot.lane.b32.xlu1 %v1449_v53, %s7866_s9 }
0x1875   :  { %v1452_v54 = vpop.permute.xlu1 %1451 }
0x1876   :  { %1454 = vst.msk [vmem:[#allocation5 + $0x5] sm:$0x1] %vm401_vm3, %v1452_v54  ;;  %6583 = vmatmul.mubr.msk.f32.vlgmr.msra.gmra.mrb[12].mxu1 %vm141_vm1, %v1452_v54 }
0x1877   :  { %7286 = vmatpush3.bf16.msra.mxu1 %v8061_v27  ;;  %6604 = vmatprep.mubr.msk.f32.mxu1 %vm7864_vm0, %v7865_v2 }
0x1878   :  { %7287 = vmatprep.subr.bf16.mxu1 %v7863_v1 }
0x187b   :  { %7289 = vmatpush3.bf16.msra.mxu1 %v8072_v3 }
0x187c   :  { %7296 = vmatprep.subr.bf16.mxu1 %v7863_v1 }
0x1949   :  { %v1524_v55 = vpop.f32.mrb[12].mxu1 }
0x194a   :  { %v1535_v56 = vadd.f32 %v1524_v55, %v8085_v32  ;;  %v6584_v57 = vpop.f32.mrb[13].mxu1  ;;  %v1528_v59 = vadd.f32 %v1524_v55, %v1455_v58 }
0x194b   :  { %v1113_v57 = vadd.f32 %v8114_v12, %v7967_v15 }
0x194c   :  { %1537 = vrot.lane.b32.xlu0 %v1535_v56, %s7867_s0  ;;  %v5883_v60 = vmul.f32 -1.442695, %v1528_v59 }
0x194e   :  { %7670 = vpow2.f32 %v5883_v60 }
0x1958   :  { %v7671_v61 = vpop.eup %7670 }
0x1959   :  { %v1532_v63 = vadd.f32 1.0, %v7671_v61 }
0x195b   :  { %7672 = vrcp.f32 %v1532_v63 }
0x1965   :  { %v7673_v0 = vpop.eup %7672 }
0x1966   :  { %v1547_v13 = vsub.f32 1.0, %v7673_v0  ;;  %v1553_v14 = vmul.f32 %v7673_v0, %v1449_v53 }
0x19be   :  { %v1538_v4 = vpop.permute.xlu0 %1537 }
0x19bf   :  { %v1540_v5 = vmul.f32 %v7673_v0, %v1538_v4 }
0x19c1   :  { %1542 = vrot.lane.b32.xlu1 %v1540_v5, %s7867_s0 }
0x1a33   :  { %v1543_v9 = vpop.permute.xlu1 %1542 }
0x1a34   :  { %v1545_v10 = vadd.f32 %v1543_v9, %v1455_v58  ;;  %v1033_v58 = vld [vmem:[#allocation2 + $0x7] sm:$0x1] }
0x1a35   :  { %v1106_v59 = vadd.f32 %v8114_v12, %v1033_v58 }
0x1a36   :  { %7674 = vtanh.f32 %v1545_v10 }
0x1a37   :  { %v5876_v60 = vmul.f32 -1.442695, %v1106_v59 }
0x1a40   :  { %v7675_v11 = vpop.eup %7674 }
0x1a41   :  { %1549 = vrot.lane.b32.xlu0 %v7675_v11, %s7866_s9 }
0x1ab3   :  { %v1550_v6 = vpop.permute.xlu0 %1549 }
0x1ab4   :  { %v1552_v16 = vmul.f32 %v1550_v6, %v1547_v13 }
0x1ab6   :  { %v1554_v17 = vadd.f32 %v1553_v14, %v1552_v16 }
0x1ab8   :  { %1556 = vrot.lane.b32.xlu1 %v1554_v17, %s7866_s9 }
0x1b2a   :  { %v1557_v18 = vpop.permute.xlu1 %1556 }
0x1b2b   :  { %1559 = vst.msk [vmem:[#allocation5 + $0x4] sm:$0x1] %vm401_vm3, %v1557_v18  ;;  %6594 = vmatmul.mubr.msk.f32.vlgmr.msra.gmra.mrb[14].mxu0 %vm141_vm1, %v1557_v18 }
0x1b2c   :  { %7292 = vmatpush3.bf16.msra.mxu0 %v8061_v27  ;;  %6615 = vmatprep.mubr.msk.f32.mxu0 %vm7864_vm0, %v7865_v2 }
0x1b2d   :  { %7293 = vmatprep.subr.bf16.mxu0 %v7863_v1 }
0x1b30   :  { %7295 = vmatpush3.bf16.msra.mxu0 %v8072_v3 }
0x1b31   :  { %7302 = vmatprep.subr.bf16.mxu0 %v7863_v1 }
0x1bfe   :  { %v1629_v7 = vpop.f32.mrb[14].mxu0 }
0x1bff   :  { %v1640_v19 = vadd.f32 %v1629_v7, %v8085_v32  ;;  %v6595_v20 = vpop.f32.mrb[15].mxu0  ;;  %v1633_v22 = vadd.f32 %v1629_v7, %v1560_v21 }
0x1c01   :  { %1642 = vrot.lane.b32.xlu0 %v1640_v19, %s7867_s0  ;;  %v5885_v23 = vmul.f32 -1.442695, %v1633_v22  ;;  %v1770_v19 = vld [vmem:[#allocation3 + $0x1] sm:$0x1] }
0x1c03   :  { %7676 = vpow2.f32 %v5885_v23 }
0x1c0d   :  { %v7677_v24 = vpop.eup %7676 }
0x1c0e   :  { %v1637_v25 = vadd.f32 1.0, %v7677_v24 }
0x1c10   :  { %7678 = vrcp.f32 %v1637_v25 }
0x1c1a   :  { %v7679_v26 = vpop.eup %7678 }
0x1c1b   :  { %v1652_v34 = vsub.f32 1.0, %v7679_v26  ;;  %v1658_v36 = vmul.f32 %v7679_v26, %v1554_v17 }
0x1c73   :  { %v1643_v28 = vpop.permute.xlu0 %1642 }
0x1c74   :  { %v1645_v29 = vmul.f32 %v7679_v26, %v1643_v28 }
0x1c76   :  { %1647 = vrot.lane.b32.xlu1 %v1645_v29, %s7867_s0 }
0x1ce8   :  { %v1648_v30 = vpop.permute.xlu1 %1647 }
0x1ce9   :  { %v1650_v31 = vadd.f32 %v1648_v30, %v1560_v21  ;;  %v8198_v30 = vld [vmem:[%s8994_s2 + $0x20] sm:$0xff]  }
0x1ceb   :  { %7680 = vtanh.f32 %v1650_v31 }
0x1cf5   :  { %v7681_v33 = vpop.eup %7680 }
0x1cf6   :  { %1654 = vrot.lane.b32.xlu0 %v7681_v33, %s7866_s9  ;;  %v8206_v33 = vld [vmem:[%s8994_s2 + $0x28] sm:$0xff]  }
0x1d68   :  { %v1655_v35 = vpop.permute.xlu0 %1654 }
0x1d69   :  { %v1657_v37 = vmul.f32 %v1655_v35, %v1652_v34  ;;  %v8211_v34 = vld [vmem:[%s8993_s1] sm:$0xff]  }
0x1d6a   :  { %v6030_v35 = vunpack.c.l.bf16 %v8211_v34 }
0x1d6b   :  { %v1659_v38 = vadd.f32 %v1658_v36, %v1657_v37 }
0x1d6c   :  { %v1986_v36 = vrot.slane %v6030_v35, 1 }
0x1d6d   :  { %1661 = vrot.lane.b32.xlu1 %v1659_v38, %s7866_s9 }
0x1ddf   :  { %v1662_v39 = vpop.permute.xlu1 %1661 }
0x1de0   :  { %1664 = vst.msk [vmem:[#allocation5 + $0x3] sm:$0x1] %vm401_vm3, %v1662_v39  ;;  %6605 = vmatmul.mubr.msk.f32.vlgmr.msra.gmra.mrb[14].mxu1 %vm141_vm1, %v1662_v39 }
0x1de1   :  { %7298 = vmatpush3.bf16.msra.mxu1 %v8061_v27  ;;  %6626 = vmatprep.mubr.msk.f32.mxu1 %vm7864_vm0, %v7865_v2 }
0x1de2   :  { %7299 = vmatprep.subr.bf16.mxu1 %v7863_v1 }
0x1de5   :  { %7301 = vmatpush3.bf16.msra.mxu1 %v8072_v3 }
0x1de6   :  { %7308 = vmatprep.subr.bf16.mxu1 %v7863_v1 }
0x1eb3   :  { %v1734_v40 = vpop.f32.mrb[14].mxu1 }
0x1eb4   :  { %v1745_v41 = vadd.f32 %v1734_v40, %v8085_v32  ;;  %v6606_v42 = vpop.f32.mrb[15].mxu1  ;;  %v1738_v44 = vadd.f32 %v1734_v40, %v1665_v43 }
0x1eb5   :  { %v7802_v42 = vld [vmem:[%s8997_s5] sm:$0x7] }
0x1eb6   :  { %1747 = vrot.lane.b32.xlu0 %v1745_v41, %s7867_s0  ;;  %v5887_v45 = vmul.f32 -1.442695, %v1738_v44  ;;  %v8231_v44 = vld [vmem:[%s8994_s2 + $0x50] sm:$0xff]  }
0x1eb8   :  { %7682 = vpow2.f32 %v5887_v45 }
0x1ec2   :  { %v7683_v27 = vpop.eup %7682 }
0x1ec3   :  { %v1742_v46 = vadd.f32 1.0, %v7683_v27  ;;  %v8242_v27 = vld [vmem:[%s8994_s2 + $0x58] sm:$0xff]  }
0x1ec5   :  { %7684 = vrcp.f32 %v1742_v46 }
0x1ecf   :  { %v7685_v47 = vpop.eup %7684 }
0x1ed0   :  { %v1757_v52 = vsub.f32 1.0, %v7685_v47  ;;  %v1763_v54 = vmul.f32 %v7685_v47, %v1659_v38 }
0x1f28   :  { %v1748_v48 = vpop.permute.xlu0 %1747 }
0x1f29   :  { %v1750_v49 = vmul.f32 %v7685_v47, %v1748_v48 }
0x1f2b   :  { %1752 = vrot.lane.b32.xlu1 %v1750_v49, %s7867_s0 }
0x1f9d   :  { %v1753_v3 = vpop.permute.xlu1 %1752 }
0x1f9e   :  { %v1755_v50 = vadd.f32 %v1753_v3, %v1665_v43  ;;  %v8223_v43 = vrot.slane %v7802_v42, 2 }
0x1fa0   :  { %7686 = vtanh.f32 %v1755_v50 }
0x1fa1   :  { %7688 = vpow2.f32 %v5876_v60 }
0x1faa   :  { %v7687_v51 = vpop.eup %7686 }
0x1fab   :  { %1759 = vrot.lane.b32.xlu0 %v7687_v51, %s7866_s9  ;;  %v7689_v61 = vpop.eup %7688 }
0x1fac   :  { %v1110_v63 = vadd.f32 1.0, %v7689_v61 }
0x1fae   :  { %7690 = vrcp.f32 %v1110_v63 }
0x1fb8   :  { %v7691_v4 = vpop.eup %7690 }
0x1fb9   :  { %v1125_v14 = vsub.f32 1.0, %v7691_v4  ;;  %v1131_v17 = vmul.f32 %v7691_v4, %v8093_v62 }
0x201d   :  { %v1760_v53 = vpop.permute.xlu0 %1759 }
0x201e   :  { %v1762_v55 = vmul.f32 %v1760_v53, %v1757_v52 }
0x2020   :  { %v8172_v56 = vadd.f32 %v1763_v54, %v1762_v55  ;;  %v1875_v54 = vld [vmem:[#allocation3] sm:$0x1] }
0x2022   :  { %1766 = vrot.lane.b32.xlu1 %v8172_v56, %s7866_s9 }
0x2026   :  { %1115 = vrot.lane.b32.xlu1 %v1113_v57, %s7867_s0 }
0x2094   :  { %v1767_v0 = vpop.permute.xlu1 %1766 }
0x2095   :  { %1769 = vst.msk [vmem:[#allocation5 + $0x2] sm:$0x1] %vm401_vm3, %v1767_v0  ;;  %6616 = vmatmul.mubr.msk.f32.vlgmr.msra.gmra.mrb[16].mxu0 %vm141_vm1, %v1767_v0 }
0x2096   :  { %6637 = vmatprep.mubr.msk.f32.mxu0 %vm7864_vm0, %v7865_v2  ;;  %7304 = vmatpush3.bf16.msra.mxu0 %v8198_v30 }
0x2097   :  { %7305 = vmatprep.subr.bf16.mxu0 %v7863_v1 }
0x2098   :  { %v1116_v15 = vpop.permute.xlu1 %1115 }
0x2099   :  { %v1118_v5 = vmul.f32 %v7691_v4, %v1116_v15 }
0x209a   :  { %7307 = vmatpush3.bf16.msra.mxu0 %v8206_v33 }
0x209b   :  { %1120 = vrot.lane.b32.xlu1 %v1118_v5, %s7867_s0  ;;  %7314 = vmatprep.subr.bf16.mxu0 %v7863_v1 }
0x209d   :  { %6638 = vmatmul.mubr.msk.f32.vlgmr.msra.gmra.mrb[18].mxu0 %vm141_vm1, %v1986_v36 }
0x209e   :  { %6669 = vmatprep.mubr.msk.f32.mxu0 %vm7864_vm0, %v7865_v2 }
0x210d   :  { %v1121_v9 = vpop.permute.xlu1 %1120 }
0x210e   :  { %v1123_v12 = vadd.f32 %v1121_v9, %v1033_v58 }
0x2110   :  { %7692 = vtanh.f32 %v1123_v12 }
0x211a   :  { %v7693_v10 = vpop.eup %7692 }
0x211b   :  { %1127 = vrot.lane.b32.xlu1 %v7693_v10, %s7866_s9 }
0x2168   :  { %v1839_v11 = vpop.f32.mrb[16].mxu0 }
0x2169   :  { %v1850_v13 = vadd.f32 %v1839_v11, %v8085_v32  ;;  %v6617_v6 = vpop.f32.mrb[17].mxu0  ;;  %v1843_v20 = vadd.f32 %v1839_v11, %v1770_v19 }
0x216b   :  { %1852 = vrot.lane.b32.xlu0 %v1850_v13, %s7867_s0  ;;  %v5889_v21 = vmul.f32 -1.442695, %v1843_v20 }
0x216d   :  { %7694 = vpow2.f32 %v5889_v21 }
0x2170   :  { %v2057_v46 = vpop.f32.mrb[18].mxu0 }
0x2171   :  { %v6639_v47 = vpop.f32.mrb[19].mxu0  ;;  %v2058_v57 = vadd.f32 %v2057_v46, %v8223_v43  ;;  %v8292_v46 = vld [vmem:[%s8995_s3 + $0x18] sm:$0xff]  }
0x2177   :  { %v7695_v22 = vpop.eup %7694 }
0x2178   :  { %v1847_v23 = vadd.f32 1.0, %v7695_v22 }
0x217a   :  { %7696 = vrcp.f32 %v1847_v23 }
0x2184   :  { %v7697_v24 = vpop.eup %7696 }
0x2185   :  { %v1862_v37 = vsub.f32 1.0, %v7697_v24  ;;  %v1868_v39 = vmul.f32 %v7697_v24, %v8172_v56 }
0x218d   :  { %v1128_v16 = vpop.permute.xlu1 %1127 }
0x218e   :  { %v1130_v18 = vmul.f32 %v1128_v16, %v1125_v14 }
0x2190   :  { %v8189_v7 = vadd.f32 %v1131_v17, %v1130_v18 }
0x2192   :  { %1134 = vrot.lane.b32.xlu1 %v8189_v7, %s7866_s9 }
0x21dd   :  { %v1853_v25 = vpop.permute.xlu0 %1852 }
0x21de   :  { %v1855_v26 = vmul.f32 %v7697_v24, %v1853_v25 }
0x21e0   :  { %1857 = vrot.lane.b32.xlu0 %v1855_v26, %s7867_s0 }
0x2204   :  { %v1135_v28 = vpop.permute.xlu1 %1134 }
0x2205   :  { %1137 = vst.msk [vmem:[#allocation4 + $0x7] sm:$0x1] %vm401_vm3, %v1135_v28 }
0x2252   :  { %v1858_v62 = vpop.permute.xlu0 %1857 }
0x2253   :  { %v1860_v29 = vadd.f32 %v1858_v62, %v1770_v19  ;;  %v1980_v62 = vld [vmem:[#allocation4] sm:$0xff] }
0x2255   :  { %7698 = vtanh.f32 %v1860_v29 }
0x225f   :  { %v7699_v31 = vpop.eup %7698 }
0x2260   :  { %1864 = vrot.lane.b32.xlu0 %v7699_v31, %s7866_s9 }
0x22d2   :  { %v1865_v38 = vpop.permute.xlu0 %1864 }
0x22d3   :  { %v1867_v40 = vmul.f32 %v1865_v38, %v1862_v37 }
0x22d5   :  { %v1869_v41 = vadd.f32 %v1868_v39, %v1867_v40 }
0x22d7   :  { %1871 = vrot.lane.b32.xlu0 %v1869_v41, %s7866_s9 }
0x22db   :  { %2140 = vrot.lane.b32.xlu0 %v8223_v43, %s7866_s9 }
0x2349   :  { %v1872_v45 = vpop.permute.xlu0 %1871 }
0x234a   :  { %1874 = vst.msk [vmem:[#allocation5 + $0x1] sm:$0x1] %vm401_vm3, %v1872_v45  ;;  %6627 = vmatmul.mubr.msk.f32.vlgmr.msra.gmra.mrb[16].mxu1 %vm141_vm1, %v1872_v45  ;;  %v8285_v45 = vld [vmem:[%s8995_s3 + $0x10] sm:$0xff]  }
0x234b   :  { %7310 = vmatpush3.bf16.msra.mxu1 %v8231_v44  ;;  %6648 = vmatprep.mubr.msk.f32.mxu1 %vm7864_vm0, %v7865_v2 }
0x234c   :  { %7311 = vmatprep.subr.bf16.mxu1 %v7863_v1  ;;  %7316 = vmatpush3.bf16.msra.mxu0 %v8285_v45 }
0x234d   :  { %v8251_v50 = vpop.permute.xlu0 %2140  ;;  %7317 = vmatprep.subr.bf16.mxu0 %v7863_v1 }
0x234f   :  { %7313 = vmatpush3.bf16.msra.mxu1 %v8242_v27 }
0x2350   :  { %6651 = vmatprep.subr.mxu1 %v7865_v2  ;;  %7319 = vmatpush3.bf16.msra.mxu0 %v8292_v46 }
0x2351   :  { %7326 = vmatprep.subr.bf16.mxu0 %v7863_v1 }
0x2352   :  { %6649 = vmatmul.mubr.msk.f32.vlgmr.msra.gmra.mrb[18].mxu1 %vm141_vm1, %v1135_v28 }
0x2353   :  { %6653 = vmatprep.mubr.msk.f32.mxu1 %vm7864_vm0, %v7865_v2 }
0x241d   :  { %v1944_v48 = vpop.f32.mrb[16].mxu1 }
0x241e   :  { %v1955_v49 = vadd.f32 %v1944_v48, %v8085_v32  ;;  %v6628_v3 = vpop.f32.mrb[17].mxu1  ;;  %v1948_v55 = vadd.f32 %v1944_v48, %v1875_v54 }
0x241f   :  { %v8299_v3 = vld [vmem:[%s8995_s3] sm:$0xff]  }
0x2420   :  { %1957 = vrot.lane.b32.xlu1 %v1955_v49, %s7867_s0  ;;  %v5891_v56 = vmul.f32 -1.442695, %v1948_v55 }
0x2422   :  { %7700 = vpow2.f32 %v5891_v56  ;;  %v8325_v56 = vld [vmem:[%s8996_s4] sm:$0xff]  }
0x2425   :  { %v2129_v51 = vpop.f32.mrb[18].mxu1 }
0x2426   :  { %v6650_v52 = vpop.f32.mrb[19].mxu1  ;;  %v2143_v53 = vadd.f32 %v8251_v50, %v2129_v51  ;;  %v2133_v58 = vadd.f32 %v2129_v51, %v2058_v57  ;;  %v8309_v51 = vld [vmem:[%s8995_s3 + $0x8] sm:$0xff]  }
0x2428   :  { %2145 = vrot.lane.b32.xlu0 %v2143_v53, %s7867_s0  ;;  %v5894_v59 = vmul.f32 -1.442695, %v2133_v58  ;;  %v8339_v58 = vld [vmem:[%s8998_s6] sm:$0x3] }
0x242a   :  { %7702 = vpow2.f32 %v5894_v59 }
0x242c   :  { %v7701_v32 = vpop.eup %7700 }
0x242d   :  { %v1952_v60 = vadd.f32 1.0, %v7701_v32 }
0x242f   :  { %7704 = vrcp.f32 %v1952_v60 }
0x2434   :  { %v7703_v61 = vpop.eup %7702 }
0x2435   :  { %v2137_v63 = vadd.f32 1.0, %v7703_v61 }
0x2437   :  { %7706 = vrcp.f32 %v2137_v63 }
0x2439   :  { %v7705_v0 = vpop.eup %7704 }
0x243a   :  { %v1967_v17 = vsub.f32 1.0, %v7705_v0  ;;  %v1973_v19 = vmul.f32 %v7705_v0, %v1869_v41 }
0x2441   :  { %v7707_v5 = vpop.eup %7706 }
0x2442   :  { %v2155_v22 = vsub.f32 1.0, %v7707_v5  ;;  %v2161_v24 = vmul.f32 %v7707_v5, %v8189_v7 }
0x2492   :  { %v1958_v4 = vpop.permute.xlu1 %1957 }
0x2493   :  { %v1960_v15 = vmul.f32 %v7705_v0, %v1958_v4  ;;  %v8350_v0 = vrot.slane %v8339_v58, 1 }
0x2495   :  { %1962 = vrot.lane.b32.xlu1 %v1960_v15, %s7867_s0 }
0x249a   :  { %v2146_v9 = vpop.permute.xlu0 %2145 }
0x249b   :  { %v2148_v12 = vmul.f32 %v7707_v5, %v2146_v9 }
0x249d   :  { %2150 = vrot.lane.b32.xlu0 %v2148_v12, %s7867_s0  ;;  %v8358_v12 = vand.u32 127, %v137_v8  ;;  %v8376_v8 = vld [vmem:[%s8993_s1 + $0x10] sm:$0xff]  }
0x249f   :  { %vm2576_vm12 = vcmp.eq.s32.totalorder %v8358_v12, 0  ;;  %vm3226_vm13 = vcmp.eq.s32.totalorder %v8358_v12, 1 }
0x2507   :  { %v1963_v10 = vpop.permute.xlu1 %1962 }
0x2508   :  { %v1965_v11 = vadd.f32 %v1963_v10, %v1875_v54 }
0x250a   :  { %7708 = vtanh.f32 %v1965_v11 }
0x250f   :  { %v2151_v13 = vpop.permute.xlu0 %2150 }
0x2510   :  { %v2153_v6 = vadd.f32 %v2151_v13, %v2058_v57  ;;  %v8332_v57 = vld [vmem:[%s8996_s4 + $0x8] sm:$0xff]  }
0x2512   :  { %7710 = vtanh.f32 %v2153_v6 }
0x2514   :  { %v7709_v14 = vpop.eup %7708 }
0x2515   :  { %1969 = vrot.lane.b32.xlu1 %v7709_v14, %s7866_s9 }
0x251c   :  { %v7711_v16 = vpop.eup %7710 }
0x251d   :  { %2157 = vrot.lane.b32.xlu0 %v7711_v16, %s7866_s9  ;;  %v8369_v16 = vld [vmem:[%s8993_s1 + $0x8] sm:$0xff]  }
0x2587   :  { %v1970_v18 = vpop.permute.xlu1 %1969 }
0x2588   :  { %v1972_v20 = vmul.f32 %v1970_v18, %v1967_v17  ;;  %v8383_v17 = vld [vmem:[%s8993_s1 + $0x18] sm:$0xff]   ;;  %v8390_v18 = vld [vmem:[%s8993_s1 + $0x20] sm:$0xff]  }
0x258a   :  { %v1974_v21 = vadd.f32 %v1973_v19, %v1972_v20  ;;  %v8397_v19 = vld [vmem:[%s8993_s1 + $0x28] sm:$0xff]   ;;  %v8404_v20 = vld [vmem:[%s8993_s1 + $0x30] sm:$0xff]  }
0x258c   :  { %1976 = vrot.lane.b32.xlu1 %v1974_v21, %s7866_s9 }
0x258f   :  { %v2158_v23 = vpop.permute.xlu0 %2157 }
0x2590   :  { %v2160_v25 = vmul.f32 %v2158_v23, %v2155_v22 }
0x2592   :  { %v8262_v26 = vadd.f32 %v2161_v24, %v2160_v25  ;;  %v8411_v25 = vld [vmem:[%s8993_s1 + $0x38] sm:$0xff]  }
0x2594   :  { %2164 = vrot.lane.b32.xlu0 %v8262_v26, %s7866_s9 }
0x25fe   :  { %v1977_v28 = vpop.permute.xlu1 %1976 }
0x25ff   :  { %1979 = vst.msk [vmem:[#allocation5] sm:$0x1] %vm401_vm3, %v1977_v28  ;;  %vm3876_vm3 = vcmp.eq.s32.totalorder %v8358_v12, 2 }
0x2606   :  { %v1981_v29 = vld [vmem:[#allocation5] sm:$0xff]  ;;  %v8272_v35 = vpop.permute.xlu0 %2164 }
0x2607   :  { %v8267_v31 = vadd.f32 %v1981_v29, %v1980_v62 }
0x2609   :  { %6652 = vmatpush3.xpose.msk.msra.mxu1 %vm141_vm1, %v8267_v31 }
0x260a   :  { %6656 = vmatprep.subr.mxu1 %v7865_v2 }
0x260c   :  { %6654 = vmatmul.mubr.msk.f32.vlgmr.msra.gmra.mrb[20].mxu1 %vm141_vm1, %v8272_v35 }
0x260d   :  { %6657 = vmatpush3.msra.mxu1 %v8267_v31  ;;  %6658 = vmatprep.mubr.msk.f32.mxu1 %vm7864_vm0, %v7865_v2 }
0x260e   :  { %7320 = vmatprep.subr.bf16.mxu1 %v7863_v1 }
0x26df   :  { %v2237_v7 = vpop.f32.mrb[20].mxu1 }
0x26e0   :  { %v6655_v36 = vpop.f32.mrb[21].mxu1  ;;  %v2242_v37 = vsel %vm2241_vm4, %v2237_v7, -inf }
0x26e1   :  { %2243 = vmax.xlane.f32.xlu1 %v2242_v37  ;;  %v7868_v37 = vmov 1.0  }
0x276e   :  { %v2244_v38 = vpop.xlane.xlu1 %2243 }
0x276f   :  { %v2245_v39 = vsub.f32 %v2237_v7, %v2244_v38 }
0x2771   :  { %v2246_v40 = vmul.f32 1.442695, %v2245_v39 }
0x2773   :  { %7712 = vpow2.f32 %v2246_v40 }
0x277d   :  { %v7713_v41 = vpop.eup %7712 }
0x277e   :  { %v2248_v42 = vsel %vm2241_vm4, %v7713_v41, 0.0 }
0x277f   :  { %2249 = vadd.xlane.f32.xlu0 %v2248_v42 }
0x280c   :  { %v2250_v47 = vpop.xlane.xlu0 %2249 }
0x280d   :  { %7714 = vrcp.f32 %v2250_v47 }
0x2817   :  { %v7715_v48 = vpop.eup %7714 }
0x2818   :  { %v2252_v49 = vmul.f32 %v7715_v48, %v7713_v41 }
0x281a   :  { %6659 = vmatmul.mubr.msk.f32.vlgmr.msra.gmra.mrb[22].mxu1 %vm2253_vm5, %v2252_v49 }
0x281b   :  { %7322 = vmatpush3.bf16.msra.mxu1 %v8299_v3  ;;  %6680 = vmatprep.mubr.msk.f32.mxu1 %vm7864_vm0, %v7865_v2 }
0x281c   :  { %7323 = vmatprep.subr.bf16.mxu1 %v7863_v1 }
0x281f   :  { %7325 = vmatpush3.bf16.msra.mxu1 %v8309_v51 }
0x2820   :  { %7332 = vmatprep.subr.bf16.mxu1 %v7863_v1 }
0x2822   :  { %6681 = vmatmul.mubr.msk.f32.vlgmr.msra.gmra.mrb[24].mxu1 %vm141_vm1, %v8272_v35 }
0x2823   :  { %7334 = vmatpush3.bf16.msra.mxu1 %v8211_v34  ;;  %6726 = vmatprep.mubr.msk.f32.mxu1 %vm7864_vm0, %v7865_v2 }
0x2824   :  { %7335 = vmatprep.subr.bf16.mxu1 %v7863_v1 }
0x2827   :  { %7337 = vmatpush3.bf16.msra.mxu1 %v8369_v16 }
0x2828   :  { %7338 = vmatprep.subr.bf16.mxu1 %v7863_v1 }
0x282b   :  { %7340 = vmatpush3.bf16.msra.mxu1 %v8376_v8 }
0x282c   :  { %7341 = vmatprep.subr.bf16.mxu1 %v7863_v1 }
0x282f   :  { %7343 = vmatpush3.bf16.msra.mxu1 %v8383_v17 }
0x2830   :  { %7344 = vmatprep.subr.bf16.mxu1 %v7863_v1 }
0x2833   :  { %7346 = vmatpush3.bf16.msra.mxu1 %v8390_v18 }
0x2834   :  { %7347 = vmatprep.subr.bf16.mxu1 %v7863_v1 }
0x2837   :  { %7349 = vmatpush3.bf16.msra.mxu1 %v8397_v19 }
0x2838   :  { %7350 = vmatprep.subr.bf16.mxu1 %v7863_v1 }
0x283b   :  { %7352 = vmatpush3.bf16.msra.mxu1 %v8404_v20 }
0x283c   :  { %7353 = vmatprep.subr.bf16.mxu1 %v7863_v1 }
0x283f   :  { %7355 = vmatpush3.bf16.msra.mxu1 %v8411_v25 }
0x2840   :  { %7374 = vmatprep.subr.bf16.mxu1 %v7863_v1 }
0x28ed   :  { %v2323_v52 = vpop.f32.mrb[22].mxu1 }
0x28ee   :  { %v6660_v53 = vpop.f32.mrb[23].mxu1  ;;  %6670 = vmatmul.mubr.msk.f32.vlgmr.msra.gmra.mrb[20].mxu0 %vm141_vm1, %v2323_v52 }
0x28ef   :  { %6691 = vmatprep.mubr.msk.f32.mxu0 %vm7864_vm0, %v7865_v2  ;;  %7328 = vmatpush3.bf16.msra.mxu0 %v8325_v56 }
0x28f0   :  { %7329 = vmatprep.subr.bf16.mxu0 %v7863_v1 }
0x28f3   :  { %7331 = vmatpush3.bf16.msra.mxu0 %v8332_v57 }
0x28f4   :  { %7356 = vmatprep.subr.bf16.mxu0 %v7863_v1 }
0x28f5   :  { %v2466_v54 = vpop.f32.mrb[24].mxu1 }
0x28f6   :  { %v6682_v55 = vpop.f32.mrb[25].mxu1 }
0x29c1   :  { %v2396_v59 = vpop.f32.mrb[20].mxu0 }
0x29c2   :  { %v2467_v32 = vadd.f32 %v2466_v54, %v2396_v59  ;;  %v6671_v60 = vpop.f32.mrb[21].mxu0 }
0x29c4   :  { %v2470_v61 = vadd.f32 %v2467_v32, %v8339_v58 }
0x29c6   :  { %7716 = vtanh.f32 %v2470_v61 }
0x29d0   :  { %v7717_v63 = vpop.eup %7716 }
0x29d1   :  { %6692 = vmatmul.mubr.msk.f32.vlgmr.msra.gmra.mrb[22].mxu0 %vm141_vm1, %v7717_v63 }
0x29d2   :  { %7358 = vmatpush3.bf16.msra.mxu0 %v8198_v30  ;;  %6737 = vmatprep.mubr.msk.f32.mxu0 %vm7864_vm0, %v7865_v2 }
0x29d3   :  { %7359 = vmatprep.subr.bf16.mxu0 %v7863_v1 }
0x29d6   :  { %7361 = vmatpush3.bf16.msra.mxu0 %v8206_v33 }
0x29d7   :  { %7362 = vmatprep.subr.bf16.mxu0 %v7863_v1 }
0x2aa4   :  { %v2544_v4 = vpop.f32.mrb[22].mxu0 }
0x2aa5   :  { %v8353_v15 = vadd.f32 %v2544_v4, %v8350_v0  ;;  %v6693_v5 = vpop.f32.mrb[23].mxu0 }
0x2aa7   :  { %v2549_v9 = vsel %vm2548_vm6, %v8353_v15, -inf }
0x2aa8   :  { %2550 = vmax.xlane.f32.xlu0 %v2549_v9 }
0x2b35   :  { %v8360_v10 = vpop.xlane.xlu0 %2550 }
0x2b36   :  { %vm2559_vm7 = vcmp.eq.f32.partialorder %v8353_v15, %v8360_v10 }
0x2b37   :  { %v2560_v11 = vsel %vm2559_vm7, %v8358_v12, 128 }
0x2b38   :  { %v2561_v13 = vsel %vm2548_vm6, %v2560_v11, 2147483647 }
0x2b39   :  { %v2563_v6 = vshra.s32 %v2561_v13, 16  ;;  %v2562_v21 = vand.u32 65535, %v2561_v13 }
0x2b3b   :  { %v2565_v14 = vcvt.s32.f32 %v2563_v6  ;;  %v2564_v23 = vcvt.s32.f32 %v2562_v21 }
0x2b3d   :  { %2566 = vmin.xlane.f32.xlu1 %v2565_v14 }
0x2bca   :  { %v2567_v22 = vpop.xlane.xlu1 %2566 }
0x2bcb   :  { %vm2568_vm8 = vcmp.eq.f32.partialorder %v2565_v14, %v2567_v22  ;;  %v2573_v28 = vcvt.f32.s32 %v2567_v22 }
0x2bcc   :  { %v2569_v24 = vsel %vm2568_vm8, %v2564_v23, inf }
0x2bcd   :  { %2570 = vmin.xlane.f32.xlu0 %v2569_v24  ;;  %v2574_v29 = vshll.u32 %v2573_v28, 16 }
0x2c5a   :  { %v2571_v62 = vpop.xlane.xlu0 %2570 }
0x2c5b   :  { %v2572_v7 = vcvt.f32.s32 %v2571_v62 }
0x2c5d   :  { %v8415_v36 = vadd.s32 %v2574_v29, %v2572_v7 }
0x2c5f   :  { %vm2579_vm9 = vcmp.eq.s32.totalorder %v8358_v12, %v8415_v36 }
0x2c60   :  { %6727 = vmatmul.mubr.msk.f32.vlgmr.msra.gmra.mrb[26].mxu1 %vm2579_vm9, %v7868_v37 }
0x2c61   :  { %7376 = vmatpush3.bf16.msra.mxu1 %v8299_v3  ;;  %6780 = vmatprep.mubr.msk.f32.mxu1 %vm7864_vm0, %v7865_v2 }
0x2c62   :  { %7377 = vmatprep.subr.bf16.mxu1 %v7863_v1 }
0x2c65   :  { %7379 = vmatpush3.bf16.msra.mxu1 %v8309_v51 }
0x2c66   :  { %7386 = vmatprep.subr.bf16.mxu1 %v7863_v1 }
0x2d33   :  { %v2648_v38 = vpop.f32.mrb[26].mxu1 }
0x2d34   :  { %v6728_v39 = vpop.f32.mrb[27].mxu1  ;;  %6738 = vmatmul.mubr.msk.f32.vlgmr.msra.gmra.mrb[24].mxu0 %vm141_vm1, %v2648_v38 }
0x2d35   :  { %7364 = vmatpush3.bf16.msra.mxu0 %v8231_v44  ;;  %6748 = vmatprep.mubr.msk.f32.mxu0 %vm7864_vm0, %v7865_v2 }
0x2d36   :  { %7365 = vmatprep.subr.bf16.mxu0 %v7863_v1 }
0x2d39   :  { %7367 = vmatpush3.bf16.msra.mxu0 %v8242_v27 }
0x2d3a   :  { %6751 = vmatprep.subr.mxu0 %v7865_v2 }
0x2d3c   :  { %6749 = vmatmul.mubr.msk.f32.vlgmr.msra.gmra.mrb[26].mxu0 %vm141_vm1, %v8272_v35 }
0x2d3d   :  { %6753 = vmatprep.mubr.msk.f32.mxu0 %vm7864_vm0, %v7865_v2 }
0x2d42   :  { %6752 = vmatpush3.xpose.msk.msra.mxu0 %vm141_vm1, %v8267_v31 }
0x2d43   :  { %6756 = vmatprep.subr.mxu0 %v7865_v2 }
0x2e07   :  { %v2721_v40 = vpop.f32.mrb[24].mxu0 }
0x2e08   :  { %v6739_v41 = vpop.f32.mrb[25].mxu0  ;;  %v2722_v49 = vadd.f32 %v2721_v40, %v8223_v43 }
0x2e0f   :  { %v2791_v42 = vpop.f32.mrb[26].mxu0 }
0x2e10   :  { %v2802_v47 = vadd.f32 %v2791_v42, %v8251_v50  ;;  %v6750_v48 = vpop.f32.mrb[27].mxu0  ;;  %v2795_v52 = vadd.f32 %v2791_v42, %v2722_v49 }
0x2e12   :  { %2804 = vrot.lane.b32.xlu1 %v2802_v47, %s7867_s0  ;;  %v5905_v35 = vmul.f32 -1.442695, %v2795_v52 }
0x2e14   :  { %7718 = vpow2.f32 %v5905_v35 }
0x2e1e   :  { %v7719_v53 = vpop.eup %7718 }
0x2e1f   :  { %v2799_v54 = vadd.f32 1.0, %v7719_v53 }
0x2e21   :  { %7720 = vrcp.f32 %v2799_v54 }
0x2e2b   :  { %v7721_v55 = vpop.eup %7720 }
0x2e2c   :  { %v2814_v4 = vsub.f32 1.0, %v7721_v55  ;;  %v2820_v9 = vmul.f32 %v7721_v55, %v8262_v26 }
0x2e84   :  { %v2805_v59 = vpop.permute.xlu1 %2804 }
0x2e85   :  { %v2807_v32 = vmul.f32 %v7721_v55, %v2805_v59 }
0x2e87   :  { %2809 = vrot.lane.b32.xlu0 %v2807_v32, %s7867_s0 }
0x2ef9   :  { %v2810_v60 = vpop.permute.xlu0 %2809 }
0x2efa   :  { %v2812_v61 = vadd.f32 %v2810_v60, %v2722_v49 }
0x2efc   :  { %7722 = vtanh.f32 %v2812_v61 }
0x2f06   :  { %v7723_v63 = vpop.eup %7722 }
0x2f07   :  { %2816 = vrot.lane.b32.xlu1 %v7723_v63, %s7866_s9 }
0x2f79   :  { %v2817_v5 = vpop.permute.xlu1 %2816 }
0x2f7a   :  { %v2819_v11 = vmul.f32 %v2817_v5, %v2814_v4 }
0x2f7c   :  { %v8446_v13 = vadd.f32 %v2820_v9, %v2819_v11 }
0x2f7e   :  { %2823 = vrot.lane.b32.xlu1 %v8446_v13, %s7866_s9 }
0x2ff0   :  { %v8450_v6 = vpop.permute.xlu1 %2823 }
0x2ff1   :  { %6754 = vmatmul.mubr.msk.f32.vlgmr.msra.gmra.mrb[28].mxu0 %vm141_vm1, %v8450_v6  ;;  %6781 = vmatmul.mubr.msk.f32.vlgmr.msra.gmra.mrb[28].mxu1 %vm141_vm1, %v8450_v6 }
0x2ff2   :  { %6757 = vmatpush3.msra.mxu0 %v8267_v31  ;;  %6758 = vmatprep.mubr.msk.f32.mxu0 %vm7864_vm0, %v7865_v2 }
0x2ff3   :  { %7368 = vmatprep.subr.bf16.mxu0 %v7863_v1  ;;  %7388 = vmatpush3.bf16.msra.mxu1 %v8211_v34 }
0x2ff4   :  { %7389 = vmatprep.subr.bf16.mxu1 %v7863_v1  ;;  %6826 = vmatprep.mubr.msk.f32.mxu1 %vm7864_vm0, %v7865_v2 }
0x2ff7   :  { %7391 = vmatpush3.bf16.msra.mxu1 %v8369_v16 }
0x2ff8   :  { %7392 = vmatprep.subr.bf16.mxu1 %v7863_v1 }
0x2ffb   :  { %7394 = vmatpush3.bf16.msra.mxu1 %v8376_v8 }
0x2ffc   :  { %7395 = vmatprep.subr.bf16.mxu1 %v7863_v1 }
0x2fff   :  { %7397 = vmatpush3.bf16.msra.mxu1 %v8383_v17 }
0x3000   :  { %7398 = vmatprep.subr.bf16.mxu1 %v7863_v1 }
0x3003   :  { %7400 = vmatpush3.bf16.msra.mxu1 %v8390_v18 }
0x3004   :  { %7401 = vmatprep.subr.bf16.mxu1 %v7863_v1 }
0x3007   :  { %7403 = vmatpush3.bf16.msra.mxu1 %v8397_v19 }
0x3008   :  { %7404 = vmatprep.subr.bf16.mxu1 %v7863_v1 }
0x300b   :  { %7406 = vmatpush3.bf16.msra.mxu1 %v8404_v20 }
0x300c   :  { %7407 = vmatprep.subr.bf16.mxu1 %v7863_v1 }
0x300f   :  { %7409 = vmatpush3.bf16.msra.mxu1 %v8411_v25 }
0x3010   :  { %7428 = vmatprep.subr.bf16.mxu1 %v7863_v1 }
0x30c4   :  { %v2893_v26 = vpop.f32.mrb[28].mxu0  ;;  %v3120_v14 = vpop.f32.mrb[28].mxu1 }
0x30c5   :  { %v6755_v21 = vpop.f32.mrb[29].mxu0  ;;  %v6782_v22 = vpop.f32.mrb[29].mxu1  ;;  %v2897_v23 = vsel %vm2241_vm4, %v2893_v26, -inf }
0x30c6   :  { %2898 = vmax.xlane.f32.xlu0 %v2897_v23 }
0x3153   :  { %v2899_v24 = vpop.xlane.xlu0 %2898 }
0x3154   :  { %v2900_v28 = vsub.f32 %v2893_v26, %v2899_v24 }
0x3156   :  { %v2901_v62 = vmul.f32 1.442695, %v2900_v28  ;;  %v2577_v28 = vsel %vm2576_vm12, %v8415_v36, 0 }
0x3158   :  { %7724 = vpow2.f32 %v2901_v62 }
0x3162   :  { %v7725_v29 = vpop.eup %7724 }
0x3163   :  { %v2903_v7 = vsel %vm2241_vm4, %v7725_v29, 0.0 }
0x3164   :  { %2904 = vadd.xlane.f32.xlu1 %v2903_v7 }
0x31f1   :  { %v2905_v38 = vpop.xlane.xlu1 %2904 }
0x31f2   :  { %7726 = vrcp.f32 %v2905_v38 }
0x31fc   :  { %v7727_v39 = vpop.eup %7726 }
0x31fd   :  { %v2907_v40 = vmul.f32 %v7727_v39, %v7725_v29 }
0x31ff   :  { %6759 = vmatmul.mubr.msk.f32.vlgmr.msra.gmra.mrb[30].mxu0 %vm2253_vm5, %v2907_v40 }
0x3200   :  { %7370 = vmatpush3.bf16.msra.mxu0 %v8285_v45  ;;  %6769 = vmatprep.mubr.msk.f32.mxu0 %vm7864_vm0, %v7865_v2 }
0x3201   :  { %7371 = vmatprep.subr.bf16.mxu0 %v7863_v1 }
0x3204   :  { %7373 = vmatpush3.bf16.msra.mxu0 %v8292_v46 }
0x3205   :  { %7380 = vmatprep.subr.bf16.mxu0 %v7863_v1 }
0x32d2   :  { %v2977_v41 = vpop.f32.mrb[30].mxu0 }
0x32d3   :  { %v6760_v42 = vpop.f32.mrb[31].mxu0  ;;  %6770 = vmatmul.mubr.msk.f32.vlgmr.msra.gmra.mrb[32].mxu0 %vm141_vm1, %v2977_v41 }
0x32d4   :  { %7382 = vmatpush3.bf16.msra.mxu0 %v8325_v56  ;;  %6791 = vmatprep.mubr.msk.f32.mxu0 %vm7864_vm0, %v7865_v2 }
0x32d5   :  { %7383 = vmatprep.subr.bf16.mxu0 %v7863_v1 }
0x32d8   :  { %7385 = vmatpush3.bf16.msra.mxu0 %v8332_v57 }
0x32d9   :  { %7410 = vmatprep.subr.bf16.mxu0 %v7863_v1 }
0x33a6   :  { %v3050_v47 = vpop.f32.mrb[32].mxu0 }
0x33a7   :  { %v3121_v48 = vadd.f32 %v3120_v14, %v3050_v47  ;;  %v6771_v49 = vpop.f32.mrb[33].mxu0 }
0x33a9   :  { %v3124_v52 = vadd.f32 %v3121_v48, %v8339_v58 }
0x33ab   :  { %7728 = vtanh.f32 %v3124_v52 }
0x33b5   :  { %v7729_v35 = vpop.eup %7728 }
0x33b6   :  { %6792 = vmatmul.mubr.msk.f32.vlgmr.msra.gmra.mrb[34].mxu0 %vm141_vm1, %v7729_v35 }
0x33b7   :  { %7412 = vmatpush3.bf16.msra.mxu0 %v8198_v30  ;;  %6837 = vmatprep.mubr.msk.f32.mxu0 %vm7864_vm0, %v7865_v2 }
0x33b8   :  { %7413 = vmatprep.subr.bf16.mxu0 %v7863_v1 }
0x33bb   :  { %7415 = vmatpush3.bf16.msra.mxu0 %v8206_v33 }
0x33bc   :  { %7416 = vmatprep.subr.bf16.mxu0 %v7863_v1 }
0x3489   :  { %v3195_v53 = vpop.f32.mrb[34].mxu0 }
0x348a   :  { %v8503_v54 = vadd.f32 %v3195_v53, %v8350_v0  ;;  %v6793_v55 = vpop.f32.mrb[35].mxu0 }
0x348c   :  { %v3199_v59 = vsel %vm2548_vm6, %v8503_v54, -inf }
0x348d   :  { %3200 = vmax.xlane.f32.xlu0 %v3199_v59 }
0x351a   :  { %v8507_v32 = vpop.xlane.xlu0 %3200 }
0x351b   :  { %vm3209_vm10 = vcmp.eq.f32.partialorder %v8503_v54, %v8507_v32 }
0x351c   :  { %v3210_v60 = vsel %vm3209_vm10, %v8358_v12, 128  ;;  %vm4526_vm10 = vcmp.eq.s32.totalorder %v8358_v12, 3 }
0x351d   :  { %v3211_v61 = vsel %vm2548_vm6, %v3210_v60, 2147483647 }
0x351e   :  { %v3213_v63 = vshra.s32 %v3211_v61, 16  ;;  %v3212_v5 = vand.u32 65535, %v3211_v61 }
0x3520   :  { %v3215_v4 = vcvt.s32.f32 %v3213_v63  ;;  %v3214_v11 = vcvt.s32.f32 %v3212_v5 }
0x3522   :  { %3216 = vmin.xlane.f32.xlu0 %v3215_v4 }
0x35af   :  { %v3217_v9 = vpop.xlane.xlu0 %3216 }
0x35b0   :  { %vm3218_vm11 = vcmp.eq.f32.partialorder %v3215_v4, %v3217_v9  ;;  %v3223_v14 = vcvt.f32.s32 %v3217_v9 }
0x35b1   :  { %v3219_v26 = vsel %vm3218_vm11, %v3214_v11, inf }
0x35b2   :  { %3220 = vmin.xlane.f32.xlu1 %v3219_v26  ;;  %v3224_v22 = vshll.u32 %v3223_v14, 16 }
0x363f   :  { %v3221_v21 = vpop.xlane.xlu1 %3220 }
0x3640   :  { %v3222_v23 = vcvt.f32.s32 %v3221_v21 }
0x3642   :  { %v3225_v24 = vadd.s32 %v3224_v22, %v3222_v23 }
0x3644   :  { %v8520_v62 = vsel %vm3226_vm13, %v3225_v24, %v2577_v28  ;;  %vm3229_vm14 = vcmp.eq.s32.totalorder %v8358_v12, %v3225_v24 }
0x3645   :  { %6827 = vmatmul.mubr.msk.f32.vlgmr.msra.gmra.mrb[30].mxu1 %vm3229_vm14, %v7868_v37 }
0x3646   :  { %7430 = vmatpush3.bf16.msra.mxu1 %v8299_v3  ;;  %6880 = vmatprep.mubr.msk.f32.mxu1 %vm7864_vm0, %v7865_v2 }
0x3647   :  { %7431 = vmatprep.subr.bf16.mxu1 %v7863_v1 }
0x364a   :  { %7433 = vmatpush3.bf16.msra.mxu1 %v8309_v51 }
0x364b   :  { %7440 = vmatprep.subr.bf16.mxu1 %v7863_v1 }
0x3718   :  { %v3298_v36 = vpop.f32.mrb[30].mxu1 }
0x3719   :  { %v6828_v29 = vpop.f32.mrb[31].mxu1  ;;  %6838 = vmatmul.mubr.msk.f32.vlgmr.msra.gmra.mrb[36].mxu0 %vm141_vm1, %v3298_v36 }
0x371a   :  { %7418 = vmatpush3.bf16.msra.mxu0 %v8231_v44  ;;  %6848 = vmatprep.mubr.msk.f32.mxu0 %vm7864_vm0, %v7865_v2 }
0x371b   :  { %7419 = vmatprep.subr.bf16.mxu0 %v7863_v1 }
0x371e   :  { %7421 = vmatpush3.bf16.msra.mxu0 %v8242_v27 }
0x371f   :  { %6851 = vmatprep.subr.mxu0 %v7865_v2 }
0x3721   :  { %6849 = vmatmul.mubr.msk.f32.vlgmr.msra.gmra.mrb[38].mxu0 %vm141_vm1, %v8450_v6 }
0x3722   :  { %6853 = vmatprep.mubr.msk.f32.mxu0 %vm7864_vm0, %v7865_v2 }
0x3727   :  { %6852 = vmatpush3.xpose.msk.msra.mxu0 %vm141_vm1, %v8267_v31 }
0x3728   :  { %6856 = vmatprep.subr.mxu0 %v7865_v2 }
0x37ec   :  { %v3371_v7 = vpop.f32.mrb[36].mxu0 }
0x37ed   :  { %v6839_v38 = vpop.f32.mrb[37].mxu0  ;;  %v3372_v42 = vadd.f32 %v3371_v7, %v8223_v43 }
0x37f4   :  { %v3441_v39 = vpop.f32.mrb[38].mxu0 }
0x37f5   :  { %v3452_v40 = vadd.f32 %v3441_v39, %v8251_v50  ;;  %v6850_v41 = vpop.f32.mrb[39].mxu0  ;;  %v3445_v47 = vadd.f32 %v3441_v39, %v3372_v42 }
0x37f7   :  { %3454 = vrot.lane.b32.xlu0 %v3452_v40, %s7867_s0  ;;  %v5916_v6 = vmul.f32 -1.442695, %v3445_v47 }
0x37f9   :  { %7730 = vpow2.f32 %v5916_v6 }
0x3803   :  { %v7731_v48 = vpop.eup %7730 }
0x3804   :  { %v3449_v49 = vadd.f32 1.0, %v7731_v48 }
0x3806   :  { %7732 = vrcp.f32 %v3449_v49 }
0x3810   :  { %v7733_v52 = vpop.eup %7732 }
0x3811   :  { %v3464_v61 = vsub.f32 1.0, %v7733_v52  ;;  %v3470_v4 = vmul.f32 %v7733_v52, %v8446_v13 }
0x3869   :  { %v3455_v35 = vpop.permute.xlu0 %3454 }
0x386a   :  { %v3457_v53 = vmul.f32 %v7733_v52, %v3455_v35 }
0x386c   :  { %3459 = vrot.lane.b32.xlu1 %v3457_v53, %s7867_s0 }
0x38de   :  { %v3460_v55 = vpop.permute.xlu1 %3459 }
0x38df   :  { %v3462_v59 = vadd.f32 %v3460_v55, %v3372_v42 }
0x38e1   :  { %7734 = vtanh.f32 %v3462_v59 }
0x38eb   :  { %v7735_v60 = vpop.eup %7734 }
0x38ec   :  { %3466 = vrot.lane.b32.xlu1 %v7735_v60, %s7866_s9 }
0x395e   :  { %v3467_v63 = vpop.permute.xlu1 %3466 }
0x395f   :  { %v3469_v5 = vmul.f32 %v3467_v63, %v3464_v61 }
0x3961   :  { %v8550_v9 = vadd.f32 %v3470_v4, %v3469_v5 }
0x3963   :  { %3473 = vrot.lane.b32.xlu0 %v8550_v9, %s7866_s9 }
0x39d5   :  { %v8554_v11 = vpop.permute.xlu0 %3473 }
0x39d6   :  { %6854 = vmatmul.mubr.msk.f32.vlgmr.msra.gmra.mrb[40].mxu0 %vm141_vm1, %v8554_v11  ;;  %6881 = vmatmul.mubr.msk.f32.vlgmr.msra.gmra.mrb[32].mxu1 %vm141_vm1, %v8554_v11 }
0x39d7   :  { %6857 = vmatpush3.msra.mxu0 %v8267_v31  ;;  %6858 = vmatprep.mubr.msk.f32.mxu0 %vm7864_vm0, %v7865_v2 }
0x39d8   :  { %7422 = vmatprep.subr.bf16.mxu0 %v7863_v1  ;;  %7442 = vmatpush3.bf16.msra.mxu1 %v8211_v34 }
0x39d9   :  { %7443 = vmatprep.subr.bf16.mxu1 %v7863_v1  ;;  %6926 = vmatprep.mubr.msk.f32.mxu1 %vm7864_vm0, %v7865_v2 }
0x39dc   :  { %7445 = vmatpush3.bf16.msra.mxu1 %v8369_v16 }
0x39dd   :  { %7446 = vmatprep.subr.bf16.mxu1 %v7863_v1 }
0x39e0   :  { %7448 = vmatpush3.bf16.msra.mxu1 %v8376_v8 }
0x39e1   :  { %7449 = vmatprep.subr.bf16.mxu1 %v7863_v1 }
0x39e4   :  { %7451 = vmatpush3.bf16.msra.mxu1 %v8383_v17 }
0x39e5   :  { %7452 = vmatprep.subr.bf16.mxu1 %v7863_v1 }
0x39e8   :  { %7454 = vmatpush3.bf16.msra.mxu1 %v8390_v18 }
0x39e9   :  { %7455 = vmatprep.subr.bf16.mxu1 %v7863_v1 }
0x39ec   :  { %7457 = vmatpush3.bf16.msra.mxu1 %v8397_v19 }
0x39ed   :  { %7458 = vmatprep.subr.bf16.mxu1 %v7863_v1 }
0x39f0   :  { %7460 = vmatpush3.bf16.msra.mxu1 %v8404_v20 }
0x39f1   :  { %7461 = vmatprep.subr.bf16.mxu1 %v7863_v1 }
0x39f4   :  { %7463 = vmatpush3.bf16.msra.mxu1 %v8411_v25 }
0x39f5   :  { %7482 = vmatprep.subr.bf16.mxu1 %v7863_v1 }
0x3aa9   :  { %v3543_v34 = vpop.f32.mrb[40].mxu0  ;;  %v3770_v13 = vpop.f32.mrb[32].mxu1 }
0x3aaa   :  { %v6855_v26 = vpop.f32.mrb[41].mxu0  ;;  %v6882_v14 = vpop.f32.mrb[33].mxu1  ;;  %v3547_v21 = vsel %vm2241_vm4, %v3543_v34, -inf }
0x3aab   :  { %3548 = vmax.xlane.f32.xlu1 %v3547_v21 }
0x3b38   :  { %v3549_v22 = vpop.xlane.xlu1 %3548 }
0x3b39   :  { %v3550_v23 = vsub.f32 %v3543_v34, %v3549_v22 }
0x3b3b   :  { %v3551_v24 = vmul.f32 1.442695, %v3550_v23 }
0x3b3d   :  { %7736 = vpow2.f32 %v3551_v24 }
0x3b47   :  { %v7737_v28 = vpop.eup %7736 }
0x3b48   :  { %v3553_v36 = vsel %vm2241_vm4, %v7737_v28, 0.0 }
0x3b49   :  { %3554 = vadd.xlane.f32.xlu0 %v3553_v36 }
0x3bd6   :  { %v3555_v29 = vpop.xlane.xlu0 %3554 }
0x3bd7   :  { %7738 = vrcp.f32 %v3555_v29 }
0x3be1   :  { %v7739_v7 = vpop.eup %7738 }
0x3be2   :  { %v3557_v38 = vmul.f32 %v7739_v7, %v7737_v28 }
0x3be4   :  { %6859 = vmatmul.mubr.msk.f32.vlgmr.msra.gmra.mrb[42].mxu0 %vm2253_vm5, %v3557_v38 }
0x3be5   :  { %7424 = vmatpush3.bf16.msra.mxu0 %v8285_v45  ;;  %6869 = vmatprep.mubr.msk.f32.mxu0 %vm7864_vm0, %v7865_v2 }
0x3be6   :  { %7425 = vmatprep.subr.bf16.mxu0 %v7863_v1 }
0x3be9   :  { %7427 = vmatpush3.bf16.msra.mxu0 %v8292_v46 }
0x3bea   :  { %7434 = vmatprep.subr.bf16.mxu0 %v7863_v1 }
0x3cb7   :  { %v3627_v39 = vpop.f32.mrb[42].mxu0 }
0x3cb8   :  { %v6860_v40 = vpop.f32.mrb[43].mxu0  ;;  %6870 = vmatmul.mubr.msk.f32.vlgmr.msra.gmra.mrb[44].mxu0 %vm141_vm1, %v3627_v39 }
0x3cb9   :  { %7436 = vmatpush3.bf16.msra.mxu0 %v8325_v56  ;;  %6891 = vmatprep.mubr.msk.f32.mxu0 %vm7864_vm0, %v7865_v2 }
0x3cba   :  { %7437 = vmatprep.subr.bf16.mxu0 %v7863_v1 }
0x3cbd   :  { %7439 = vmatpush3.bf16.msra.mxu0 %v8332_v57 }
0x3cbe   :  { %7464 = vmatprep.subr.bf16.mxu0 %v7863_v1 }
0x3d8b   :  { %v3700_v41 = vpop.f32.mrb[44].mxu0 }
0x3d8c   :  { %v3771_v42 = vadd.f32 %v3770_v13, %v3700_v41  ;;  %v6871_v47 = vpop.f32.mrb[45].mxu0 }
0x3d8e   :  { %v3774_v6 = vadd.f32 %v3771_v42, %v8339_v58 }
0x3d90   :  { %7740 = vtanh.f32 %v3774_v6 }
0x3d9a   :  { %v7741_v48 = vpop.eup %7740 }
0x3d9b   :  { %6892 = vmatmul.mubr.msk.f32.vlgmr.msra.gmra.mrb[46].mxu0 %vm141_vm1, %v7741_v48 }
0x3d9c   :  { %7466 = vmatpush3.bf16.msra.mxu0 %v8198_v30  ;;  %6937 = vmatprep.mubr.msk.f32.mxu0 %vm7864_vm0, %v7865_v2 }
0x3d9d   :  { %7467 = vmatprep.subr.bf16.mxu0 %v7863_v1 }
0x3da0   :  { %7469 = vmatpush3.bf16.msra.mxu0 %v8206_v33 }
0x3da1   :  { %7470 = vmatprep.subr.bf16.mxu0 %v7863_v1 }
0x3e6e   :  { %v3845_v49 = vpop.f32.mrb[46].mxu0 }
0x3e6f   :  { %v8607_v52 = vadd.f32 %v3845_v49, %v8350_v0  ;;  %v6893_v35 = vpop.f32.mrb[47].mxu0 }
0x3e71   :  { %v3849_v53 = vsel %vm2548_vm6, %v8607_v52, -inf }
0x3e72   :  { %3850 = vmax.xlane.f32.xlu0 %v3849_v53 }
0x3eff   :  { %v8611_v55 = vpop.xlane.xlu0 %3850 }
0x3f00   :  { %vm3859_vm15 = vcmp.eq.f32.partialorder %v8607_v52, %v8611_v55 }
0x3f01   :  { %v3860_v30 = vsel %vm3859_vm15, %v8358_v12, 128 }
0x3f02   :  { %v3861_v33 = vsel %vm2548_vm6, %v3860_v30, 2147483647 }
0x3f03   :  { %v3863_v59 = vshra.s32 %v3861_v33, 16  ;;  %v3862_v61 = vand.u32 65535, %v3861_v33 }
0x3f05   :  { %v3865_v60 = vcvt.s32.f32 %v3863_v59  ;;  %v3864_v4 = vcvt.s32.f32 %v3862_v61 }
0x3f07   :  { %3866 = vmin.xlane.f32.xlu1 %v3865_v60 }
0x3f94   :  { %v3867_v63 = vpop.xlane.xlu1 %3866 }
0x3f95   :  { %vm3868_vm2 = vcmp.eq.f32.partialorder %v3865_v60, %v3867_v63  ;;  %v3873_v34 = vcvt.f32.s32 %v3867_v63 }
0x3f96   :  { %v3869_v5 = vsel %vm3868_vm2, %v3864_v4, inf  ;;  %vm5176_vm2 = vcmp.eq.s32.totalorder %v8358_v12, 4 }
0x3f97   :  { %3870 = vmin.xlane.f32.xlu0 %v3869_v5  ;;  %v3874_v26 = vshll.u32 %v3873_v34, 16 }
0x4024   :  { %v3871_v13 = vpop.xlane.xlu0 %3870 }
0x4025   :  { %v3872_v14 = vcvt.f32.s32 %v3871_v13 }
0x4027   :  { %v3875_v21 = vadd.s32 %v3874_v26, %v3872_v14 }
0x4029   :  { %v8621_v22 = vsel %vm3876_vm3, %v3875_v21, %v8520_v62  ;;  %vm3879_vm7 = vcmp.eq.s32.totalorder %v8358_v12, %v3875_v21 }
0x402a   :  { %6927 = vmatmul.mubr.msk.f32.vlgmr.msra.gmra.mrb[34].mxu1 %vm3879_vm7, %v7868_v37 }
0x402b   :  { %7484 = vmatpush3.bf16.msra.mxu1 %v8299_v3  ;;  %6980 = vmatprep.mubr.msk.f32.mxu1 %vm7864_vm0, %v7865_v2 }
0x402c   :  { %7485 = vmatprep.subr.bf16.mxu1 %v7863_v1 }
0x402f   :  { %7487 = vmatpush3.bf16.msra.mxu1 %v8309_v51 }
0x4030   :  { %7494 = vmatprep.subr.bf16.mxu1 %v7863_v1 }
0x40fd   :  { %v3948_v23 = vpop.f32.mrb[34].mxu1 }
0x40fe   :  { %v6928_v24 = vpop.f32.mrb[35].mxu1  ;;  %6938 = vmatmul.mubr.msk.f32.vlgmr.msra.gmra.mrb[48].mxu0 %vm141_vm1, %v3948_v23 }
0x40ff   :  { %7472 = vmatpush3.bf16.msra.mxu0 %v8231_v44  ;;  %6948 = vmatprep.mubr.msk.f32.mxu0 %vm7864_vm0, %v7865_v2 }
0x4100   :  { %7473 = vmatprep.subr.bf16.mxu0 %v7863_v1 }
0x4103   :  { %7475 = vmatpush3.bf16.msra.mxu0 %v8242_v27 }
0x4104   :  { %6951 = vmatprep.subr.mxu0 %v7865_v2 }
0x4106   :  { %6949 = vmatmul.mubr.msk.f32.vlgmr.msra.gmra.mrb[50].mxu0 %vm141_vm1, %v8554_v11 }
0x4107   :  { %6953 = vmatprep.mubr.msk.f32.mxu0 %vm7864_vm0, %v7865_v2 }
0x410c   :  { %6952 = vmatpush3.xpose.msk.msra.mxu0 %vm141_vm1, %v8267_v31 }
0x410d   :  { %6956 = vmatprep.subr.mxu0 %v7865_v2 }
0x41d1   :  { %v4021_v44 = vpop.f32.mrb[48].mxu0 }
0x41d2   :  { %v6939_v62 = vpop.f32.mrb[49].mxu0  ;;  %v4022_v27 = vadd.f32 %v4021_v44, %v8223_v43 }
0x41d9   :  { %v4091_v28 = vpop.f32.mrb[50].mxu0 }
0x41da   :  { %v4102_v36 = vadd.f32 %v4091_v28, %v8251_v50  ;;  %v6950_v29 = vpop.f32.mrb[51].mxu0  ;;  %v4095_v7 = vadd.f32 %v4091_v28, %v4022_v27 }
0x41dc   :  { %4104 = vrot.lane.b32.xlu1 %v4102_v36, %s7867_s0  ;;  %v5927_v11 = vmul.f32 -1.442695, %v4095_v7 }
0x41de   :  { %7742 = vpow2.f32 %v5927_v11 }
0x41e8   :  { %v7743_v38 = vpop.eup %7742 }
0x41e9   :  { %v4099_v39 = vadd.f32 1.0, %v7743_v38 }
0x41eb   :  { %7744 = vrcp.f32 %v4099_v39 }
0x41f5   :  { %v7745_v40 = vpop.eup %7744 }
0x41f6   :  { %v4114_v49 = vsub.f32 1.0, %v7745_v40  ;;  %v4120_v53 = vmul.f32 %v7745_v40, %v8550_v9  ;;  %v8668_v9 = vld [vmem:[%s8993_s1] sm:$0xff]  }
0x424e   :  { %v4105_v41 = vpop.permute.xlu1 %4104 }
0x424f   :  { %v4107_v42 = vmul.f32 %v7745_v40, %v4105_v41 }
0x4251   :  { %4109 = vrot.lane.b32.xlu0 %v4107_v42, %s7867_s0 }
0x42c3   :  { %v4110_v47 = vpop.permute.xlu0 %4109 }
0x42c4   :  { %v4112_v6 = vadd.f32 %v4110_v47, %v4022_v27 }
0x42c6   :  { %7746 = vtanh.f32 %v4112_v6 }
0x42d0   :  { %v7747_v48 = vpop.eup %7746 }
0x42d1   :  { %4116 = vrot.lane.b32.xlu1 %v7747_v48, %s7866_s9 }
0x4343   :  { %v4117_v35 = vpop.permute.xlu1 %4116 }
0x4344   :  { %v4119_v30 = vmul.f32 %v4117_v35, %v4114_v49 }
0x4346   :  { %v8651_v33 = vadd.f32 %v4120_v53, %v4119_v30 }
0x4348   :  { %4123 = vrot.lane.b32.xlu1 %v8651_v33, %s7866_s9 }
0x43ba   :  { %v8655_v59 = vpop.permute.xlu1 %4123 }
0x43bb   :  { %6954 = vmatmul.mubr.msk.f32.vlgmr.msra.gmra.mrb[52].mxu0 %vm141_vm1, %v8655_v59  ;;  %6981 = vmatmul.mubr.msk.f32.vlgmr.msra.gmra.mrb[36].mxu1 %vm141_vm1, %v8655_v59 }
0x43bc   :  { %6957 = vmatpush3.msra.mxu0 %v8267_v31  ;;  %6958 = vmatprep.mubr.msk.f32.mxu0 %vm7864_vm0, %v7865_v2 }
0x43bd   :  { %7476 = vmatprep.subr.bf16.mxu0 %v7863_v1  ;;  %7496 = vmatpush3.bf16.msra.mxu1 %v8668_v9 }
0x43be   :  { %7497 = vmatprep.subr.bf16.mxu1 %v7863_v1  ;;  %7026 = vmatprep.mubr.msk.f32.mxu1 %vm7864_vm0, %v7865_v2 }
0x43c1   :  { %7499 = vmatpush3.bf16.msra.mxu1 %v8369_v16 }
0x43c2   :  { %7500 = vmatprep.subr.bf16.mxu1 %v7863_v1 }
0x43c5   :  { %7502 = vmatpush3.bf16.msra.mxu1 %v8376_v8 }
0x43c6   :  { %7503 = vmatprep.subr.bf16.mxu1 %v7863_v1 }
0x43c9   :  { %7505 = vmatpush3.bf16.msra.mxu1 %v8383_v17 }
0x43ca   :  { %7506 = vmatprep.subr.bf16.mxu1 %v7863_v1 }
0x43cd   :  { %7508 = vmatpush3.bf16.msra.mxu1 %v8390_v18 }
0x43ce   :  { %7509 = vmatprep.subr.bf16.mxu1 %v7863_v1 }
0x43d1   :  { %7511 = vmatpush3.bf16.msra.mxu1 %v8397_v19 }
0x43d2   :  { %7512 = vmatprep.subr.bf16.mxu1 %v7863_v1 }
0x43d5   :  { %7514 = vmatpush3.bf16.msra.mxu1 %v8404_v20 }
0x43d6   :  { %7515 = vmatprep.subr.bf16.mxu1 %v7863_v1 }
0x43d9   :  { %7517 = vmatpush3.bf16.msra.mxu1 %v8411_v25 }
0x43da   :  { %7536 = vmatprep.subr.bf16.mxu1 %v7863_v1 }
0x448e   :  { %v4193_v60 = vpop.f32.mrb[52].mxu0  ;;  %v4420_v61 = vpop.f32.mrb[36].mxu1 }
0x448f   :  { %v6955_v63 = vpop.f32.mrb[53].mxu0  ;;  %v6982_v4 = vpop.f32.mrb[37].mxu1  ;;  %v4197_v5 = vsel %vm2241_vm4, %v4193_v60, -inf }
0x4490   :  { %4198 = vmax.xlane.f32.xlu0 %v4197_v5 }
0x451d   :  { %v4199_v34 = vpop.xlane.xlu0 %4198 }
0x451e   :  { %v4200_v13 = vsub.f32 %v4193_v60, %v4199_v34 }
0x4520   :  { %v4201_v26 = vmul.f32 1.442695, %v4200_v13 }
0x4522   :  { %7748 = vpow2.f32 %v4201_v26 }
0x452c   :  { %v7749_v14 = vpop.eup %7748 }
0x452d   :  { %v4203_v21 = vsel %vm2241_vm4, %v7749_v14, 0.0 }
0x452e   :  { %4204 = vadd.xlane.f32.xlu1 %v4203_v21 }
0x45bb   :  { %v4205_v23 = vpop.xlane.xlu1 %4204 }
0x45bc   :  { %7750 = vrcp.f32 %v4205_v23 }
0x45c6   :  { %v7751_v24 = vpop.eup %7750 }
0x45c7   :  { %v4207_v44 = vmul.f32 %v7751_v24, %v7749_v14 }
0x45c9   :  { %6959 = vmatmul.mubr.msk.f32.vlgmr.msra.gmra.mrb[54].mxu0 %vm2253_vm5, %v4207_v44 }
0x45ca   :  { %7478 = vmatpush3.bf16.msra.mxu0 %v8285_v45  ;;  %6969 = vmatprep.mubr.msk.f32.mxu0 %vm7864_vm0, %v7865_v2 }
0x45cb   :  { %7479 = vmatprep.subr.bf16.mxu0 %v7863_v1 }
0x45ce   :  { %7481 = vmatpush3.bf16.msra.mxu0 %v8292_v46 }
0x45cf   :  { %7488 = vmatprep.subr.bf16.mxu0 %v7863_v1 }
0x469c   :  { %v4277_v62 = vpop.f32.mrb[54].mxu0 }
0x469d   :  { %v6960_v28 = vpop.f32.mrb[55].mxu0  ;;  %6970 = vmatmul.mubr.msk.f32.vlgmr.msra.gmra.mrb[56].mxu0 %vm141_vm1, %v4277_v62 }
0x469e   :  { %7490 = vmatpush3.bf16.msra.mxu0 %v8325_v56  ;;  %6991 = vmatprep.mubr.msk.f32.mxu0 %vm7864_vm0, %v7865_v2  ;;  %v8709_v56 = vld [vmem:[%s8994_s2 + $0x20] sm:$0xff]  }
0x469f   :  { %7491 = vmatprep.subr.bf16.mxu0 %v7863_v1 }
0x46a2   :  { %7493 = vmatpush3.bf16.msra.mxu0 %v8332_v57  ;;  %v8718_v57 = vld [vmem:[%s8994_s2 + $0x28] sm:$0xff]  }
0x46a3   :  { %7518 = vmatprep.subr.bf16.mxu0 %v7863_v1 }
0x4770   :  { %v4350_v45 = vpop.f32.mrb[56].mxu0 }
0x4771   :  { %v4421_v36 = vadd.f32 %v4420_v61, %v4350_v45  ;;  %v6971_v46 = vpop.f32.mrb[57].mxu0 }
0x4773   :  { %v4424_v29 = vadd.f32 %v4421_v36, %v8339_v58 }
0x4775   :  { %7752 = vtanh.f32 %v4424_v29 }
0x477f   :  { %v7753_v27 = vpop.eup %7752 }
0x4780   :  { %6992 = vmatmul.mubr.msk.f32.vlgmr.msra.gmra.mrb[58].mxu0 %vm141_vm1, %v7753_v27 }
0x4781   :  { %7520 = vmatpush3.bf16.msra.mxu0 %v8709_v56  ;;  %7037 = vmatprep.mubr.msk.f32.mxu0 %vm7864_vm0, %v7865_v2 }
0x4782   :  { %7521 = vmatprep.subr.bf16.mxu0 %v7863_v1 }
0x4785   :  { %7523 = vmatpush3.bf16.msra.mxu0 %v8718_v57 }
0x4786   :  { %7524 = vmatprep.subr.bf16.mxu0 %v7863_v1 }
0x4853   :  { %v4495_v58 = vpop.f32.mrb[58].mxu0 }
0x4854   :  { %v8723_v7 = vadd.f32 %v4495_v58, %v8350_v0  ;;  %v6993_v11 = vpop.f32.mrb[59].mxu0 }
0x4856   :  { %v4499_v38 = vsel %vm2548_vm6, %v8723_v7, -inf }
0x4857   :  { %4500 = vmax.xlane.f32.xlu0 %v4499_v38 }
0x48e4   :  { %v8727_v39 = vpop.xlane.xlu0 %4500 }
0x48e5   :  { %vm4509_vm8 = vcmp.eq.f32.partialorder %v8723_v7, %v8727_v39 }
0x48e6   :  { %v4510_v40 = vsel %vm4509_vm8, %v8358_v12, 128 }
0x48e7   :  { %v4511_v41 = vsel %vm2548_vm6, %v4510_v40, 2147483647 }
0x48e8   :  { %v4513_v42 = vshra.s32 %v4511_v41, 16  ;;  %v4512_v6 = vand.u32 65535, %v4511_v41 }
0x48ea   :  { %v4515_v47 = vcvt.s32.f32 %v4513_v42  ;;  %v4514_v49 = vcvt.s32.f32 %v4512_v6 }
0x48ec   :  { %4516 = vmin.xlane.f32.xlu0 %v4515_v47 }
0x4979   :  { %v4517_v48 = vpop.xlane.xlu0 %4516 }
0x497a   :  { %vm4518_vm9 = vcmp.eq.f32.partialorder %v4515_v47, %v4517_v48  ;;  %v4523_v53 = vcvt.f32.s32 %v4517_v48 }
0x497b   :  { %v4519_v35 = vsel %vm4518_vm9, %v4514_v49, inf }
0x497c   :  { %4520 = vmin.xlane.f32.xlu1 %v4519_v35  ;;  %v4524_v60 = vshll.u32 %v4523_v53, 16  ;;  %v8815_v35 = vld [vmem:[%s8995_s3 + $0x10] sm:$0xff]   ;;  %v8824_v53 = vld [vmem:[%s8995_s3 + $0x18] sm:$0xff]  }
0x4a09   :  { %v4521_v30 = vpop.xlane.xlu1 %4520 }
0x4a0a   :  { %v4522_v61 = vcvt.f32.s32 %v4521_v30 }
0x4a0c   :  { %v4525_v63 = vadd.s32 %v4524_v60, %v4522_v61  ;;  %v8832_v61 = vld [vmem:[%s8996_s4] sm:$0xff]  }
0x4a0e   :  { %vm4529_vm11 = vcmp.eq.s32.totalorder %v8358_v12, %v4525_v63  ;;  %v8738_v4 = vsel %vm4526_vm10, %v4525_v63, %v8621_v22  ;;  %v8751_v22 = vld [vmem:[%s8994_s2 + $0x50] sm:$0xff]   ;;  %v8841_v63 = vld [vmem:[%s8996_s4 + $0x8] sm:$0xff]  }
0x4a0f   :  { %7027 = vmatmul.mubr.msk.f32.vlgmr.msra.gmra.mrb[38].mxu1 %vm4529_vm11, %v7868_v37 }
0x4a10   :  { %7538 = vmatpush3.bf16.msra.mxu1 %v8299_v3  ;;  %7080 = vmatprep.mubr.msk.f32.mxu1 %vm7864_vm0, %v7865_v2  ;;  %v8760_v3 = vld [vmem:[%s8994_s2 + $0x58] sm:$0xff]  }
0x4a11   :  { %7539 = vmatprep.subr.bf16.mxu1 %v7863_v1 }
0x4a14   :  { %7541 = vmatpush3.bf16.msra.mxu1 %v8309_v51 }
0x4a15   :  { %7548 = vmatprep.subr.bf16.mxu1 %v7863_v1 }
0x4ae2   :  { %v4598_v5 = vpop.f32.mrb[38].mxu1 }
0x4ae3   :  { %v7028_v34 = vpop.f32.mrb[39].mxu1  ;;  %7038 = vmatmul.mubr.msk.f32.vlgmr.msra.gmra.mrb[60].mxu0 %vm141_vm1, %v4598_v5 }
0x4ae4   :  { %7526 = vmatpush3.bf16.msra.mxu0 %v8751_v22  ;;  %7048 = vmatprep.mubr.msk.f32.mxu0 %vm7864_vm0, %v7865_v2 }
0x4ae5   :  { %7527 = vmatprep.subr.bf16.mxu0 %v7863_v1 }
0x4ae8   :  { %7529 = vmatpush3.bf16.msra.mxu0 %v8760_v3 }
0x4ae9   :  { %7051 = vmatprep.subr.mxu0 %v7865_v2 }
0x4aeb   :  { %7049 = vmatmul.mubr.msk.f32.vlgmr.msra.gmra.mrb[62].mxu0 %vm141_vm1, %v8655_v59 }
0x4aec   :  { %7053 = vmatprep.mubr.msk.f32.mxu0 %vm7864_vm0, %v7865_v2 }
0x4af1   :  { %7052 = vmatpush3.xpose.msk.msra.mxu0 %vm141_vm1, %v8267_v31 }
0x4af2   :  { %7056 = vmatprep.subr.mxu0 %v7865_v2 }
0x4bb6   :  { %v4671_v51 = vpop.f32.mrb[60].mxu0 }
0x4bb7   :  { %v7039_v13 = vpop.f32.mrb[61].mxu0  ;;  %v4672_v23 = vadd.f32 %v4671_v51, %v8223_v43 }
0x4bb8   :  { %v8848_v13 = vld [vmem:[%s8998_s6] sm:$0x3] }
0x4bbe   :  { %v4741_v26 = vpop.f32.mrb[62].mxu0 }
0x4bbf   :  { %v4752_v14 = vadd.f32 %v4741_v26, %v8251_v50  ;;  %v7050_v21 = vpop.f32.mrb[63].mxu0  ;;  %v4745_v24 = vadd.f32 %v4741_v26, %v4672_v23 }
0x4bc1   :  { %4754 = vrot.lane.b32.xlu0 %v4752_v14, %s7867_s0  ;;  %v5938_v59 = vmul.f32 -1.442695, %v4745_v24 }
0x4bc3   :  { %7754 = vpow2.f32 %v5938_v59 }
0x4bcd   :  { %v7755_v44 = vpop.eup %7754 }
0x4bce   :  { %v4749_v62 = vadd.f32 1.0, %v7755_v44 }
0x4bd0   :  { %7756 = vrcp.f32 %v4749_v62 }
0x4bda   :  { %v7757_v28 = vpop.eup %7756 }
0x4bdb   :  { %v4764_v58 = vsub.f32 1.0, %v7757_v28  ;;  %v4770_v38 = vmul.f32 %v7757_v28, %v8651_v33 }
0x4c33   :  { %v4755_v45 = vpop.permute.xlu0 %4754 }
0x4c34   :  { %v4757_v36 = vmul.f32 %v7757_v28, %v4755_v45 }
0x4c36   :  { %4759 = vrot.lane.b32.xlu1 %v4757_v36, %s7867_s0 }
0x4ca8   :  { %v4760_v46 = vpop.permute.xlu1 %4759 }
0x4ca9   :  { %v4762_v29 = vadd.f32 %v4760_v46, %v4672_v23 }
0x4cab   :  { %7758 = vtanh.f32 %v4762_v29 }
0x4cb5   :  { %v7759_v27 = vpop.eup %7758 }
0x4cb6   :  { %4766 = vrot.lane.b32.xlu1 %v7759_v27, %s7866_s9 }
0x4d28   :  { %v4767_v11 = vpop.permute.xlu1 %4766 }
0x4d29   :  { %v4769_v40 = vmul.f32 %v4767_v11, %v4764_v58 }
0x4d2b   :  { %v8777_v41 = vadd.f32 %v4770_v38, %v4769_v40 }
0x4d2d   :  { %4773 = vrot.lane.b32.xlu0 %v8777_v41, %s7866_s9 }
0x4d9f   :  { %v8781_v42 = vpop.permute.xlu0 %4773 }
0x4da0   :  { %7054 = vmatmul.mubr.msk.f32.vlgmr.msra.gmra.mrb[64].mxu0 %vm141_vm1, %v8781_v42  ;;  %7081 = vmatmul.mubr.msk.f32.vlgmr.msra.gmra.mrb[40].mxu1 %vm141_vm1, %v8781_v42 }
0x4da1   :  { %7057 = vmatpush3.msra.mxu0 %v8267_v31  ;;  %7058 = vmatprep.mubr.msk.f32.mxu0 %vm7864_vm0, %v7865_v2 }
0x4da2   :  { %7530 = vmatprep.subr.bf16.mxu0 %v7863_v1  ;;  %7550 = vmatpush3.bf16.msra.mxu1 %v8668_v9 }
0x4da3   :  { %7551 = vmatprep.subr.bf16.mxu1 %v7863_v1  ;;  %7126 = vmatprep.mubr.msk.f32.mxu1 %vm7864_vm0, %v7865_v2 }
0x4da6   :  { %7553 = vmatpush3.bf16.msra.mxu1 %v8369_v16 }
0x4da7   :  { %7554 = vmatprep.subr.bf16.mxu1 %v7863_v1 }
0x4daa   :  { %7556 = vmatpush3.bf16.msra.mxu1 %v8376_v8 }
0x4dab   :  { %7557 = vmatprep.subr.bf16.mxu1 %v7863_v1 }
0x4dae   :  { %7559 = vmatpush3.bf16.msra.mxu1 %v8383_v17 }
0x4daf   :  { %7560 = vmatprep.subr.bf16.mxu1 %v7863_v1 }
0x4db2   :  { %7562 = vmatpush3.bf16.msra.mxu1 %v8390_v18 }
0x4db3   :  { %7563 = vmatprep.subr.bf16.mxu1 %v7863_v1 }
0x4db6   :  { %7565 = vmatpush3.bf16.msra.mxu1 %v8397_v19 }
0x4db7   :  { %7566 = vmatprep.subr.bf16.mxu1 %v7863_v1 }
0x4dba   :  { %7568 = vmatpush3.bf16.msra.mxu1 %v8404_v20 }
0x4dbb   :  { %7569 = vmatprep.subr.bf16.mxu1 %v7863_v1 }
0x4dbe   :  { %7571 = vmatpush3.bf16.msra.mxu1 %v8411_v25 }
0x4dbf   :  { %7590 = vmatprep.subr.bf16.mxu1 %v7863_v1 }
0x4e73   :  { %v4843_v16 = vpop.f32.mrb[64].mxu0  ;;  %v5070_v8 = vpop.f32.mrb[40].mxu1 }
0x4e74   :  { %v7055_v17 = vpop.f32.mrb[65].mxu0  ;;  %v7082_v33 = vpop.f32.mrb[41].mxu1  ;;  %v4847_v18 = vsel %vm2241_vm4, %v4843_v16, -inf }
0x4e75   :  { %4848 = vmax.xlane.f32.xlu1 %v4847_v18  ;;  %v7814_v17 = vld [vmem:[%s8995_s3 + $0x8] sm:$0xff]  }
0x4f02   :  { %v4849_v9 = vpop.xlane.xlu1 %4848 }
0x4f03   :  { %v4850_v47 = vsub.f32 %v4843_v16, %v4849_v9 }
0x4f05   :  { %v4851_v19 = vmul.f32 1.442695, %v4850_v47 }
0x4f07   :  { %7760 = vpow2.f32 %v4851_v19 }
0x4f11   :  { %v7761_v6 = vpop.eup %7760 }
0x4f12   :  { %v4853_v20 = vsel %vm2241_vm4, %v7761_v6, 0.0 }
0x4f13   :  { %4854 = vadd.xlane.f32.xlu0 %v4853_v20 }
0x4fa0   :  { %v4855_v48 = vpop.xlane.xlu0 %4854 }
0x4fa1   :  { %7762 = vrcp.f32 %v4855_v48 }
0x4fab   :  { %v7763_v25 = vpop.eup %7762 }
0x4fac   :  { %v4857_v49 = vmul.f32 %v7763_v25, %v7761_v6 }
0x4fae   :  { %7059 = vmatmul.mubr.msk.f32.vlgmr.msra.gmra.mrb[66].mxu0 %vm2253_vm5, %v4857_v49 }
0x4faf   :  { %7532 = vmatpush3.bf16.msra.mxu0 %v8815_v35  ;;  %7069 = vmatprep.mubr.msk.f32.mxu0 %vm7864_vm0, %v7865_v2 }
0x4fb0   :  { %7533 = vmatprep.subr.bf16.mxu0 %v7863_v1 }
0x4fb3   :  { %7535 = vmatpush3.bf16.msra.mxu0 %v8824_v53 }
0x4fb4   :  { %7542 = vmatprep.subr.bf16.mxu0 %v7863_v1 }
0x5081   :  { %v4927_v30 = vpop.f32.mrb[66].mxu0 }
0x5082   :  { %v7060_v60 = vpop.f32.mrb[67].mxu0  ;;  %7070 = vmatmul.mubr.msk.f32.vlgmr.msra.gmra.mrb[68].mxu0 %vm141_vm1, %v4927_v30 }
0x5083   :  { %7544 = vmatpush3.bf16.msra.mxu0 %v8832_v61  ;;  %7091 = vmatprep.mubr.msk.f32.mxu0 %vm7864_vm0, %v7865_v2 }
0x5084   :  { %7545 = vmatprep.subr.bf16.mxu0 %v7863_v1 }
0x5087   :  { %7547 = vmatpush3.bf16.msra.mxu0 %v8841_v63 }
0x5088   :  { %7572 = vmatprep.subr.bf16.mxu0 %v7863_v1 }
0x5155   :  { %v5000_v5 = vpop.f32.mrb[68].mxu0 }
0x5156   :  { %v5071_v34 = vadd.f32 %v5070_v8, %v5000_v5  ;;  %v7071_v51 = vpop.f32.mrb[69].mxu0  ;;  %v7813_v8 = vld [vmem:[%s8995_s3] sm:$0xff]   ;;  %s7869_s3 = smov [#allocation8]  }
0x5158   :  { %v5074_v26 = vadd.f32 %v8848_v13, %v5071_v34 }
0x515a   :  { %7764 = vtanh.f32 %v5074_v26 }
0x5164   :  { %v7765_v14 = vpop.eup %7764 }
0x5165   :  { %7092 = vmatmul.mubr.msk.f32.vlgmr.msra.gmra.mrb[70].mxu0 %vm141_vm1, %v7765_v14 }
0x5166   :  { %7574 = vmatpush3.bf16.msra.mxu0 %v8709_v56  ;;  %7137 = vmatprep.mubr.msk.f32.mxu0 %vm7864_vm0, %v7865_v2 }
0x5167   :  { %7575 = vmatprep.subr.bf16.mxu0 %v7863_v1 }
0x516a   :  { %7577 = vmatpush3.bf16.msra.mxu0 %v8718_v57 }
0x516b   :  { %7578 = vmatprep.subr.bf16.mxu0 %v7863_v1 }
0x5238   :  { %v5145_v21 = vpop.f32.mrb[70].mxu0 }
0x5239   :  { %v8859_v23 = vadd.f32 %v5145_v21, %v8350_v0  ;;  %v7093_v24 = vpop.f32.mrb[71].mxu0 }
0x523b   :  { %v5149_v59 = vsel %vm2548_vm6, %v8859_v23, -inf }
0x523c   :  { %5150 = vmax.xlane.f32.xlu0 %v5149_v59 }
0x52c9   :  { %v8863_v44 = vpop.xlane.xlu0 %5150 }
0x52ca   :  { %vm5159_vm14 = vcmp.eq.f32.partialorder %v8859_v23, %v8863_v44 }
0x52cb   :  { %v5160_v56 = vsel %vm5159_vm14, %v8358_v12, 128 }
0x52cc   :  { %v5161_v57 = vsel %vm2548_vm6, %v5160_v56, 2147483647 }
0x52cd   :  { %v5163_v62 = vshra.s32 %v5161_v57, 16  ;;  %v5162_v45 = vand.u32 65535, %v5161_v57  ;;  %v2552_v57 = vsub.f32 %v8353_v15, %v8360_v10 }
0x52cf   :  { %v5165_v28 = vcvt.s32.f32 %v5163_v62  ;;  %v5164_v46 = vcvt.s32.f32 %v5162_v45  ;;  %v2553_v45 = vmul.f32 1.442695, %v2552_v57 }
0x52d1   :  { %5166 = vmin.xlane.f32.xlu1 %v5165_v28 }
0x535e   :  { %v5167_v36 = vpop.xlane.xlu1 %5166 }
0x535f   :  { %vm5168_vm15 = vcmp.eq.f32.partialorder %v5165_v28, %v5167_v36  ;;  %v5173_v27 = vcvt.f32.s32 %v5167_v36 }
0x5360   :  { %v5169_v29 = vsel %vm5168_vm15, %v5164_v46, inf }
0x5361   :  { %5170 = vmin.xlane.f32.xlu0 %v5169_v29  ;;  %v5174_v11 = vshll.u32 %v5173_v27, 16  ;;  %v5152_v29 = vsub.f32 %v8859_v23, %v8863_v44 }
0x5363   :  { %v5153_v27 = vmul.f32 1.442695, %v5152_v29 }
0x53ee   :  { %v5171_v58 = vpop.xlane.xlu0 %5170 }
0x53ef   :  { %v5172_v38 = vcvt.f32.s32 %v5171_v58 }
0x53f1   :  { %v5175_v40 = vadd.s32 %v5174_v11, %v5172_v38 }
0x53f3   :  { %vm5179_vm7 = vcmp.eq.s32.totalorder %v8358_v12, %v5175_v40  ;;  %v8874_v16 = vsel %vm5176_vm2, %v5175_v40, %v8738_v4 }
0x53f4   :  { %7127 = vmatmul.mubr.msk.f32.vlgmr.msra.gmra.mrb[42].mxu1 %vm5179_vm7, %v7868_v37 }
0x53f5   :  { %7592 = vmatpush3.bf16.msra.mxu1 %v7813_v8  ;;  %7180 = vmatprep.mubr.msk.f32.mxu1 %vm7864_vm0, %v7865_v2 }
0x53f6   :  { %7593 = vmatprep.subr.bf16.mxu1 %v7863_v1 }
0x53f9   :  { %7595 = vmatpush3.bf16.msra.mxu1 %v7814_v17 }
0x54c7   :  { %v5248_v33 = vpop.f32.mrb[42].mxu1 }
0x54c8   :  { %v7128_v4 = vpop.f32.mrb[43].mxu1  ;;  %7138 = vmatmul.mubr.msk.f32.vlgmr.msra.gmra.mrb[72].mxu0 %vm141_vm1, %v5248_v33 }
0x54c9   :  { %7580 = vmatpush3.bf16.msra.mxu0 %v8751_v22  ;;  %7148 = vmatprep.mubr.msk.f32.mxu0 %vm7864_vm0, %v7865_v2 }
0x54ca   :  { %7581 = vmatprep.subr.bf16.mxu0 %v7863_v1 }
0x54cd   :  { %7583 = vmatpush3.bf16.msra.mxu0 %v8760_v3 }
0x54ce   :  { %7151 = vmatprep.subr.mxu0 %v7865_v2 }
0x54d0   :  { %7149 = vmatmul.mubr.msk.f32.vlgmr.msra.gmra.mrb[74].mxu0 %vm141_vm1, %v8781_v42 }
0x54d1   :  { %7153 = vmatprep.mubr.msk.f32.mxu0 %vm7864_vm0, %v7865_v2 }
0x54d6   :  { %7152 = vmatpush3.xpose.msk.msra.mxu0 %vm141_vm1, %v8267_v31 }
0x54d7   :  { %7156 = vmatprep.subr.mxu0 %v7865_v2 }
0x559b   :  { %v5321_v37 = vpop.f32.mrb[72].mxu0 }
0x559c   :  { %v7139_v22 = vpop.f32.mrb[73].mxu0  ;;  %v5322_v3 = vadd.f32 %v5321_v37, %v8223_v43 }
0x55a3   :  { %v5391_v18 = vpop.f32.mrb[74].mxu0 }
0x55a4   :  { %v5402_v9 = vadd.f32 %v5391_v18, %v8251_v50  ;;  %v7150_v47 = vpop.f32.mrb[75].mxu0  ;;  %v5395_v19 = vadd.f32 %v5391_v18, %v5322_v3 }
0x55a6   :  { %5404 = vrot.lane.b32.xlu1 %v5402_v9, %s7867_s0  ;;  %v5949_v42 = vmul.f32 -1.442695, %v5395_v19 }
0x55a8   :  { %7766 = vpow2.f32 %v5949_v42 }
0x55b2   :  { %v7767_v6 = vpop.eup %7766 }
0x55b3   :  { %v5399_v20 = vadd.f32 1.0, %v7767_v6 }
0x55b5   :  { %7768 = vrcp.f32 %v5399_v20 }
0x55bf   :  { %v7769_v48 = vpop.eup %7768 }
0x55c0   :  { %v5414_v5 = vsub.f32 1.0, %v7769_v48  ;;  %v5420_v43 = vmul.f32 %v7769_v48, %v8777_v41 }
0x5618   :  { %v5405_v25 = vpop.permute.xlu1 %5404 }
0x5619   :  { %v5407_v49 = vmul.f32 %v7769_v48, %v5405_v25 }
0x561b   :  { %5409 = vrot.lane.b32.xlu0 %v5407_v49, %s7867_s0 }
0x568d   :  { %v5410_v30 = vpop.permute.xlu0 %5409 }
0x568e   :  { %v5412_v60 = vadd.f32 %v5410_v30, %v5322_v3 }
0x5690   :  { %7770 = vtanh.f32 %v5412_v60 }
0x569a   :  { %v7771_v50 = vpop.eup %7770 }
0x569b   :  { %5416 = vrot.lane.b32.xlu1 %v7771_v50, %s7866_s9 }
0x570d   :  { %v5417_v34 = vpop.permute.xlu1 %5416 }
0x570e   :  { %v5419_v51 = vmul.f32 %v5417_v34, %v5414_v5 }
0x5710   :  { %v5421_v26 = vadd.f32 %v5420_v43, %v5419_v51 }
0x5712   :  { %5423 = vrot.lane.b32.xlu1 %v5421_v26, %s7866_s9  ;;  %s5848_s9 = sshll.u32 %s7869_s3, 4  ;;  %s5849_s9 = int_to_ptr.vmem [resolvable:$true] %s5848_s9 }
0x5713   :  { %s7815_s0 = scalar_lea.vmem %s5849_s9, 16  ;;  %s7819_s20 = scalar_lea.vmem %s5849_s9, 32 }
0x5714   :  { %p7816_p0 = scmp.ne.s32.totalorder %s5849_s9, %s7815_s0  ;;  %p7820_p1 = scmp.lt.s32.totalorder %s5849_s9, %s5849_s9 }
0x5715   :  { %p7821_p2 = scmp.lt.s32.totalorder %s7819_s20, %s7815_s0 }
0x5717   :  { %p7822_p3 = por %p7821_p2, %p7820_p1 }
0x5719   :  { %p7823_p4 = pnand %p7822_p3, %p7816_p0 }
0x5784   :  { %v5424_v14 = vpop.permute.xlu1 %5423 }
0x5785   :  { %7154 = vmatmul.mubr.msk.f32.vlgmr.msra.gmra.mrb[76].mxu0 %vm141_vm1, %v5424_v14  ;;  %7181 = vmatmul.mubr.msk.f32.vlgmr.msra.gmra.mrb[44].mxu1 %vm141_vm1, %v5424_v14 }
0x5786   :  { %7157 = vmatpush3.msra.mxu0 %v8267_v31  ;;  %7158 = vmatprep.mubr.msk.f32.mxu0 %vm7864_vm0, %v7865_v2  ;;  %v3852_v31 = vsub.f32 %v8607_v52, %v8611_v55 }
0x5787   :  { %7584 = vmatprep.subr.bf16.mxu0 %v7863_v1 }
0x5788   :  { %v3853_v46 = vmul.f32 1.442695, %v3852_v31 }
0x5858   :  { %v5493_v21 = vpop.f32.mrb[76].mxu0  ;;  %v5720_v24 = vpop.f32.mrb[44].mxu1 }
0x5859   :  { %v7155_v59 = vpop.f32.mrb[77].mxu0  ;;  %v7182_v41 = vpop.f32.mrb[45].mxu1  ;;  %v5497_v56 = vsel %vm2241_vm4, %v5493_v21, -inf }
0x585a   :  { %5498 = vmax.xlane.f32.xlu0 %v5497_v56 }
0x58e7   :  { %v5499_v62 = vpop.xlane.xlu0 %5498 }
0x58e8   :  { %v5500_v28 = vsub.f32 %v5493_v21, %v5499_v62 }
0x58ea   :  { %v5501_v36 = vmul.f32 1.442695, %v5500_v28 }
0x58ec   :  { %7772 = vpow2.f32 %v5501_v36 }
0x58ed   :  { %7774 = vpow2.f32 %v2553_v45 }
0x58ee   :  { %7776 = vpow2.f32 %v3853_v46 }
0x58ef   :  { %7778 = vpow2.f32 %v5153_v27 }
0x58f6   :  { %v7773_v58 = vpop.eup %7772 }
0x58f7   :  { %v5503_v11 = vsel %vm2241_vm4, %v7773_v58, 0.0  ;;  %v7775_v15 = vpop.eup %7774  ;;  %vm5826_vm4 = vcmp.eq.s32.totalorder %v8358_v12, 5 }
0x58f8   :  { %5504 = vadd.xlane.f32.xlu1 %v5503_v11  ;;  %v2555_v10 = vsel %vm2548_vm6, %v7775_v15, 0.0  ;;  %v7777_v38 = vpop.eup %7776 }
0x58f9   :  { %v3855_v52 = vsel %vm2548_vm6, %v7777_v38, 0.0  ;;  %v7779_v55 = vpop.eup %7778 }
0x58fa   :  { %v5155_v40 = vsel %vm2548_vm6, %v7779_v55, 0.0 }
0x58fc   :  { %2556 = vadd.xlane.f32.xlu1 %v2555_v10 }
0x5900   :  { %3856 = vadd.xlane.f32.xlu1 %v3855_v52 }
0x5904   :  { %5156 = vadd.xlane.f32.xlu1 %v5155_v40 }
0x5985   :  { %v5505_v23 = vpop.xlane.xlu1 %5504 }
0x5986   :  { %7780 = vrcp.f32 %v5505_v23 }
0x5989   :  { %v2557_v60 = vpop.xlane.xlu1 %2556 }
0x598d   :  { %v3857_v43 = vpop.xlane.xlu1 %3856 }
0x5990   :  { %v7781_v44 = vpop.eup %7780 }
0x5991   :  { %v5507_v8 = vmul.f32 %v7781_v44, %v7773_v58  ;;  %v5157_v14 = vpop.xlane.xlu1 %5156 }
0x5993   :  { %7159 = vmatmul.mubr.msk.f32.vlgmr.msra.gmra.mrb[78].mxu0 %vm2253_vm5, %v5507_v8  ;;  %vm5829_vm5 = vcmask 40960  }
0x5994   :  { %7586 = vmatpush3.bf16.msra.mxu0 %v8815_v35  ;;  %7169 = vmatprep.mubr.msk.f32.mxu0 %vm7864_vm0, %v7865_v2 }
0x5995   :  { %7587 = vmatprep.subr.bf16.mxu0 %v7863_v1 }
0x5998   :  { %7589 = vmatpush3.bf16.msra.mxu0 %v8824_v53 }
0x5999   :  { %7596 = vmatprep.subr.bf16.mxu0 %v7863_v1 }
0x5a66   :  { %v5577_v17 = vpop.f32.mrb[78].mxu0 }
0x5a67   :  { %v7160_v33 = vpop.f32.mrb[79].mxu0  ;;  %7170 = vmatmul.mubr.msk.f32.vlgmr.msra.gmra.mrb[80].mxu0 %vm141_vm1, %v5577_v17 }
0x5a68   :  { %7598 = vmatpush3.bf16.msra.mxu0 %v8832_v61  ;;  %7191 = vmatprep.mubr.msk.f32.mxu0 %vm7864_vm0, %v7865_v2 }
0x5a69   :  { %7599 = vmatprep.subr.bf16.mxu0 %v7863_v1  ;;  %v3202_v1 = vsub.f32 %v8503_v54, %v8507_v32 }
0x5a6b   :  { %v3203_v2 = vmul.f32 1.442695, %v3202_v1 }
0x5a6c   :  { %7601 = vmatpush3.bf16.msra.mxu0 %v8841_v63  ;;  %v4502_v63 = vsub.f32 %v8723_v7, %v8727_v39 }
0x5b3a   :  { %v5650_v35 = vpop.f32.mrb[80].mxu0 }
0x5b3b   :  { %v5721_v4 = vadd.f32 %v5720_v24, %v5650_v35  ;;  %v7171_v37 = vpop.f32.mrb[81].mxu0 }
0x5b3d   :  { %v5724_v53 = vadd.f32 %v8848_v13, %v5721_v4  ;;  %v4503_v13 = vmul.f32 1.442695, %v4502_v63 }
0x5b3f   :  { %7782 = vtanh.f32 %v5724_v53 }
0x5b40   :  { %7784 = vpow2.f32 %v3203_v2 }
0x5b41   :  { %7786 = vpow2.f32 %v4503_v13 }
0x5b49   :  { %v7783_v22 = vpop.eup %7782 }
0x5b4a   :  { %7192 = vmatmul.mubr.msk.f32.vlgmr.msra.gmra.mrb[82].mxu0 %vm141_vm1, %v7783_v22  ;;  %v7785_v25 = vpop.eup %7784 }
0x5b4b   :  { %v3205_v54 = vsel %vm2548_vm6, %v7785_v25, 0.0  ;;  %v7787_v32 = vpop.eup %7786 }
0x5b4c   :  { %v4505_v7 = vsel %vm2548_vm6, %v7787_v32, 0.0 }
0x5c1d   :  { %v5795_v18 = vpop.f32.mrb[82].mxu0 }
0x5c1e   :  { %v5796_v9 = vadd.f32 %v5795_v18, %v8350_v0  ;;  %v7193_v61 = vpop.f32.mrb[83].mxu0 }
0x5c20   :  { %v5799_v47 = vsel %vm2548_vm6, %v5796_v9, -inf }
0x5c21   :  { %5800 = vmax.xlane.f32.xlu0 %v5799_v47 }
0x5cae   :  { %v5801_v3 = vpop.xlane.xlu0 %5800 }
0x5caf   :  { %v5802_v19 = vsub.f32 %v5796_v9, %v5801_v3  ;;  %vm5809_vm0 = vcmp.eq.f32.partialorder %v5796_v9, %v5801_v3 }
0x5cb0   :  { %v5810_v42 = vsel %vm5809_vm0, %v8358_v12, 128 }
0x5cb1   :  { %v5803_v0 = vmul.f32 1.442695, %v5802_v19  ;;  %v5811_v6 = vsel %vm2548_vm6, %v5810_v42, 2147483647 }
0x5cb2   :  { %v5813_v20 = vshra.s32 %v5811_v6, 16  ;;  %v5812_v30 = vand.u32 65535, %v5811_v6 }
0x5cb3   :  { %7788 = vpow2.f32 %v5803_v0 }
0x5cb4   :  { %v5815_v48 = vcvt.s32.f32 %v5813_v20  ;;  %v5814_v5 = vcvt.s32.f32 %v5812_v30  ;;  %7790 = vrcp.f32 %v2557_v60 }
0x5cb6   :  { %5816 = vmin.xlane.f32.xlu0 %v5815_v48 }
0x5cba   :  { %3206 = vadd.xlane.f32.xlu0 %v3205_v54 }
0x5cbd   :  { %v7789_v39 = vpop.eup %7788 }
0x5cbe   :  { %4506 = vadd.xlane.f32.xlu0 %v4505_v7  ;;  %v5805_v49 = vsel %vm2548_vm6, %v7789_v39, 0.0  ;;  %v7791_v21 = vpop.eup %7790 }
0x5cbf   :  { %v2578_v41 = vsel %vm2576_vm12, %v7791_v21, 0.0 }
0x5cc2   :  { %5806 = vadd.xlane.f32.xlu0 %v5805_v49 }
0x5d43   :  { %v5817_v50 = vpop.xlane.xlu0 %5816 }
0x5d44   :  { %vm5818_vm1 = vcmp.eq.f32.partialorder %v5815_v48, %v5817_v50 }
0x5d45   :  { %v5819_v34 = vsel %vm5818_vm1, %v5814_v5, inf }
0x5d46   :  { %5820 = vmin.xlane.f32.xlu1 %v5819_v34 }
0x5d47   :  { %v3207_v51 = vpop.xlane.xlu0 %3206 }
0x5d48   :  { %7792 = vrcp.f32 %v3207_v51 }
0x5d49   :  { %7794 = vrcp.f32 %v3857_v43 }
0x5d4b   :  { %v4507_v26 = vpop.xlane.xlu0 %4506 }
0x5d4c   :  { %7796 = vrcp.f32 %v4507_v26 }
0x5d4d   :  { %7798 = vrcp.f32 %v5157_v14 }
0x5d4f   :  { %v5807_v24 = vpop.xlane.xlu0 %5806 }
0x5d50   :  { %7800 = vrcp.f32 %v5807_v24 }
0x5d52   :  { %v7793_v59 = vpop.eup %7792 }
0x5d53   :  { %v3228_v56 = vsel %vm3226_vm13, %v7793_v59, %v2578_v41  ;;  %v7795_v57 = vpop.eup %7794 }
0x5d54   :  { %v3878_v28 = vsel %vm3876_vm3, %v7795_v57, %v3228_v56 }
0x5d56   :  { %v7797_v62 = vpop.eup %7796 }
0x5d57   :  { %v4528_v45 = vsel %vm4526_vm10, %v7797_v62, %v3878_v28  ;;  %v7799_v31 = vpop.eup %7798 }
0x5d58   :  { %v5178_v46 = vsel %vm5176_vm2, %v7799_v31, %v4528_v45 }
0x5d5a   :  { %v7801_v36 = vpop.eup %7800 }
0x5d5b   :  { %v5828_v29 = vsel %vm5826_vm4, %v7801_v36, %v5178_v46 }
0x5d5c   :  { %5831 = vst.msk [vmem:[#allocation8] sm:$0x1] %vm5829_vm5, %v5828_v29 }
0x5d5d   :  { %7826 = shalt.err (!%p7823_p4)
}
0x5d5e   :  { %s7827_s23 = scalar_lea.hbm %s9000_s8, 16 }
0x5d5f   :  { %p7828_p5 = scmp.ne.s32.totalorder %s9000_s8, %s7827_s23  ;;  %p7831_p6 = scmp.lt.u32.totalorder %s7827_s23, %s9000_s8 }
0x5d61   :  { %p7833_p7 = pnand %p7831_p6, %p7828_p5 }
0x5d63   :  { %7836 = shalt.err (!%p7833_p7)
}
0x5d64   :  { %5851 = dma.vmem_to_hbm [thread:$0]  %s5849_s9, 16, %s9000_s8, [#allocation9]   ;;  %v5823_v27 = vcvt.f32.s32 %v5817_v50 }
0x5d65   :  { %s7870_s29 = smov [#allocation6]  }
0x5d66   :  { %v5824_v11 = vshll.u32 %v5823_v27, 16  ;;  %s5838_s30 = sshll.u32 %s7870_s29, 4  ;;  %s5839_s30 = int_to_ptr.vmem [resolvable:$true] %s5838_s30 }
0x5d67   :  { %s7837_s2 = scalar_lea.vmem %s5839_s30, 16  ;;  %s7841_s10 = scalar_lea.vmem %s5839_s30, 32 }
0x5d68   :  { %p7838_p8 = scmp.ne.s32.totalorder %s5839_s30, %s7837_s2  ;;  %p7842_p9 = scmp.lt.s32.totalorder %s5839_s30, %s5839_s30 }
0x5d69   :  { %p7843_p10 = scmp.lt.s32.totalorder %s7841_s10, %s7837_s2 }
0x5d6b   :  { %p7844_p11 = por %p7843_p10, %p7842_p9 }
0x5d6d   :  { %p7845_p12 = pnand %p7844_p11, %p7838_p8 }
0x5dd3   :  { %v5821_v58 = vpop.xlane.xlu1 %5820 }
0x5dd4   :  { %v5822_v15 = vcvt.f32.s32 %v5821_v58 }
0x5dd6   :  { %v5825_v10 = vadd.s32 %v5824_v11, %v5822_v15 }
0x5dd8   :  { %v5827_v38 = vsel %vm5826_vm4, %v5825_v10, %v8874_v16 }
0x5dd9   :  { %5830 = vst.msk [vmem:[#allocation6] sm:$0x1] %vm5829_vm5, %v5827_v38 }
0x5dda   :  { %7848 = shalt.err (!%p7845_p12)
}
0x5ddb   :  { %s7849_s12 = scalar_lea.hbm %s8999_s7, 16 }
0x5ddc   :  { %p7850_p13 = scmp.ne.s32.totalorder %s8999_s7, %s7849_s12  ;;  %p7853_p0 = scmp.lt.u32.totalorder %s7849_s12, %s8999_s7 }
0x5dde   :  { %p7855_p1 = pnand %p7853_p0, %p7850_p13 }
0x5de0   :  { %7858 = shalt.err (!%p7855_p1)
}
0x5de1   :  { %5841 = dma.vmem_to_hbm [thread:$0]  %s5839_s30, 16, %s8999_s7, [#allocation7]  }
0x5de2   :  { %7859 = dma.done.wait [#allocation7], 16  }
0x5de3   :  { %7860 = vsyncadd [#allocation7], 4294967280 }
0x5de4   :  { %7861 = dma.done.wait [#allocation9], 16  }
0x5de5   :  { %7862 = vsyncadd [#allocation9], 4294967280 }
0x5de6   :  { %5858 = vsyncpa [#allocation7], 1 }
0x5de7   :  { %5859 = vsyncpa [#allocation9], 1 }

</bundles_post_ra>
